<compile_context>
chip_gen: v5e
topology: v5e:2x2
jax: 0.10.0
libtpu: 0.0.40
codegen_flags: <defaults>
</compile_context>

<pallas_src>
import jax
import jax.numpy as jnp
from jax.experimental import pallas as pl
from jax.experimental.pallas import tpu as pltpu


# --------------------------------------------------------------------------
# Host-side packing helper
# --------------------------------------------------------------------------
def _pack_rows(entries):
    """Stack same-width 2D params along rows, each padded to a multiple of 8
    rows so every in-kernel slice starts on a sublane-tile boundary.
    Returns (packed (R, W) f32 array, {name: row_offset})."""
    width = entries[0][1].shape[-1]
    offs, blocks, row = {}, [], 0
    for name, a in entries:
        a = jnp.asarray(a, jnp.float32).reshape(-1, width)
        rp = -(-a.shape[0] // 8) * 8
        if rp > a.shape[0]:
            a = jnp.concatenate(
                [a, jnp.zeros((rp - a.shape[0], width), jnp.float32)], axis=0)
        offs[name] = row
        blocks.append(a)
        row += rp
    return jnp.concatenate(blocks, axis=0), offs


# --------------------------------------------------------------------------
# Parameter construction (deterministic, PyTorch-Linear-like uniform init)
# --------------------------------------------------------------------------
def _linear(key, fan_in, fan_out):
    k1, k2 = jax.random.split(key)
    bound = 1.0 / (fan_in ** 0.5)
    w = jax.random.uniform(k1, (fan_out, fan_in), jnp.float32, -bound, bound)
    b = jax.random.uniform(k2, (fan_out,), jnp.float32, -bound, bound)
    return w, b


def make_params(key, H_e, H_d, stock_num, seq_len):
    keys = jax.random.split(key, 13)
    p = {}
    p["U_e_w"], p["U_e_b"] = _linear(keys[0], seq_len, seq_len)
    p["W_e_w"], p["W_e_b"] = _linear(keys[1], 2 * H_e, seq_len)
    p["v_e_w"], p["v_e_b"] = _linear(keys[2], seq_len, 1)
    p["lstm_e_wih"], p["lstm_e_bih"] = _linear(keys[3], stock_num, 4 * H_e)
    p["lstm_e_whh"], p["lstm_e_bhh"] = _linear(keys[4], H_e, 4 * H_e)
    p["W_d_w"], p["W_d_b"] = _linear(keys[5], 2 * H_d, H_e)
    p["U_d_w"], p["U_d_b"] = _linear(keys[6], H_e, H_e)
    p["v_d_w"], p["v_d_b"] = _linear(keys[7], H_e, 1)
    p["w_tilde_w"], p["w_tilde_b"] = _linear(keys[8], H_e + 1, 1)
    p["lstm_d_wih"], p["lstm_d_bih"] = _linear(keys[9], 1, 4 * H_d)
    p["lstm_d_whh"], p["lstm_d_bhh"] = _linear(keys[10], H_d, 4 * H_d)
    p["W_y_w"], p["W_y_b"] = _linear(keys[11], H_d + H_e, H_d)
    p["v_y_w"], p["v_y_b"] = _linear(keys[12], H_d, 1)
    return p


# --------------------------------------------------------------------------
# Wrapper: weight re-layout / packing (glue) + pallas_call with closed-over
# static offsets.
# --------------------------------------------------------------------------
def darnn_forward(params, x, y, H_e, H_d):
    B, seq_len, stock_num = x.shape
    assert H_e >= 5, "misc scalar row is packed into the H_e-wide buffer"
    f32 = jnp.float32

    xT = jnp.transpose(x, (0, 2, 1)).reshape(B * stock_num, seq_len)
    y0 = y[:, 0, :]                         # only y[:, 0] is ever consumed

    # five scalar biases packed into one (1, H_e) row
    misc = jnp.zeros((1, H_e), f32)
    misc = misc.at[0, 0].set(params["v_e_b"][0])
    misc = misc.at[0, 1].set(params["v_d_b"][0])
    misc = misc.at[0, 2].set(params["w_tilde_w"][0, H_e])   # y-coeff of w_tilde
    misc = misc.at[0, 3].set(params["w_tilde_b"][0])
    misc = misc.at[0, 4].set(params["v_y_b"][0])

    # ---- width-grouped packed parameter buffers -------------------------
    p_seq, o_seq = _pack_rows([
        ("ue_w", params["U_e_w"].T),                          # (seq, seq)
        ("we_hs", params["W_e_w"].T),                         # (2*H_e, seq) [h|c]
        ("ue_b", params["U_e_b"].reshape(1, -1)),
        ("we_b", params["W_e_b"].reshape(1, -1)),
        ("ve_w", params["v_e_w"].reshape(1, -1)),
    ])
    p_ge, o_ge = _pack_rows([
        ("w_xh_e", jnp.concatenate([params["lstm_e_wih"].T,
                                    params["lstm_e_whh"].T], axis=0)),  # (K+H_e, 4H_e)
        ("b_e", (params["lstm_e_bih"] + params["lstm_e_bhh"]).reshape(1, -1)),
    ])
    p_he, o_he = _pack_rows([
        ("ud_w", params["U_d_w"].T),                          # (H_e, H_e)
        ("wd_b", params["W_d_b"].reshape(1, -1)),
        ("ud_b", params["U_d_b"].reshape(1, -1)),
        ("vd_w", params["v_d_w"].reshape(1, -1)),
        ("wt_c", params["w_tilde_w"][:, :H_e]),               # (1, H_e)
        ("misc", misc),
    ])
    p_hd, o_hd = _pack_rows([
        ("wy_dc", params["W_y_w"].T),                         # (H_d+H_e, H_d) [d|c]
        ("wy_b", params["W_y_b"].reshape(1, -1)),
        ("vy_w", params["v_y_w"].reshape(1, -1)),
    ])
    p_gd, o_gd = _pack_rows([
        ("wih_d", params["lstm_d_wih"].T.reshape(1, -1)),     # (1, 4H_d)
        ("b_d", (params["lstm_d_bih"] + params["lstm_d_bhh"]).reshape(1, -1)),
    ])
    # NOTE: W_d_w and lstm_d_whh are intentionally not shipped to the kernel:
    # the decoder only runs step t=0 where d_0 = s_0 = 0, so those weights
    # multiply exact zeros (mathematically identical to the reference).

    # ------------------------------ kernel -------------------------------
    def kernel(x_ref, xT_ref, y0_ref, pseq_ref, pge_ref, phe_ref, phd_ref,
               pgd_ref, out_ref, h_scr):
        # ---- unpack parameters once (static, 8-row aligned slices) ------
        ue_w = pseq_ref[o_seq["ue_w"]:o_seq["ue_w"] + seq_len, :]
        we_hs = pseq_ref[o_seq["we_hs"]:o_seq["we_hs"] + 2 * H_e, :]
        ue_b = pseq_ref[o_seq["ue_b"]:o_seq["ue_b"] + 1, :]
        we_b = pseq_ref[o_seq["we_b"]:o_seq["we_b"] + 1, :]
        ve_w = pseq_ref[o_seq["ve_w"]:o_seq["ve_w"] + 1, :]

        w_xh_e = pge_ref[o_ge["w_xh_e"]:o_ge["w_xh_e"] + stock_num + H_e, :]
        b_e = pge_ref[o_ge["b_e"]:o_ge["b_e"] + 1, :]

        ud_w = phe_ref[o_he["ud_w"]:o_he["ud_w"] + H_e, :]
        wd_b = phe_ref[o_he["wd_b"]:o_he["wd_b"] + 1, :]
        ud_b = phe_ref[o_he["ud_b"]:o_he["ud_b"] + 1, :]
        vd_w = phe_ref[o_he["vd_w"]:o_he["vd_w"] + 1, :]
        wt_c = phe_ref[o_he["wt_c"]:o_he["wt_c"] + 1, :]
        misc_r = phe_ref[o_he["misc"]:o_he["misc"] + 1, :]
        ve_b, vd_b = misc_r[:, 0:1], misc_r[:, 1:2]
        wt_y, wt_b, vy_b = misc_r[:, 2:3], misc_r[:, 3:4], misc_r[:, 4:5]

        wy_dc = phd_ref[o_hd["wy_dc"]:o_hd["wy_dc"] + H_d + H_e, :]
        wy_b = phd_ref[o_hd["wy_b"]:o_hd["wy_b"] + 1, :]
        vy_w = phd_ref[o_hd["vy_w"]:o_hd["vy_w"] + 1, :]

        wih_d = pgd_ref[o_gd["wih_d"]:o_gd["wih_d"] + 1, :]
        b_d = pgd_ref[o_gd["b_d"]:o_gd["b_d"] + 1, :]

        # ---------------- Encoder with input attention -------------------
        # U_e(x[:, :, k]) for every driving series k, t-independent: one dot.
        ue_out = (jnp.dot(xT_ref[...], ue_w, preferred_element_type=f32)
                  + ue_b).reshape(B, stock_num, seq_len)             # (B, K, T)

        h = jnp.zeros((B, H_e), f32)
        c = jnp.zeros((B, H_e), f32)

        for t in range(seq_len):
            # W_e(cat(h, c)): single fused matmul on [h | c]
            hc = jnp.concatenate([h, c], axis=1)                     # (B, 2H_e)
            we_out = jnp.dot(hc, we_hs, preferred_element_type=f32) + we_b
            re1 = jnp.tanh(ue_out + we_out[:, None, :])              # (B, K, T)
            e = jnp.sum(re1 * ve_w[None, :, :], axis=-1) + ve_b      # (B, K)
            e = e - jnp.max(e, axis=1, keepdims=True)
            pe = jnp.exp(e)
            alpha = pe * pl.reciprocal(jnp.sum(pe, axis=1, keepdims=True),
                                       approx=True)                 # (B, K)

            x_tilde = alpha * x_ref[:, t, :]                         # (B, K)

            # one-step LSTM: single fused matmul on [x_tilde | h]
            xh = jnp.concatenate([x_tilde, h], axis=1)               # (B, K+H_e)
            gates = jnp.dot(xh, w_xh_e, preferred_element_type=f32) + b_e
            sg = jax.nn.sigmoid(gates)          # full-width, one EUP pass
            th = jnp.tanh(gates)                # full-width, one EUP pass
            gi, gf = sg[:, 0:H_e], sg[:, H_e:2 * H_e]                # i, f
            gg, go = th[:, 2 * H_e:3 * H_e], sg[:, 3 * H_e:4 * H_e]  # g, o
            c = gf * c + gi * gg
            h = go * jnp.tanh(c)
            h_scr[t * B:(t + 1) * B, :] = h     # t-major stack for the decoder

        # ---------- Decoder with temporal attention (only t=0 runs) ------
        # d_0 = s_0 = 0  =>  W_d(cat(d, s)) reduces exactly to its bias.
        h_all = h_scr[...]                                           # (T*B, H_e)
        ud_all = jnp.dot(h_all, ud_w, preferred_element_type=f32) + ud_b
        wre = jnp.tanh(ud_all + wd_b) * vd_w                         # (T*B, H_e)
        l = jnp.concatenate(
            [jnp.sum(wre[t * B:(t + 1) * B, :], axis=-1, keepdims=True)
             for t in range(seq_len)], axis=1) + vd_b                # (B, T)
        l = l - jnp.max(l, axis=1, keepdims=True)
        pe_l = jnp.exp(l)
        beta = pe_l * pl.reciprocal(jnp.sum(pe_l, axis=1, keepdims=True),
                                    approx=True)                     # (B, T)

        # context vector: short one-shot weighted sum (off the hot loop)
        c_t = jnp.zeros((B, H_e), f32)
        for t in range(seq_len):
            c_t = c_t + beta[:, t:t + 1] * h_all[t * B:(t + 1) * B, :]

        y_tilde = (jnp.sum(c_t * wt_c, axis=-1, keepdims=True)
                   + y0_ref[...] * wt_y + wt_b)                      # (B, 1)

        # one-step decoder LSTM from (d, s) = 0: W_hh @ d == 0, f * s == 0.
        gates_d = y_tilde * wih_d + b_d                              # (B, 4H_d)
        sgd = jax.nn.sigmoid(gates_d)
        thd = jnp.tanh(gates_d)
        gi_d = sgd[:, 0:H_d]
        gg_d = thd[:, 2 * H_d:3 * H_d]
        go_d = sgd[:, 3 * H_d:4 * H_d]
        s_new = gi_d * gg_d
        d_new = go_d * jnp.tanh(s_new)

        # ----------- Output head: v_y(W_y(cat(d, c_t))), fused -----------
        dc = jnp.concatenate([d_new, c_t], axis=1)                   # (B, H_d+H_e)
        hid = jnp.dot(dc, wy_dc, preferred_element_type=f32) + wy_b  # (B, H_d)
        out_ref[...] = jnp.sum(hid * vy_w, axis=-1, keepdims=True) + vy_b

    vmem = pl.BlockSpec(memory_space=pltpu.MemorySpace.VMEM)
    return pl.pallas_call(
        kernel,
        out_shape=jax.ShapeDtypeStruct((B, 1), jnp.float32),
        in_specs=[vmem] * 8,
        out_specs=vmem,
        scratch_shapes=[pltpu.VMEM((seq_len * B, H_e), jnp.float32)],
    )(x, xT, y0, p_seq, p_ge, p_he, p_hd, p_gd)


# --------------------------------------------------------------------------
# Pure-JAX reference (mirrors the PyTorch forward) for a correctness check
# --------------------------------------------------------------------------
def darnn_reference(params, x, y, H_e, H_d):
    B, seq_len, stock_num = x.shape

    def lin(name, v):
        return v @ params[name + "_w"].T + params[name + "_b"]

    def lstm_step(x_t, h, c, wih, whh, bih, bhh):
        g = x_t @ wih.T + bih + h @ whh.T + bhh
        gi, gf, gg, go = jnp.split(g, 4, axis=1)
        c = jax.nn.sigmoid(gf) * c + jax.nn.sigmoid(gi) * jnp.tanh(gg)
        h = jax.nn.sigmoid(go) * jnp.tanh(c)
        return h, c

    h = jnp.zeros((B, H_e)); c = jnp.zeros((B, H_e))
    h_enc = []
    for t in range(seq_len):
        hs = jnp.concatenate([h, c], axis=1)
        es = [lin("v_e", jnp.tanh(lin("W_e", hs) + lin("U_e", x[:, :, k])))
              for k in range(stock_num)]
        alpha = jax.nn.softmax(jnp.concatenate(es, axis=1), axis=1)
        x_tilde = alpha * x[:, t, :]
        h, c = lstm_step(x_tilde, h, c, params["lstm_e_wih"], params["lstm_e_whh"],
                         params["lstm_e_bih"], params["lstm_e_bhh"])
        h_enc.append(h)
    h_enc = jnp.stack(h_enc, axis=1)

    d = jnp.zeros((B, H_d)); s = jnp.zeros((B, H_d))
    ds = jnp.concatenate([d, s], axis=1)
    ls = [lin("v_d", jnp.tanh(lin("W_d", ds) + lin("U_d", h_enc[:, i, :])))
          for i in range(seq_len)]
    beta = jax.nn.softmax(jnp.concatenate(ls, axis=1), axis=1)
    c_t = jnp.sum(beta[:, :, None] * h_enc, axis=1)
    y_tilde = lin("w_tilde", jnp.concatenate([c_t, y[:, 0]], axis=1))
    d, s = lstm_step(y_tilde, d, s, params["lstm_d_wih"], params["lstm_d_whh"],
                     params["lstm_d_bih"], params["lstm_d_bhh"])
    return lin("v_y", lin("W_y", jnp.concatenate([d, c_t], axis=1)))


if __name__ == "__main__":
    B, seq_len, stock_num, H_e, H_d = 2, 8, 4, 32, 32
    key = jax.random.PRNGKey(0)
    kx, ky, kp = jax.random.split(key, 3)
    x = jax.random.normal(kx, (B, seq_len, stock_num), jnp.float32)
    y = jax.random.normal(ky, (B, seq_len, 1), jnp.float32)
    params = make_params(kp, H_e, H_d, stock_num, seq_len)

    out = darnn_forward(params, x, y, H_e, H_d)
    out = jax.block_until_ready(out)

    ref = darnn_reference(params, x, y, H_e, H_d)
    assert out.shape == (B, 1)
    # tolerance relaxed slightly: softmax denominators use the EUP approximate
    # reciprocal (pl.reciprocal(approx=True)) inside the kernel.
    assert jnp.allclose(out, ref, atol=2e-3, rtol=2e-3), (out, ref)
    print("KERNEL_OK")
</pallas_src>

<mosaic_0001>
module attributes {stable_mosaic.version = 11 : i64} {
  func.func @kernel(%arg0: memref<2x8x4xf32, #tpu.memory_space<vmem>>, %arg1: memref<8x8xf32, #tpu.memory_space<vmem>>, %arg2: memref<2x1xf32, #tpu.memory_space<vmem>>, %arg3: memref<96x8xf32, #tpu.memory_space<vmem>>, %arg4: memref<48x128xf32, #tpu.memory_space<vmem>>, %arg5: memref<72x32xf32, #tpu.memory_space<vmem>>, %arg6: memref<80x32xf32, #tpu.memory_space<vmem>>, %arg7: memref<16x128xf32, #tpu.memory_space<vmem>>, %arg8: memref<2x1xf32, #tpu.memory_space<vmem>>, %arg9: memref<16x32xf32, #tpu.memory_space<vmem>>) attributes {dimension_semantics = [], scalar_prefetch = 0 : i64, scratch_operands = 1 : i64, tpu.core_type = #tpu.core_type<tc>} {
    %c0 = arith.constant 0 : index
    %c0_0 = arith.constant 0 : index
    %0 = vector.load %arg3[%c0, %c0_0] : memref<96x8xf32, #tpu.memory_space<vmem>>, vector<8x8xf32>
    %c8 = arith.constant 8 : index
    %c0_1 = arith.constant 0 : index
    %1 = vector.load %arg3[%c8, %c0_1] : memref<96x8xf32, #tpu.memory_space<vmem>>, vector<64x8xf32>
    %c72 = arith.constant 72 : index
    %c0_2 = arith.constant 0 : index
    %2 = vector.load %arg3[%c72, %c0_2] : memref<96x8xf32, #tpu.memory_space<vmem>>, vector<1x8xf32>
    %c80 = arith.constant 80 : index
    %c0_3 = arith.constant 0 : index
    %3 = vector.load %arg3[%c80, %c0_3] : memref<96x8xf32, #tpu.memory_space<vmem>>, vector<1x8xf32>
    %c88 = arith.constant 88 : index
    %c0_4 = arith.constant 0 : index
    %4 = vector.load %arg3[%c88, %c0_4] : memref<96x8xf32, #tpu.memory_space<vmem>>, vector<1x8xf32>
    %c0_5 = arith.constant 0 : index
    %c0_6 = arith.constant 0 : index
    %5 = vector.load %arg4[%c0_5, %c0_6] : memref<48x128xf32, #tpu.memory_space<vmem>>, vector<36x128xf32>
    %c40 = arith.constant 40 : index
    %c0_7 = arith.constant 0 : index
    %6 = vector.load %arg4[%c40, %c0_7] : memref<48x128xf32, #tpu.memory_space<vmem>>, vector<1x128xf32>
    %c0_8 = arith.constant 0 : index
    %c0_9 = arith.constant 0 : index
    %7 = vector.load %arg5[%c0_8, %c0_9] : memref<72x32xf32, #tpu.memory_space<vmem>>, vector<32x32xf32>
    %c32 = arith.constant 32 : index
    %c0_10 = arith.constant 0 : index
    %8 = vector.load %arg5[%c32, %c0_10] : memref<72x32xf32, #tpu.memory_space<vmem>>, vector<1x32xf32>
    %c40_11 = arith.constant 40 : index
    %c0_12 = arith.constant 0 : index
    %9 = vector.load %arg5[%c40_11, %c0_12] : memref<72x32xf32, #tpu.memory_space<vmem>>, vector<1x32xf32>
    %c48 = arith.constant 48 : index
    %c0_13 = arith.constant 0 : index
    %10 = vector.load %arg5[%c48, %c0_13] : memref<72x32xf32, #tpu.memory_space<vmem>>, vector<1x32xf32>
    %c56 = arith.constant 56 : index
    %c0_14 = arith.constant 0 : index
    %11 = vector.load %arg5[%c56, %c0_14] : memref<72x32xf32, #tpu.memory_space<vmem>>, vector<1x32xf32>
    %c64 = arith.constant 64 : index
    %c0_15 = arith.constant 0 : index
    %12 = vector.load %arg5[%c64, %c0_15] : memref<72x32xf32, #tpu.memory_space<vmem>>, vector<1x32xf32>
    %13 = vector.extract_strided_slice %12 {offsets = [0, 0], sizes = [1, 1], strides = [1, 1]} : vector<1x32xf32> to vector<1x1xf32>
    %14 = vector.extract_strided_slice %12 {offsets = [0, 1], sizes = [1, 1], strides = [1, 1]} : vector<1x32xf32> to vector<1x1xf32>
    %15 = vector.extract_strided_slice %12 {offsets = [0, 2], sizes = [1, 1], strides = [1, 1]} : vector<1x32xf32> to vector<1x1xf32>
    %16 = vector.extract_strided_slice %12 {offsets = [0, 3], sizes = [1, 1], strides = [1, 1]} : vector<1x32xf32> to vector<1x1xf32>
    %17 = vector.extract_strided_slice %12 {offsets = [0, 4], sizes = [1, 1], strides = [1, 1]} : vector<1x32xf32> to vector<1x1xf32>
    %c0_16 = arith.constant 0 : index
    %c0_17 = arith.constant 0 : index
    %18 = vector.load %arg6[%c0_16, %c0_17] : memref<80x32xf32, #tpu.memory_space<vmem>>, vector<64x32xf32>
    %c64_18 = arith.constant 64 : index
    %c0_19 = arith.constant 0 : index
    %19 = vector.load %arg6[%c64_18, %c0_19] : memref<80x32xf32, #tpu.memory_space<vmem>>, vector<1x32xf32>
    %c72_20 = arith.constant 72 : index
    %c0_21 = arith.constant 0 : index
    %20 = vector.load %arg6[%c72_20, %c0_21] : memref<80x32xf32, #tpu.memory_space<vmem>>, vector<1x32xf32>
    %c0_22 = arith.constant 0 : index
    %c0_23 = arith.constant 0 : index
    %21 = vector.load %arg7[%c0_22, %c0_23] : memref<16x128xf32, #tpu.memory_space<vmem>>, vector<1x128xf32>
    %c8_24 = arith.constant 8 : index
    %c0_25 = arith.constant 0 : index
    %22 = vector.load %arg7[%c8_24, %c0_25] : memref<16x128xf32, #tpu.memory_space<vmem>>, vector<1x128xf32>
    %c0_26 = arith.constant 0 : index
    %c0_27 = arith.constant 0 : index
    %23 = vector.load %arg1[%c0_26, %c0_27] : memref<8x8xf32, #tpu.memory_space<vmem>>, vector<8x8xf32>
    %cst = arith.constant dense<0.000000e+00> : vector<8x8xf32>
    %24 = tpu.matmul %23, %0, %cst {dimension_numbers = #tpu.dot_dimension_numbers<[1], [0], [0], [1], [0, 0, 1, 1], [], []>} : vector<8x8xf32>, vector<8x8xf32>, vector<8x8xf32> -> vector<8x8xf32>
    %25 = vector.broadcast %2 : vector<1x8xf32> to vector<8x8xf32>
    %26 = arith.addf %24, %25 : vector<8x8xf32>
    %27 = vector.shape_cast %26 : vector<8x8xf32> to vector<2x4x8xf32>
    %cst_28 = arith.constant 0.000000e+00 : f32
    %28 = vector.broadcast %cst_28 : f32 to vector<2x32xf32>
    %cst_29 = arith.constant 0.000000e+00 : f32
    %29 = vector.broadcast %cst_29 : f32 to vector<2x32xf32>
    %30 = tpu.concatenate %28, %29 in 1 : vector<2x32xf32>, vector<2x32xf32> -> vector<2x64xf32>
    %cst_30 = arith.constant dense<0.000000e+00> : vector<2x8xf32>
    %31 = tpu.matmul %30, %1, %cst_30 {dimension_numbers = #tpu.dot_dimension_numbers<[1], [0], [0], [1], [0, 0, 1, 1], [], []>} : vector<2x64xf32>, vector<64x8xf32>, vector<2x8xf32> -> vector<2x8xf32>
    %32 = vector.broadcast %3 : vector<1x8xf32> to vector<2x8xf32>
    %33 = arith.addf %31, %32 : vector<2x8xf32>
    %34 = vector.shape_cast %33 : vector<2x8xf32> to vector<2x1x8xf32>
    %35 = vector.broadcast %34 : vector<2x1x8xf32> to vector<2x4x8xf32>
    %36 = arith.addf %27, %35 : vector<2x4x8xf32>
    %37 = math.tanh %36 : vector<2x4x8xf32>
    %38 = vector.shape_cast %4 : vector<1x8xf32> to vector<1x1x8xf32>
    %39 = vector.broadcast %38 : vector<1x1x8xf32> to vector<2x4x8xf32>
    %40 = arith.mulf %37, %39 : vector<2x4x8xf32>
    %cst_31 = arith.constant dense<0.000000e+00> : vector<2x4xf32>
    %41 = vector.multi_reduction <add>, %40, %cst_31 [2] : vector<2x4x8xf32> to vector<2x4xf32>
    %42 = vector.broadcast %13 : vector<1x1xf32> to vector<2x4xf32>
    %43 = arith.addf %41, %42 : vector<2x4xf32>
    %cst_32 = arith.constant dense<0xFF800000> : vector<2xf32>
    %44 = vector.multi_reduction <maximumf>, %43, %cst_32 [1] : vector<2x4xf32> to vector<2xf32>
    %45 = vector.shape_cast %44 : vector<2xf32> to vector<2x1xf32>
    %46 = vector.broadcast %45 : vector<2x1xf32> to vector<2x4xf32>
    %47 = arith.subf %43, %46 : vector<2x4xf32>
    %48 = math.exp %47 : vector<2x4xf32>
    %cst_33 = arith.constant dense<0.000000e+00> : vector<2xf32>
    %49 = vector.multi_reduction <add>, %48, %cst_33 [1] : vector<2x4xf32> to vector<2xf32>
    %50 = vector.shape_cast %49 : vector<2xf32> to vector<2x1xf32>
    %51 = tpu.reciprocal %50 {approx = true} : vector<2x1xf32> -> vector<2x1xf32>
    %52 = vector.broadcast %51 : vector<2x1xf32> to vector<2x4xf32>
    %53 = arith.mulf %48, %52 : vector<2x4xf32>
    %c0_34 = arith.constant 0 : index
    %c0_35 = arith.constant 0 : index
    %c0_36 = arith.constant 0 : index
    %54 = vector.load %arg0[%c0_34, %c0_35, %c0_36] : memref<2x8x4xf32, #tpu.memory_space<vmem>>, vector<2x1x4xf32>
    %55 = vector.shape_cast %54 : vector<2x1x4xf32> to vector<2x4xf32>
    %56 = arith.mulf %53, %55 : vector<2x4xf32>
    %57 = tpu.concatenate %56, %28 in 1 : vector<2x4xf32>, vector<2x32xf32> -> vector<2x36xf32>
    %cst_37 = arith.constant dense<0.000000e+00> : vector<2x128xf32>
    %58 = tpu.matmul %57, %5, %cst_37 {dimension_numbers = #tpu.dot_dimension_numbers<[1], [0], [0], [1], [0, 0, 1, 1], [], []>} : vector<2x36xf32>, vector<36x128xf32>, vector<2x128xf32> -> vector<2x128xf32>
    %59 = vector.broadcast %6 : vector<1x128xf32> to vector<2x128xf32>
    %60 = arith.addf %58, %59 : vector<2x128xf32>
    %61 = arith.negf %60 : vector<2x128xf32>
    %62 = math.exp %61 : vector<2x128xf32>
    %cst_38 = arith.constant 1.000000e+00 : f32
    %63 = vector.broadcast %cst_38 : f32 to vector<2x128xf32>
    %64 = arith.addf %63, %62 : vector<2x128xf32>
    %65 = arith.divf %63, %64 : vector<2x128xf32>
    %66 = math.tanh %60 : vector<2x128xf32>
    %67 = vector.extract_strided_slice %65 {offsets = [0, 0], sizes = [2, 32], strides = [1, 1]} : vector<2x128xf32> to vector<2x32xf32>
    %68 = vector.extract_strided_slice %65 {offsets = [0, 32], sizes = [2, 32], strides = [1, 1]} : vector<2x128xf32> to vector<2x32xf32>
    %69 = vector.extract_strided_slice %66 {offsets = [0, 64], sizes = [2, 32], strides = [1, 1]} : vector<2x128xf32> to vector<2x32xf32>
    %70 = vector.extract_strided_slice %65 {offsets = [0, 96], sizes = [2, 32], strides = [1, 1]} : vector<2x128xf32> to vector<2x32xf32>
    %71 = arith.mulf %68, %29 : vector<2x32xf32>
    %72 = arith.mulf %67, %69 : vector<2x32xf32>
    %73 = arith.addf %71, %72 : vector<2x32xf32>
    %74 = math.tanh %73 : vector<2x32xf32>
    %75 = arith.mulf %70, %74 : vector<2x32xf32>
    %c0_39 = arith.constant 0 : index
    %c0_40 = arith.constant 0 : index
    %76 = vector.load %arg9[%c0_39, %c0_40] : memref<16x32xf32, #tpu.memory_space<vmem>>, vector<2x32xf32>
    tpu.vector_store %arg9[%c0_39, %c0_40], %75 {strides = array<i32>} : memref<16x32xf32, #tpu.memory_space<vmem>>, vector<2x32xf32>,
    %77 = tpu.concatenate %75, %73 in 1 : vector<2x32xf32>, vector<2x32xf32> -> vector<2x64xf32>
    %cst_41 = arith.constant dense<0.000000e+00> : vector<2x8xf32>
    %78 = tpu.matmul %77, %1, %cst_41 {dimension_numbers = #tpu.dot_dimension_numbers<[1], [0], [0], [1], [0, 0, 1, 1], [], []>} : vector<2x64xf32>, vector<64x8xf32>, vector<2x8xf32> -> vector<2x8xf32>
    %79 = vector.broadcast %3 : vector<1x8xf32> to vector<2x8xf32>
    %80 = arith.addf %78, %79 : vector<2x8xf32>
    %81 = vector.shape_cast %80 : vector<2x8xf32> to vector<2x1x8xf32>
    %82 = vector.broadcast %81 : vector<2x1x8xf32> to vector<2x4x8xf32>
    %83 = arith.addf %27, %82 : vector<2x4x8xf32>
    %84 = math.tanh %83 : vector<2x4x8xf32>
    %85 = vector.shape_cast %4 : vector<1x8xf32> to vector<1x1x8xf32>
    %86 = vector.broadcast %85 : vector<1x1x8xf32> to vector<2x4x8xf32>
    %87 = arith.mulf %84, %86 : vector<2x4x8xf32>
    %cst_42 = arith.constant dense<0.000000e+00> : vector<2x4xf32>
    %88 = vector.multi_reduction <add>, %87, %cst_42 [2] : vector<2x4x8xf32> to vector<2x4xf32>
    %89 = vector.broadcast %13 : vector<1x1xf32> to vector<2x4xf32>
    %90 = arith.addf %88, %89 : vector<2x4xf32>
    %cst_43 = arith.constant dense<0xFF800000> : vector<2xf32>
    %91 = vector.multi_reduction <maximumf>, %90, %cst_43 [1] : vector<2x4xf32> to vector<2xf32>
    %92 = vector.shape_cast %91 : vector<2xf32> to vector<2x1xf32>
    %93 = vector.broadcast %92 : vector<2x1xf32> to vector<2x4xf32>
    %94 = arith.subf %90, %93 : vector<2x4xf32>
    %95 = math.exp %94 : vector<2x4xf32>
    %cst_44 = arith.constant dense<0.000000e+00> : vector<2xf32>
    %96 = vector.multi_reduction <add>, %95, %cst_44 [1] : vector<2x4xf32> to vector<2xf32>
    %97 = vector.shape_cast %96 : vector<2xf32> to vector<2x1xf32>
    %98 = tpu.reciprocal %97 {approx = true} : vector<2x1xf32> -> vector<2x1xf32>
    %99 = vector.broadcast %98 : vector<2x1xf32> to vector<2x4xf32>
    %100 = arith.mulf %95, %99 : vector<2x4xf32>
    %c0_45 = arith.constant 0 : index
    %c1 = arith.constant 1 : index
    %c0_46 = arith.constant 0 : index
    %101 = vector.load %arg0[%c0_45, %c1, %c0_46] : memref<2x8x4xf32, #tpu.memory_space<vmem>>, vector<2x1x4xf32>
    %102 = vector.shape_cast %101 : vector<2x1x4xf32> to vector<2x4xf32>
    %103 = arith.mulf %100, %102 : vector<2x4xf32>
    %104 = tpu.concatenate %103, %75 in 1 : vector<2x4xf32>, vector<2x32xf32> -> vector<2x36xf32>
    %cst_47 = arith.constant dense<0.000000e+00> : vector<2x128xf32>
    %105 = tpu.matmul %104, %5, %cst_47 {dimension_numbers = #tpu.dot_dimension_numbers<[1], [0], [0], [1], [0, 0, 1, 1], [], []>} : vector<2x36xf32>, vector<36x128xf32>, vector<2x128xf32> -> vector<2x128xf32>
    %106 = vector.broadcast %6 : vector<1x128xf32> to vector<2x128xf32>
    %107 = arith.addf %105, %106 : vector<2x128xf32>
    %108 = arith.negf %107 : vector<2x128xf32>
    %109 = math.exp %108 : vector<2x128xf32>
    %cst_48 = arith.constant 1.000000e+00 : f32
    %110 = vector.broadcast %cst_48 : f32 to vector<2x128xf32>
    %111 = arith.addf %110, %109 : vector<2x128xf32>
    %112 = arith.divf %110, %111 : vector<2x128xf32>
    %113 = math.tanh %107 : vector<2x128xf32>
    %114 = vector.extract_strided_slice %112 {offsets = [0, 0], sizes = [2, 32], strides = [1, 1]} : vector<2x128xf32> to vector<2x32xf32>
    %115 = vector.extract_strided_slice %112 {offsets = [0, 32], sizes = [2, 32], strides = [1, 1]} : vector<2x128xf32> to vector<2x32xf32>
    %116 = vector.extract_strided_slice %113 {offsets = [0, 64], sizes = [2, 32], strides = [1, 1]} : vector<2x128xf32> to vector<2x32xf32>
    %117 = vector.extract_strided_slice %112 {offsets = [0, 96], sizes = [2, 32], strides = [1, 1]} : vector<2x128xf32> to vector<2x32xf32>
    %118 = arith.mulf %115, %73 : vector<2x32xf32>
    %119 = arith.mulf %114, %116 : vector<2x32xf32>
    %120 = arith.addf %118, %119 : vector<2x32xf32>
    %121 = math.tanh %120 : vector<2x32xf32>
    %122 = arith.mulf %117, %121 : vector<2x32xf32>
    %c2 = arith.constant 2 : index
    %c0_49 = arith.constant 0 : index
    %123 = vector.load %arg9[%c2, %c0_49] : memref<16x32xf32, #tpu.memory_space<vmem>>, vector<2x32xf32>
    tpu.vector_store %arg9[%c2, %c0_49], %122 {strides = array<i32>} : memref<16x32xf32, #tpu.memory_space<vmem>>, vector<2x32xf32>,
    %124 = tpu.concatenate %122, %120 in 1 : vector<2x32xf32>, vector<2x32xf32> -> vector<2x64xf32>
    %cst_50 = arith.constant dense<0.000000e+00> : vector<2x8xf32>
    %125 = tpu.matmul %124, %1, %cst_50 {dimension_numbers = #tpu.dot_dimension_numbers<[1], [0], [0], [1], [0, 0, 1, 1], [], []>} : vector<2x64xf32>, vector<64x8xf32>, vector<2x8xf32> -> vector<2x8xf32>
    %126 = vector.broadcast %3 : vector<1x8xf32> to vector<2x8xf32>
    %127 = arith.addf %125, %126 : vector<2x8xf32>
    %128 = vector.shape_cast %127 : vector<2x8xf32> to vector<2x1x8xf32>
    %129 = vector.broadcast %128 : vector<2x1x8xf32> to vector<2x4x8xf32>
    %130 = arith.addf %27, %129 : vector<2x4x8xf32>
    %131 = math.tanh %130 : vector<2x4x8xf32>
    %132 = vector.shape_cast %4 : vector<1x8xf32> to vector<1x1x8xf32>
    %133 = vector.broadcast %132 : vector<1x1x8xf32> to vector<2x4x8xf32>
    %134 = arith.mulf %131, %133 : vector<2x4x8xf32>
    %cst_51 = arith.constant dense<0.000000e+00> : vector<2x4xf32>
    %135 = vector.multi_reduction <add>, %134, %cst_51 [2] : vector<2x4x8xf32> to vector<2x4xf32>
    %136 = vector.broadcast %13 : vector<1x1xf32> to vector<2x4xf32>
    %137 = arith.addf %135, %136 : vector<2x4xf32>
    %cst_52 = arith.constant dense<0xFF800000> : vector<2xf32>
    %138 = vector.multi_reduction <maximumf>, %137, %cst_52 [1] : vector<2x4xf32> to vector<2xf32>
    %139 = vector.shape_cast %138 : vector<2xf32> to vector<2x1xf32>
    %140 = vector.broadcast %139 : vector<2x1xf32> to vector<2x4xf32>
    %141 = arith.subf %137, %140 : vector<2x4xf32>
    %142 = math.exp %141 : vector<2x4xf32>
    %cst_53 = arith.constant dense<0.000000e+00> : vector<2xf32>
    %143 = vector.multi_reduction <add>, %142, %cst_53 [1] : vector<2x4xf32> to vector<2xf32>
    %144 = vector.shape_cast %143 : vector<2xf32> to vector<2x1xf32>
    %145 = tpu.reciprocal %144 {approx = true} : vector<2x1xf32> -> vector<2x1xf32>
    %146 = vector.broadcast %145 : vector<2x1xf32> to vector<2x4xf32>
    %147 = arith.mulf %142, %146 : vector<2x4xf32>
    %c0_54 = arith.constant 0 : index
    %c2_55 = arith.constant 2 : index
    %c0_56 = arith.constant 0 : index
    %148 = vector.load %arg0[%c0_54, %c2_55, %c0_56] : memref<2x8x4xf32, #tpu.memory_space<vmem>>, vector<2x1x4xf32>
    %149 = vector.shape_cast %148 : vector<2x1x4xf32> to vector<2x4xf32>
    %150 = arith.mulf %147, %149 : vector<2x4xf32>
    %151 = tpu.concatenate %150, %122 in 1 : vector<2x4xf32>, vector<2x32xf32> -> vector<2x36xf32>
    %cst_57 = arith.constant dense<0.000000e+00> : vector<2x128xf32>
    %152 = tpu.matmul %151, %5, %cst_57 {dimension_numbers = #tpu.dot_dimension_numbers<[1], [0], [0], [1], [0, 0, 1, 1], [], []>} : vector<2x36xf32>, vector<36x128xf32>, vector<2x128xf32> -> vector<2x128xf32>
    %153 = vector.broadcast %6 : vector<1x128xf32> to vector<2x128xf32>
    %154 = arith.addf %152, %153 : vector<2x128xf32>
    %155 = arith.negf %154 : vector<2x128xf32>
    %156 = math.exp %155 : vector<2x128xf32>
    %cst_58 = arith.constant 1.000000e+00 : f32
    %157 = vector.broadcast %cst_58 : f32 to vector<2x128xf32>
    %158 = arith.addf %157, %156 : vector<2x128xf32>
    %159 = arith.divf %157, %158 : vector<2x128xf32>
    %160 = math.tanh %154 : vector<2x128xf32>
    %161 = vector.extract_strided_slice %159 {offsets = [0, 0], sizes = [2, 32], strides = [1, 1]} : vector<2x128xf32> to vector<2x32xf32>
    %162 = vector.extract_strided_slice %159 {offsets = [0, 32], sizes = [2, 32], strides = [1, 1]} : vector<2x128xf32> to vector<2x32xf32>
    %163 = vector.extract_strided_slice %160 {offsets = [0, 64], sizes = [2, 32], strides = [1, 1]} : vector<2x128xf32> to vector<2x32xf32>
    %164 = vector.extract_strided_slice %159 {offsets = [0, 96], sizes = [2, 32], strides = [1, 1]} : vector<2x128xf32> to vector<2x32xf32>
    %165 = arith.mulf %162, %120 : vector<2x32xf32>
    %166 = arith.mulf %161, %163 : vector<2x32xf32>
    %167 = arith.addf %165, %166 : vector<2x32xf32>
    %168 = math.tanh %167 : vector<2x32xf32>
    %169 = arith.mulf %164, %168 : vector<2x32xf32>
    %c4 = arith.constant 4 : index
    %c0_59 = arith.constant 0 : index
    %170 = vector.load %arg9[%c4, %c0_59] : memref<16x32xf32, #tpu.memory_space<vmem>>, vector<2x32xf32>
    tpu.vector_store %arg9[%c4, %c0_59], %169 {strides = array<i32>} : memref<16x32xf32, #tpu.memory_space<vmem>>, vector<2x32xf32>,
    %171 = tpu.concatenate %169, %167 in 1 : vector<2x32xf32>, vector<2x32xf32> -> vector<2x64xf32>
    %cst_60 = arith.constant dense<0.000000e+00> : vector<2x8xf32>
    %172 = tpu.matmul %171, %1, %cst_60 {dimension_numbers = #tpu.dot_dimension_numbers<[1], [0], [0], [1], [0, 0, 1, 1], [], []>} : vector<2x64xf32>, vector<64x8xf32>, vector<2x8xf32> -> vector<2x8xf32>
    %173 = vector.broadcast %3 : vector<1x8xf32> to vector<2x8xf32>
    %174 = arith.addf %172, %173 : vector<2x8xf32>
    %175 = vector.shape_cast %174 : vector<2x8xf32> to vector<2x1x8xf32>
    %176 = vector.broadcast %175 : vector<2x1x8xf32> to vector<2x4x8xf32>
    %177 = arith.addf %27, %176 : vector<2x4x8xf32>
    %178 = math.tanh %177 : vector<2x4x8xf32>
    %179 = vector.shape_cast %4 : vector<1x8xf32> to vector<1x1x8xf32>
    %180 = vector.broadcast %179 : vector<1x1x8xf32> to vector<2x4x8xf32>
    %181 = arith.mulf %178, %180 : vector<2x4x8xf32>
    %cst_61 = arith.constant dense<0.000000e+00> : vector<2x4xf32>
    %182 = vector.multi_reduction <add>, %181, %cst_61 [2] : vector<2x4x8xf32> to vector<2x4xf32>
    %183 = vector.broadcast %13 : vector<1x1xf32> to vector<2x4xf32>
    %184 = arith.addf %182, %183 : vector<2x4xf32>
    %cst_62 = arith.constant dense<0xFF800000> : vector<2xf32>
    %185 = vector.multi_reduction <maximumf>, %184, %cst_62 [1] : vector<2x4xf32> to vector<2xf32>
    %186 = vector.shape_cast %185 : vector<2xf32> to vector<2x1xf32>
    %187 = vector.broadcast %186 : vector<2x1xf32> to vector<2x4xf32>
    %188 = arith.subf %184, %187 : vector<2x4xf32>
    %189 = math.exp %188 : vector<2x4xf32>
    %cst_63 = arith.constant dense<0.000000e+00> : vector<2xf32>
    %190 = vector.multi_reduction <add>, %189, %cst_63 [1] : vector<2x4xf32> to vector<2xf32>
    %191 = vector.shape_cast %190 : vector<2xf32> to vector<2x1xf32>
    %192 = tpu.reciprocal %191 {approx = true} : vector<2x1xf32> -> vector<2x1xf32>
    %193 = vector.broadcast %192 : vector<2x1xf32> to vector<2x4xf32>
    %194 = arith.mulf %189, %193 : vector<2x4xf32>
    %c0_64 = arith.constant 0 : index
    %c3 = arith.constant 3 : index
    %c0_65 = arith.constant 0 : index
    %195 = vector.load %arg0[%c0_64, %c3, %c0_65] : memref<2x8x4xf32, #tpu.memory_space<vmem>>, vector<2x1x4xf32>
    %196 = vector.shape_cast %195 : vector<2x1x4xf32> to vector<2x4xf32>
    %197 = arith.mulf %194, %196 : vector<2x4xf32>
    %198 = tpu.concatenate %197, %169 in 1 : vector<2x4xf32>, vector<2x32xf32> -> vector<2x36xf32>
    %cst_66 = arith.constant dense<0.000000e+00> : vector<2x128xf32>
    %199 = tpu.matmul %198, %5, %cst_66 {dimension_numbers = #tpu.dot_dimension_numbers<[1], [0], [0], [1], [0, 0, 1, 1], [], []>} : vector<2x36xf32>, vector<36x128xf32>, vector<2x128xf32> -> vector<2x128xf32>
    %200 = vector.broadcast %6 : vector<1x128xf32> to vector<2x128xf32>
    %201 = arith.addf %199, %200 : vector<2x128xf32>
    %202 = arith.negf %201 : vector<2x128xf32>
    %203 = math.exp %202 : vector<2x128xf32>
    %cst_67 = arith.constant 1.000000e+00 : f32
    %204 = vector.broadcast %cst_67 : f32 to vector<2x128xf32>
    %205 = arith.addf %204, %203 : vector<2x128xf32>
    %206 = arith.divf %204, %205 : vector<2x128xf32>
    %207 = math.tanh %201 : vector<2x128xf32>
    %208 = vector.extract_strided_slice %206 {offsets = [0, 0], sizes = [2, 32], strides = [1, 1]} : vector<2x128xf32> to vector<2x32xf32>
    %209 = vector.extract_strided_slice %206 {offsets = [0, 32], sizes = [2, 32], strides = [1, 1]} : vector<2x128xf32> to vector<2x32xf32>
    %210 = vector.extract_strided_slice %207 {offsets = [0, 64], sizes = [2, 32], strides = [1, 1]} : vector<2x128xf32> to vector<2x32xf32>
    %211 = vector.extract_strided_slice %206 {offsets = [0, 96], sizes = [2, 32], strides = [1, 1]} : vector<2x128xf32> to vector<2x32xf32>
    %212 = arith.mulf %209, %167 : vector<2x32xf32>
    %213 = arith.mulf %208, %210 : vector<2x32xf32>
    %214 = arith.addf %212, %213 : vector<2x32xf32>
    %215 = math.tanh %214 : vector<2x32xf32>
    %216 = arith.mulf %211, %215 : vector<2x32xf32>
    %c6 = arith.constant 6 : index
    %c0_68 = arith.constant 0 : index
    %217 = vector.load %arg9[%c6, %c0_68] : memref<16x32xf32, #tpu.memory_space<vmem>>, vector<2x32xf32>
    tpu.vector_store %arg9[%c6, %c0_68], %216 {strides = array<i32>} : memref<16x32xf32, #tpu.memory_space<vmem>>, vector<2x32xf32>,
    %218 = tpu.concatenate %216, %214 in 1 : vector<2x32xf32>, vector<2x32xf32> -> vector<2x64xf32>
    %cst_69 = arith.constant dense<0.000000e+00> : vector<2x8xf32>
    %219 = tpu.matmul %218, %1, %cst_69 {dimension_numbers = #tpu.dot_dimension_numbers<[1], [0], [0], [1], [0, 0, 1, 1], [], []>} : vector<2x64xf32>, vector<64x8xf32>, vector<2x8xf32> -> vector<2x8xf32>
    %220 = vector.broadcast %3 : vector<1x8xf32> to vector<2x8xf32>
    %221 = arith.addf %219, %220 : vector<2x8xf32>
    %222 = vector.shape_cast %221 : vector<2x8xf32> to vector<2x1x8xf32>
    %223 = vector.broadcast %222 : vector<2x1x8xf32> to vector<2x4x8xf32>
    %224 = arith.addf %27, %223 : vector<2x4x8xf32>
    %225 = math.tanh %224 : vector<2x4x8xf32>
    %226 = vector.shape_cast %4 : vector<1x8xf32> to vector<1x1x8xf32>
    %227 = vector.broadcast %226 : vector<1x1x8xf32> to vector<2x4x8xf32>
    %228 = arith.mulf %225, %227 : vector<2x4x8xf32>
    %cst_70 = arith.constant dense<0.000000e+00> : vector<2x4xf32>
    %229 = vector.multi_reduction <add>, %228, %cst_70 [2] : vector<2x4x8xf32> to vector<2x4xf32>
    %230 = vector.broadcast %13 : vector<1x1xf32> to vector<2x4xf32>
    %231 = arith.addf %229, %230 : vector<2x4xf32>
    %cst_71 = arith.constant dense<0xFF800000> : vector<2xf32>
    %232 = vector.multi_reduction <maximumf>, %231, %cst_71 [1] : vector<2x4xf32> to vector<2xf32>
    %233 = vector.shape_cast %232 : vector<2xf32> to vector<2x1xf32>
    %234 = vector.broadcast %233 : vector<2x1xf32> to vector<2x4xf32>
    %235 = arith.subf %231, %234 : vector<2x4xf32>
    %236 = math.exp %235 : vector<2x4xf32>
    %cst_72 = arith.constant dense<0.000000e+00> : vector<2xf32>
    %237 = vector.multi_reduction <add>, %236, %cst_72 [1] : vector<2x4xf32> to vector<2xf32>
    %238 = vector.shape_cast %237 : vector<2xf32> to vector<2x1xf32>
    %239 = tpu.reciprocal %238 {approx = true} : vector<2x1xf32> -> vector<2x1xf32>
    %240 = vector.broadcast %239 : vector<2x1xf32> to vector<2x4xf32>
    %241 = arith.mulf %236, %240 : vector<2x4xf32>
    %c0_73 = arith.constant 0 : index
    %c4_74 = arith.constant 4 : index
    %c0_75 = arith.constant 0 : index
    %242 = vector.load %arg0[%c0_73, %c4_74, %c0_75] : memref<2x8x4xf32, #tpu.memory_space<vmem>>, vector<2x1x4xf32>
    %243 = vector.shape_cast %242 : vector<2x1x4xf32> to vector<2x4xf32>
    %244 = arith.mulf %241, %243 : vector<2x4xf32>
    %245 = tpu.concatenate %244, %216 in 1 : vector<2x4xf32>, vector<2x32xf32> -> vector<2x36xf32>
    %cst_76 = arith.constant dense<0.000000e+00> : vector<2x128xf32>
    %246 = tpu.matmul %245, %5, %cst_76 {dimension_numbers = #tpu.dot_dimension_numbers<[1], [0], [0], [1], [0, 0, 1, 1], [], []>} : vector<2x36xf32>, vector<36x128xf32>, vector<2x128xf32> -> vector<2x128xf32>
    %247 = vector.broadcast %6 : vector<1x128xf32> to vector<2x128xf32>
    %248 = arith.addf %246, %247 : vector<2x128xf32>
    %249 = arith.negf %248 : vector<2x128xf32>
    %250 = math.exp %249 : vector<2x128xf32>
    %cst_77 = arith.constant 1.000000e+00 : f32
    %251 = vector.broadcast %cst_77 : f32 to vector<2x128xf32>
    %252 = arith.addf %251, %250 : vector<2x128xf32>
    %253 = arith.divf %251, %252 : vector<2x128xf32>
    %254 = math.tanh %248 : vector<2x128xf32>
    %255 = vector.extract_strided_slice %253 {offsets = [0, 0], sizes = [2, 32], strides = [1, 1]} : vector<2x128xf32> to vector<2x32xf32>
    %256 = vector.extract_strided_slice %253 {offsets = [0, 32], sizes = [2, 32], strides = [1, 1]} : vector<2x128xf32> to vector<2x32xf32>
    %257 = vector.extract_strided_slice %254 {offsets = [0, 64], sizes = [2, 32], strides = [1, 1]} : vector<2x128xf32> to vector<2x32xf32>
    %258 = vector.extract_strided_slice %253 {offsets = [0, 96], sizes = [2, 32], strides = [1, 1]} : vector<2x128xf32> to vector<2x32xf32>
    %259 = arith.mulf %256, %214 : vector<2x32xf32>
    %260 = arith.mulf %255, %257 : vector<2x32xf32>
    %261 = arith.addf %259, %260 : vector<2x32xf32>
    %262 = math.tanh %261 : vector<2x32xf32>
    %263 = arith.mulf %258, %262 : vector<2x32xf32>
    %c8_78 = arith.constant 8 : index
    %c0_79 = arith.constant 0 : index
    %264 = vector.load %arg9[%c8_78, %c0_79] : memref<16x32xf32, #tpu.memory_space<vmem>>, vector<2x32xf32>
    tpu.vector_store %arg9[%c8_78, %c0_79], %263 {strides = array<i32>} : memref<16x32xf32, #tpu.memory_space<vmem>>, vector<2x32xf32>,
    %265 = tpu.concatenate %263, %261 in 1 : vector<2x32xf32>, vector<2x32xf32> -> vector<2x64xf32>
    %cst_80 = arith.constant dense<0.000000e+00> : vector<2x8xf32>
    %266 = tpu.matmul %265, %1, %cst_80 {dimension_numbers = #tpu.dot_dimension_numbers<[1], [0], [0], [1], [0, 0, 1, 1], [], []>} : vector<2x64xf32>, vector<64x8xf32>, vector<2x8xf32> -> vector<2x8xf32>
    %267 = vector.broadcast %3 : vector<1x8xf32> to vector<2x8xf32>
    %268 = arith.addf %266, %267 : vector<2x8xf32>
    %269 = vector.shape_cast %268 : vector<2x8xf32> to vector<2x1x8xf32>
    %270 = vector.broadcast %269 : vector<2x1x8xf32> to vector<2x4x8xf32>
    %271 = arith.addf %27, %270 : vector<2x4x8xf32>
    %272 = math.tanh %271 : vector<2x4x8xf32>
    %273 = vector.shape_cast %4 : vector<1x8xf32> to vector<1x1x8xf32>
    %274 = vector.broadcast %273 : vector<1x1x8xf32> to vector<2x4x8xf32>
    %275 = arith.mulf %272, %274 : vector<2x4x8xf32>
    %cst_81 = arith.constant dense<0.000000e+00> : vector<2x4xf32>
    %276 = vector.multi_reduction <add>, %275, %cst_81 [2] : vector<2x4x8xf32> to vector<2x4xf32>
    %277 = vector.broadcast %13 : vector<1x1xf32> to vector<2x4xf32>
    %278 = arith.addf %276, %277 : vector<2x4xf32>
    %cst_82 = arith.constant dense<0xFF800000> : vector<2xf32>
    %279 = vector.multi_reduction <maximumf>, %278, %cst_82 [1] : vector<2x4xf32> to vector<2xf32>
    %280 = vector.shape_cast %279 : vector<2xf32> to vector<2x1xf32>
    %281 = vector.broadcast %280 : vector<2x1xf32> to vector<2x4xf32>
    %282 = arith.subf %278, %281 : vector<2x4xf32>
    %283 = math.exp %282 : vector<2x4xf32>
    %cst_83 = arith.constant dense<0.000000e+00> : vector<2xf32>
    %284 = vector.multi_reduction <add>, %283, %cst_83 [1] : vector<2x4xf32> to vector<2xf32>
    %285 = vector.shape_cast %284 : vector<2xf32> to vector<2x1xf32>
    %286 = tpu.reciprocal %285 {approx = true} : vector<2x1xf32> -> vector<2x1xf32>
    %287 = vector.broadcast %286 : vector<2x1xf32> to vector<2x4xf32>
    %288 = arith.mulf %283, %287 : vector<2x4xf32>
    %c0_84 = arith.constant 0 : index
    %c5 = arith.constant 5 : index
    %c0_85 = arith.constant 0 : index
    %289 = vector.load %arg0[%c0_84, %c5, %c0_85] : memref<2x8x4xf32, #tpu.memory_space<vmem>>, vector<2x1x4xf32>
    %290 = vector.shape_cast %289 : vector<2x1x4xf32> to vector<2x4xf32>
    %291 = arith.mulf %288, %290 : vector<2x4xf32>
    %292 = tpu.concatenate %291, %263 in 1 : vector<2x4xf32>, vector<2x32xf32> -> vector<2x36xf32>
    %cst_86 = arith.constant dense<0.000000e+00> : vector<2x128xf32>
    %293 = tpu.matmul %292, %5, %cst_86 {dimension_numbers = #tpu.dot_dimension_numbers<[1], [0], [0], [1], [0, 0, 1, 1], [], []>} : vector<2x36xf32>, vector<36x128xf32>, vector<2x128xf32> -> vector<2x128xf32>
    %294 = vector.broadcast %6 : vector<1x128xf32> to vector<2x128xf32>
    %295 = arith.addf %293, %294 : vector<2x128xf32>
    %296 = arith.negf %295 : vector<2x128xf32>
    %297 = math.exp %296 : vector<2x128xf32>
    %cst_87 = arith.constant 1.000000e+00 : f32
    %298 = vector.broadcast %cst_87 : f32 to vector<2x128xf32>
    %299 = arith.addf %298, %297 : vector<2x128xf32>
    %300 = arith.divf %298, %299 : vector<2x128xf32>
    %301 = math.tanh %295 : vector<2x128xf32>
    %302 = vector.extract_strided_slice %300 {offsets = [0, 0], sizes = [2, 32], strides = [1, 1]} : vector<2x128xf32> to vector<2x32xf32>
    %303 = vector.extract_strided_slice %300 {offsets = [0, 32], sizes = [2, 32], strides = [1, 1]} : vector<2x128xf32> to vector<2x32xf32>
    %304 = vector.extract_strided_slice %301 {offsets = [0, 64], sizes = [2, 32], strides = [1, 1]} : vector<2x128xf32> to vector<2x32xf32>
    %305 = vector.extract_strided_slice %300 {offsets = [0, 96], sizes = [2, 32], strides = [1, 1]} : vector<2x128xf32> to vector<2x32xf32>
    %306 = arith.mulf %303, %261 : vector<2x32xf32>
    %307 = arith.mulf %302, %304 : vector<2x32xf32>
    %308 = arith.addf %306, %307 : vector<2x32xf32>
    %309 = math.tanh %308 : vector<2x32xf32>
    %310 = arith.mulf %305, %309 : vector<2x32xf32>
    %c10 = arith.constant 10 : index
    %c0_88 = arith.constant 0 : index
    %311 = vector.load %arg9[%c10, %c0_88] : memref<16x32xf32, #tpu.memory_space<vmem>>, vector<2x32xf32>
    tpu.vector_store %arg9[%c10, %c0_88], %310 {strides = array<i32>} : memref<16x32xf32, #tpu.memory_space<vmem>>, vector<2x32xf32>,
    %312 = tpu.concatenate %310, %308 in 1 : vector<2x32xf32>, vector<2x32xf32> -> vector<2x64xf32>
    %cst_89 = arith.constant dense<0.000000e+00> : vector<2x8xf32>
    %313 = tpu.matmul %312, %1, %cst_89 {dimension_numbers = #tpu.dot_dimension_numbers<[1], [0], [0], [1], [0, 0, 1, 1], [], []>} : vector<2x64xf32>, vector<64x8xf32>, vector<2x8xf32> -> vector<2x8xf32>
    %314 = vector.broadcast %3 : vector<1x8xf32> to vector<2x8xf32>
    %315 = arith.addf %313, %314 : vector<2x8xf32>
    %316 = vector.shape_cast %315 : vector<2x8xf32> to vector<2x1x8xf32>
    %317 = vector.broadcast %316 : vector<2x1x8xf32> to vector<2x4x8xf32>
    %318 = arith.addf %27, %317 : vector<2x4x8xf32>
    %319 = math.tanh %318 : vector<2x4x8xf32>
    %320 = vector.shape_cast %4 : vector<1x8xf32> to vector<1x1x8xf32>
    %321 = vector.broadcast %320 : vector<1x1x8xf32> to vector<2x4x8xf32>
    %322 = arith.mulf %319, %321 : vector<2x4x8xf32>
    %cst_90 = arith.constant dense<0.000000e+00> : vector<2x4xf32>
    %323 = vector.multi_reduction <add>, %322, %cst_90 [2] : vector<2x4x8xf32> to vector<2x4xf32>
    %324 = vector.broadcast %13 : vector<1x1xf32> to vector<2x4xf32>
    %325 = arith.addf %323, %324 : vector<2x4xf32>
    %cst_91 = arith.constant dense<0xFF800000> : vector<2xf32>
    %326 = vector.multi_reduction <maximumf>, %325, %cst_91 [1] : vector<2x4xf32> to vector<2xf32>
    %327 = vector.shape_cast %326 : vector<2xf32> to vector<2x1xf32>
    %328 = vector.broadcast %327 : vector<2x1xf32> to vector<2x4xf32>
    %329 = arith.subf %325, %328 : vector<2x4xf32>
    %330 = math.exp %329 : vector<2x4xf32>
    %cst_92 = arith.constant dense<0.000000e+00> : vector<2xf32>
    %331 = vector.multi_reduction <add>, %330, %cst_92 [1] : vector<2x4xf32> to vector<2xf32>
    %332 = vector.shape_cast %331 : vector<2xf32> to vector<2x1xf32>
    %333 = tpu.reciprocal %332 {approx = true} : vector<2x1xf32> -> vector<2x1xf32>
    %334 = vector.broadcast %333 : vector<2x1xf32> to vector<2x4xf32>
    %335 = arith.mulf %330, %334 : vector<2x4xf32>
    %c0_93 = arith.constant 0 : index
    %c6_94 = arith.constant 6 : index
    %c0_95 = arith.constant 0 : index
    %336 = vector.load %arg0[%c0_93, %c6_94, %c0_95] : memref<2x8x4xf32, #tpu.memory_space<vmem>>, vector<2x1x4xf32>
    %337 = vector.shape_cast %336 : vector<2x1x4xf32> to vector<2x4xf32>
    %338 = arith.mulf %335, %337 : vector<2x4xf32>
    %339 = tpu.concatenate %338, %310 in 1 : vector<2x4xf32>, vector<2x32xf32> -> vector<2x36xf32>
    %cst_96 = arith.constant dense<0.000000e+00> : vector<2x128xf32>
    %340 = tpu.matmul %339, %5, %cst_96 {dimension_numbers = #tpu.dot_dimension_numbers<[1], [0], [0], [1], [0, 0, 1, 1], [], []>} : vector<2x36xf32>, vector<36x128xf32>, vector<2x128xf32> -> vector<2x128xf32>
    %341 = vector.broadcast %6 : vector<1x128xf32> to vector<2x128xf32>
    %342 = arith.addf %340, %341 : vector<2x128xf32>
    %343 = arith.negf %342 : vector<2x128xf32>
    %344 = math.exp %343 : vector<2x128xf32>
    %cst_97 = arith.constant 1.000000e+00 : f32
    %345 = vector.broadcast %cst_97 : f32 to vector<2x128xf32>
    %346 = arith.addf %345, %344 : vector<2x128xf32>
    %347 = arith.divf %345, %346 : vector<2x128xf32>
    %348 = math.tanh %342 : vector<2x128xf32>
    %349 = vector.extract_strided_slice %347 {offsets = [0, 0], sizes = [2, 32], strides = [1, 1]} : vector<2x128xf32> to vector<2x32xf32>
    %350 = vector.extract_strided_slice %347 {offsets = [0, 32], sizes = [2, 32], strides = [1, 1]} : vector<2x128xf32> to vector<2x32xf32>
    %351 = vector.extract_strided_slice %348 {offsets = [0, 64], sizes = [2, 32], strides = [1, 1]} : vector<2x128xf32> to vector<2x32xf32>
    %352 = vector.extract_strided_slice %347 {offsets = [0, 96], sizes = [2, 32], strides = [1, 1]} : vector<2x128xf32> to vector<2x32xf32>
    %353 = arith.mulf %350, %308 : vector<2x32xf32>
    %354 = arith.mulf %349, %351 : vector<2x32xf32>
    %355 = arith.addf %353, %354 : vector<2x32xf32>
    %356 = math.tanh %355 : vector<2x32xf32>
    %357 = arith.mulf %352, %356 : vector<2x32xf32>
    %c12 = arith.constant 12 : index
    %c0_98 = arith.constant 0 : index
    %358 = vector.load %arg9[%c12, %c0_98] : memref<16x32xf32, #tpu.memory_space<vmem>>, vector<2x32xf32>
    tpu.vector_store %arg9[%c12, %c0_98], %357 {strides = array<i32>} : memref<16x32xf32, #tpu.memory_space<vmem>>, vector<2x32xf32>,
    %359 = tpu.concatenate %357, %355 in 1 : vector<2x32xf32>, vector<2x32xf32> -> vector<2x64xf32>
    %cst_99 = arith.constant dense<0.000000e+00> : vector<2x8xf32>
    %360 = tpu.matmul %359, %1, %cst_99 {dimension_numbers = #tpu.dot_dimension_numbers<[1], [0], [0], [1], [0, 0, 1, 1], [], []>} : vector<2x64xf32>, vector<64x8xf32>, vector<2x8xf32> -> vector<2x8xf32>
    %361 = vector.broadcast %3 : vector<1x8xf32> to vector<2x8xf32>
    %362 = arith.addf %360, %361 : vector<2x8xf32>
    %363 = vector.shape_cast %362 : vector<2x8xf32> to vector<2x1x8xf32>
    %364 = vector.broadcast %363 : vector<2x1x8xf32> to vector<2x4x8xf32>
    %365 = arith.addf %27, %364 : vector<2x4x8xf32>
    %366 = math.tanh %365 : vector<2x4x8xf32>
    %367 = vector.shape_cast %4 : vector<1x8xf32> to vector<1x1x8xf32>
    %368 = vector.broadcast %367 : vector<1x1x8xf32> to vector<2x4x8xf32>
    %369 = arith.mulf %366, %368 : vector<2x4x8xf32>
    %cst_100 = arith.constant dense<0.000000e+00> : vector<2x4xf32>
    %370 = vector.multi_reduction <add>, %369, %cst_100 [2] : vector<2x4x8xf32> to vector<2x4xf32>
    %371 = vector.broadcast %13 : vector<1x1xf32> to vector<2x4xf32>
    %372 = arith.addf %370, %371 : vector<2x4xf32>
    %cst_101 = arith.constant dense<0xFF800000> : vector<2xf32>
    %373 = vector.multi_reduction <maximumf>, %372, %cst_101 [1] : vector<2x4xf32> to vector<2xf32>
    %374 = vector.shape_cast %373 : vector<2xf32> to vector<2x1xf32>
    %375 = vector.broadcast %374 : vector<2x1xf32> to vector<2x4xf32>
    %376 = arith.subf %372, %375 : vector<2x4xf32>
    %377 = math.exp %376 : vector<2x4xf32>
    %cst_102 = arith.constant dense<0.000000e+00> : vector<2xf32>
    %378 = vector.multi_reduction <add>, %377, %cst_102 [1] : vector<2x4xf32> to vector<2xf32>
    %379 = vector.shape_cast %378 : vector<2xf32> to vector<2x1xf32>
    %380 = tpu.reciprocal %379 {approx = true} : vector<2x1xf32> -> vector<2x1xf32>
    %381 = vector.broadcast %380 : vector<2x1xf32> to vector<2x4xf32>
    %382 = arith.mulf %377, %381 : vector<2x4xf32>
    %c0_103 = arith.constant 0 : index
    %c7 = arith.constant 7 : index
    %c0_104 = arith.constant 0 : index
    %383 = vector.load %arg0[%c0_103, %c7, %c0_104] : memref<2x8x4xf32, #tpu.memory_space<vmem>>, vector<2x1x4xf32>
    %384 = vector.shape_cast %383 : vector<2x1x4xf32> to vector<2x4xf32>
    %385 = arith.mulf %382, %384 : vector<2x4xf32>
    %386 = tpu.concatenate %385, %357 in 1 : vector<2x4xf32>, vector<2x32xf32> -> vector<2x36xf32>
    %cst_105 = arith.constant dense<0.000000e+00> : vector<2x128xf32>
    %387 = tpu.matmul %386, %5, %cst_105 {dimension_numbers = #tpu.dot_dimension_numbers<[1], [0], [0], [1], [0, 0, 1, 1], [], []>} : vector<2x36xf32>, vector<36x128xf32>, vector<2x128xf32> -> vector<2x128xf32>
    %388 = vector.broadcast %6 : vector<1x128xf32> to vector<2x128xf32>
    %389 = arith.addf %387, %388 : vector<2x128xf32>
    %390 = arith.negf %389 : vector<2x128xf32>
    %391 = math.exp %390 : vector<2x128xf32>
    %cst_106 = arith.constant 1.000000e+00 : f32
    %392 = vector.broadcast %cst_106 : f32 to vector<2x128xf32>
    %393 = arith.addf %392, %391 : vector<2x128xf32>
    %394 = arith.divf %392, %393 : vector<2x128xf32>
    %395 = math.tanh %389 : vector<2x128xf32>
    %396 = vector.extract_strided_slice %394 {offsets = [0, 0], sizes = [2, 32], strides = [1, 1]} : vector<2x128xf32> to vector<2x32xf32>
    %397 = vector.extract_strided_slice %394 {offsets = [0, 32], sizes = [2, 32], strides = [1, 1]} : vector<2x128xf32> to vector<2x32xf32>
    %398 = vector.extract_strided_slice %395 {offsets = [0, 64], sizes = [2, 32], strides = [1, 1]} : vector<2x128xf32> to vector<2x32xf32>
    %399 = vector.extract_strided_slice %394 {offsets = [0, 96], sizes = [2, 32], strides = [1, 1]} : vector<2x128xf32> to vector<2x32xf32>
    %400 = arith.mulf %397, %355 : vector<2x32xf32>
    %401 = arith.mulf %396, %398 : vector<2x32xf32>
    %402 = arith.addf %400, %401 : vector<2x32xf32>
    %403 = math.tanh %402 : vector<2x32xf32>
    %404 = arith.mulf %399, %403 : vector<2x32xf32>
    %c14 = arith.constant 14 : index
    %c0_107 = arith.constant 0 : index
    %405 = vector.load %arg9[%c14, %c0_107] : memref<16x32xf32, #tpu.memory_space<vmem>>, vector<2x32xf32>
    tpu.vector_store %arg9[%c14, %c0_107], %404 {strides = array<i32>} : memref<16x32xf32, #tpu.memory_space<vmem>>, vector<2x32xf32>,
    %c0_108 = arith.constant 0 : index
    %c0_109 = arith.constant 0 : index
    %406 = vector.load %arg9[%c0_108, %c0_109] : memref<16x32xf32, #tpu.memory_space<vmem>>, vector<16x32xf32>
    %cst_110 = arith.constant dense<0.000000e+00> : vector<16x32xf32>
    %407 = tpu.matmul %406, %7, %cst_110 {dimension_numbers = #tpu.dot_dimension_numbers<[1], [0], [0], [1], [0, 0, 1, 1], [], []>} : vector<16x32xf32>, vector<32x32xf32>, vector<16x32xf32> -> vector<16x32xf32>
    %408 = vector.broadcast %9 : vector<1x32xf32> to vector<16x32xf32>
    %409 = arith.addf %407, %408 : vector<16x32xf32>
    %410 = vector.broadcast %8 : vector<1x32xf32> to vector<16x32xf32>
    %411 = arith.addf %409, %410 : vector<16x32xf32>
    %412 = math.tanh %411 : vector<16x32xf32>
    %413 = vector.broadcast %10 : vector<1x32xf32> to vector<16x32xf32>
    %414 = arith.mulf %412, %413 : vector<16x32xf32>
    %415 = vector.extract_strided_slice %414 {offsets = [0, 0], sizes = [2, 32], strides = [1, 1]} : vector<16x32xf32> to vector<2x32xf32>
    %cst_111 = arith.constant dense<0.000000e+00> : vector<2xf32>
    %416 = vector.multi_reduction <add>, %415, %cst_111 [1] : vector<2x32xf32> to vector<2xf32>
    %417 = vector.shape_cast %416 : vector<2xf32> to vector<2x1xf32>
    %418 = vector.extract_strided_slice %414 {offsets = [2, 0], sizes = [2, 32], strides = [1, 1]} : vector<16x32xf32> to vector<2x32xf32>
    %cst_112 = arith.constant dense<0.000000e+00> : vector<2xf32>
    %419 = vector.multi_reduction <add>, %418, %cst_112 [1] : vector<2x32xf32> to vector<2xf32>
    %420 = vector.shape_cast %419 : vector<2xf32> to vector<2x1xf32>
    %421 = vector.extract_strided_slice %414 {offsets = [4, 0], sizes = [2, 32], strides = [1, 1]} : vector<16x32xf32> to vector<2x32xf32>
    %cst_113 = arith.constant dense<0.000000e+00> : vector<2xf32>
    %422 = vector.multi_reduction <add>, %421, %cst_113 [1] : vector<2x32xf32> to vector<2xf32>
    %423 = vector.shape_cast %422 : vector<2xf32> to vector<2x1xf32>
    %424 = vector.extract_strided_slice %414 {offsets = [6, 0], sizes = [2, 32], strides = [1, 1]} : vector<16x32xf32> to vector<2x32xf32>
    %cst_114 = arith.constant dense<0.000000e+00> : vector<2xf32>
    %425 = vector.multi_reduction <add>, %424, %cst_114 [1] : vector<2x32xf32> to vector<2xf32>
    %426 = vector.shape_cast %425 : vector<2xf32> to vector<2x1xf32>
    %427 = vector.extract_strided_slice %414 {offsets = [8, 0], sizes = [2, 32], strides = [1, 1]} : vector<16x32xf32> to vector<2x32xf32>
    %cst_115 = arith.constant dense<0.000000e+00> : vector<2xf32>
    %428 = vector.multi_reduction <add>, %427, %cst_115 [1] : vector<2x32xf32> to vector<2xf32>
    %429 = vector.shape_cast %428 : vector<2xf32> to vector<2x1xf32>
    %430 = vector.extract_strided_slice %414 {offsets = [10, 0], sizes = [2, 32], strides = [1, 1]} : vector<16x32xf32> to vector<2x32xf32>
    %cst_116 = arith.constant dense<0.000000e+00> : vector<2xf32>
    %431 = vector.multi_reduction <add>, %430, %cst_116 [1] : vector<2x32xf32> to vector<2xf32>
    %432 = vector.shape_cast %431 : vector<2xf32> to vector<2x1xf32>
    %433 = vector.extract_strided_slice %414 {offsets = [12, 0], sizes = [2, 32], strides = [1, 1]} : vector<16x32xf32> to vector<2x32xf32>
    %cst_117 = arith.constant dense<0.000000e+00> : vector<2xf32>
    %434 = vector.multi_reduction <add>, %433, %cst_117 [1] : vector<2x32xf32> to vector<2xf32>
    %435 = vector.shape_cast %434 : vector<2xf32> to vector<2x1xf32>
    %436 = vector.extract_strided_slice %414 {offsets = [14, 0], sizes = [2, 32], strides = [1, 1]} : vector<16x32xf32> to vector<2x32xf32>
    %cst_118 = arith.constant dense<0.000000e+00> : vector<2xf32>
    %437 = vector.multi_reduction <add>, %436, %cst_118 [1] : vector<2x32xf32> to vector<2xf32>
    %438 = vector.shape_cast %437 : vector<2xf32> to vector<2x1xf32>
    %439 = tpu.concatenate %417, %420, %423, %426, %429, %432, %435, %438 in 1 : vector<2x1xf32>, vector<2x1xf32>, vector<2x1xf32>, vector<2x1xf32>, vector<2x1xf32>, vector<2x1xf32>, vector<2x1xf32>, vector<2x1xf32> -> vector<2x8xf32>
    %440 = vector.broadcast %14 : vector<1x1xf32> to vector<2x8xf32>
    %441 = arith.addf %439, %440 : vector<2x8xf32>
    %cst_119 = arith.constant dense<0xFF800000> : vector<2xf32>
    %442 = vector.multi_reduction <maximumf>, %441, %cst_119 [1] : vector<2x8xf32> to vector<2xf32>
    %443 = vector.shape_cast %442 : vector<2xf32> to vector<2x1xf32>
    %444 = vector.broadcast %443 : vector<2x1xf32> to vector<2x8xf32>
    %445 = arith.subf %441, %444 : vector<2x8xf32>
    %446 = math.exp %445 : vector<2x8xf32>
    %cst_120 = arith.constant dense<0.000000e+00> : vector<2xf32>
    %447 = vector.multi_reduction <add>, %446, %cst_120 [1] : vector<2x8xf32> to vector<2xf32>
    %448 = vector.shape_cast %447 : vector<2xf32> to vector<2x1xf32>
    %449 = tpu.reciprocal %448 {approx = true} : vector<2x1xf32> -> vector<2x1xf32>
    %450 = vector.broadcast %449 : vector<2x1xf32> to vector<2x8xf32>
    %451 = arith.mulf %446, %450 : vector<2x8xf32>
    %cst_121 = arith.constant 0.000000e+00 : f32
    %452 = vector.broadcast %cst_121 : f32 to vector<2x32xf32>
    %453 = vector.extract_strided_slice %451 {offsets = [0, 0], sizes = [2, 1], strides = [1, 1]} : vector<2x8xf32> to vector<2x1xf32>
    %454 = vector.extract_strided_slice %406 {offsets = [0, 0], sizes = [2, 32], strides = [1, 1]} : vector<16x32xf32> to vector<2x32xf32>
    %455 = vector.broadcast %453 : vector<2x1xf32> to vector<2x32xf32>
    %456 = arith.mulf %455, %454 : vector<2x32xf32>
    %457 = arith.addf %452, %456 : vector<2x32xf32>
    %458 = vector.extract_strided_slice %451 {offsets = [0, 1], sizes = [2, 1], strides = [1, 1]} : vector<2x8xf32> to vector<2x1xf32>
    %459 = vector.extract_strided_slice %406 {offsets = [2, 0], sizes = [2, 32], strides = [1, 1]} : vector<16x32xf32> to vector<2x32xf32>
    %460 = vector.broadcast %458 : vector<2x1xf32> to vector<2x32xf32>
    %461 = arith.mulf %460, %459 : vector<2x32xf32>
    %462 = arith.addf %457, %461 : vector<2x32xf32>
    %463 = vector.extract_strided_slice %451 {offsets = [0, 2], sizes = [2, 1], strides = [1, 1]} : vector<2x8xf32> to vector<2x1xf32>
    %464 = vector.extract_strided_slice %406 {offsets = [4, 0], sizes = [2, 32], strides = [1, 1]} : vector<16x32xf32> to vector<2x32xf32>
    %465 = vector.broadcast %463 : vector<2x1xf32> to vector<2x32xf32>
    %466 = arith.mulf %465, %464 : vector<2x32xf32>
    %467 = arith.addf %462, %466 : vector<2x32xf32>
    %468 = vector.extract_strided_slice %451 {offsets = [0, 3], sizes = [2, 1], strides = [1, 1]} : vector<2x8xf32> to vector<2x1xf32>
    %469 = vector.extract_strided_slice %406 {offsets = [6, 0], sizes = [2, 32], strides = [1, 1]} : vector<16x32xf32> to vector<2x32xf32>
    %470 = vector.broadcast %468 : vector<2x1xf32> to vector<2x32xf32>
    %471 = arith.mulf %470, %469 : vector<2x32xf32>
    %472 = arith.addf %467, %471 : vector<2x32xf32>
    %473 = vector.extract_strided_slice %451 {offsets = [0, 4], sizes = [2, 1], strides = [1, 1]} : vector<2x8xf32> to vector<2x1xf32>
    %474 = vector.extract_strided_slice %406 {offsets = [8, 0], sizes = [2, 32], strides = [1, 1]} : vector<16x32xf32> to vector<2x32xf32>
    %475 = vector.broadcast %473 : vector<2x1xf32> to vector<2x32xf32>
    %476 = arith.mulf %475, %474 : vector<2x32xf32>
    %477 = arith.addf %472, %476 : vector<2x32xf32>
    %478 = vector.extract_strided_slice %451 {offsets = [0, 5], sizes = [2, 1], strides = [1, 1]} : vector<2x8xf32> to vector<2x1xf32>
    %479 = vector.extract_strided_slice %406 {offsets = [10, 0], sizes = [2, 32], strides = [1, 1]} : vector<16x32xf32> to vector<2x32xf32>
    %480 = vector.broadcast %478 : vector<2x1xf32> to vector<2x32xf32>
    %481 = arith.mulf %480, %479 : vector<2x32xf32>
    %482 = arith.addf %477, %481 : vector<2x32xf32>
    %483 = vector.extract_strided_slice %451 {offsets = [0, 6], sizes = [2, 1], strides = [1, 1]} : vector<2x8xf32> to vector<2x1xf32>
    %484 = vector.extract_strided_slice %406 {offsets = [12, 0], sizes = [2, 32], strides = [1, 1]} : vector<16x32xf32> to vector<2x32xf32>
    %485 = vector.broadcast %483 : vector<2x1xf32> to vector<2x32xf32>
    %486 = arith.mulf %485, %484 : vector<2x32xf32>
    %487 = arith.addf %482, %486 : vector<2x32xf32>
    %488 = vector.extract_strided_slice %451 {offsets = [0, 7], sizes = [2, 1], strides = [1, 1]} : vector<2x8xf32> to vector<2x1xf32>
    %489 = vector.extract_strided_slice %406 {offsets = [14, 0], sizes = [2, 32], strides = [1, 1]} : vector<16x32xf32> to vector<2x32xf32>
    %490 = vector.broadcast %488 : vector<2x1xf32> to vector<2x32xf32>
    %491 = arith.mulf %490, %489 : vector<2x32xf32>
    %492 = arith.addf %487, %491 : vector<2x32xf32>
    %493 = vector.broadcast %11 : vector<1x32xf32> to vector<2x32xf32>
    %494 = arith.mulf %492, %493 : vector<2x32xf32>
    %cst_122 = arith.constant dense<0.000000e+00> : vector<2xf32>
    %495 = vector.multi_reduction <add>, %494, %cst_122 [1] : vector<2x32xf32> to vector<2xf32>
    %496 = vector.shape_cast %495 : vector<2xf32> to vector<2x1xf32>
    %c0_123 = arith.constant 0 : index
    %c0_124 = arith.constant 0 : index
    %497 = vector.load %arg2[%c0_123, %c0_124] : memref<2x1xf32, #tpu.memory_space<vmem>>, vector<2x1xf32>
    %498 = vector.broadcast %15 : vector<1x1xf32> to vector<2x1xf32>
    %499 = arith.mulf %497, %498 : vector<2x1xf32>
    %500 = arith.addf %496, %499 : vector<2x1xf32>
    %501 = vector.broadcast %16 : vector<1x1xf32> to vector<2x1xf32>
    %502 = arith.addf %500, %501 : vector<2x1xf32>
    %503 = vector.broadcast %502 : vector<2x1xf32> to vector<2x128xf32>
    %504 = vector.broadcast %21 : vector<1x128xf32> to vector<2x128xf32>
    %505 = arith.mulf %503, %504 : vector<2x128xf32>
    %506 = vector.broadcast %22 : vector<1x128xf32> to vector<2x128xf32>
    %507 = arith.addf %505, %506 : vector<2x128xf32>
    %508 = arith.negf %507 : vector<2x128xf32>
    %509 = math.exp %508 : vector<2x128xf32>
    %cst_125 = arith.constant 1.000000e+00 : f32
    %510 = vector.broadcast %cst_125 : f32 to vector<2x128xf32>
    %511 = arith.addf %510, %509 : vector<2x128xf32>
    %512 = arith.divf %510, %511 : vector<2x128xf32>
    %513 = math.tanh %507 : vector<2x128xf32>
    %514 = vector.extract_strided_slice %512 {offsets = [0, 0], sizes = [2, 32], strides = [1, 1]} : vector<2x128xf32> to vector<2x32xf32>
    %515 = vector.extract_strided_slice %513 {offsets = [0, 64], sizes = [2, 32], strides = [1, 1]} : vector<2x128xf32> to vector<2x32xf32>
    %516 = vector.extract_strided_slice %512 {offsets = [0, 96], sizes = [2, 32], strides = [1, 1]} : vector<2x128xf32> to vector<2x32xf32>
    %517 = arith.mulf %514, %515 : vector<2x32xf32>
    %518 = math.tanh %517 : vector<2x32xf32>
    %519 = arith.mulf %516, %518 : vector<2x32xf32>
    %520 = tpu.concatenate %519, %492 in 1 : vector<2x32xf32>, vector<2x32xf32> -> vector<2x64xf32>
    %cst_126 = arith.constant dense<0.000000e+00> : vector<2x32xf32>
    %521 = tpu.matmul %520, %18, %cst_126 {dimension_numbers = #tpu.dot_dimension_numbers<[1], [0], [0], [1], [0, 0, 1, 1], [], []>} : vector<2x64xf32>, vector<64x32xf32>, vector<2x32xf32> -> vector<2x32xf32>
    %522 = vector.broadcast %19 : vector<1x32xf32> to vector<2x32xf32>
    %523 = arith.addf %521, %522 : vector<2x32xf32>
    %524 = vector.broadcast %20 : vector<1x32xf32> to vector<2x32xf32>
    %525 = arith.mulf %523, %524 : vector<2x32xf32>
    %cst_127 = arith.constant dense<0.000000e+00> : vector<2xf32>
    %526 = vector.multi_reduction <add>, %525, %cst_127 [1] : vector<2x32xf32> to vector<2xf32>
    %527 = vector.shape_cast %526 : vector<2xf32> to vector<2x1xf32>
    %528 = vector.broadcast %17 : vector<1x1xf32> to vector<2x1xf32>
    %529 = arith.addf %527, %528 : vector<2x1xf32>
    %c0_128 = arith.constant 0 : index
    %c0_129 = arith.constant 0 : index
    %530 = vector.load %arg8[%c0_128, %c0_129] : memref<2x1xf32, #tpu.memory_space<vmem>>, vector<2x1xf32>
    tpu.vector_store %arg8[%c0_128, %c0_129], %529 {strides = array<i32>} : memref<2x1xf32, #tpu.memory_space<vmem>>, vector<2x1xf32>,
    return
  }
}

</mosaic_0001>

<bundles_post_ra>
// kernel: tpu_custom_call.1
= control target key start
LH: loop header
LB: loop body
LE: loop exit
PB: predicated region body
PF: predicated region fallthrough
CT: control target
= control target key end

     0   :  { %vm70_vm0 = vcmask 64512   ;;  %v2205_v10 = vmov 0.0   ;;  %vm135_vm1 = vcmask 60416   ;;  %v150_v32 = vlaneseq  ;;  %s2207_s26 = smov 64   ;;  %s2208_s27 = smov 32   ;;  %s2981_s3 = inlined_call_operand.vmem [shape: f32[96,8], index: 3, kind: input, shape index: {}]   ;;  %s2982_s1 = inlined_call_operand.vmem [shape: f32[8,8], index: 1, kind: input, shape index: {}]   ;;  %s2983_s5 = inlined_call_operand.vmem [shape: f32[72,32], index: 5, kind: input, shape index: {}]   ;;  %s2984_s0 = inlined_call_operand.vmem [shape: f32[2,8,4], index: 0, kind: input, shape index: {}]   ;;  %s2985_s4 = inlined_call_operand.vmem [shape: f32[48,128], index: 4, kind: input, shape index: {}]   ;;  %s2986_s7 = inlined_call_operand.vmem [shape: f32[16,128], index: 7, kind: input, shape index: {}]   ;;  %s2987_s2 = inlined_call_operand.vmem [shape: f32[2,1], index: 2, kind: input, shape index: {}]   ;;  %s2988_s6 = inlined_call_operand.vmem [shape: f32[80,32], index: 6, kind: input, shape index: {}]   ;;  %s2989_s8 = inlined_call_operand.vmem [shape: f32[2,1], index: 8, kind: output, shape index: {}]  }
   0x1   :  { %v29_v0 = vld [vmem:[%s2981_s3] sm:$0xff]  ;;  %v2278_v2 = vld [vmem:[%s2981_s3 + $0x38] sm:$0xff]  ;;  %v2288_v4 = vld [vmem:[%s2981_s3 + $0x30] sm:$0xff]  ;;  %vm154_vm2 = vcmask 1041409   ;;  %vm157_vm3 = vcmask 25600   ;;  %v2206_v42 = vmov 0  }
   0x2   :  { %89 = vmatpush.msra.mxu1 %v29_v0  ;;  %v2273_v1 = vld [vmem:[%s2981_s3 + $0x40] sm:$0xff]  ;;  %v2295_v5 = vld [vmem:[%s2981_s3 + $0x28] sm:$0xff]  ;;  %v2309_v7 = vld [vmem:[%s2981_s3 + $0x18] sm:$0xff]  ;;  %v2367_v34 = vand.u32 127, %v150_v32  ;;  %1975 = vset.pattern.permute.xlu2 %v2206_v42  ;;  %v2377_v52 = vshrl.u32 %v150_v32, 7  ;;  %vm236_vm4 = vcmask 1043456  }
   0x3   :  { %v68_v3 = vld [vmem:[%s2982_s1] sm:$0xff]  ;;  %506 = vmatpush.msra.mxu2 %v2273_v1  ;;  %v2316_v8 = vld [vmem:[%s2981_s3 + $0x10] sm:$0xff]  ;;  %v2323_v9 = vld [vmem:[%s2981_s3 + $0x8] sm:$0xff]  ;;  %1974 = vset.pattern.permute.xlu1 %v2206_v42  ;;  %vm229_vm5 = vcmask 31744   ;;  %vm232_vm6 = vcmask 293888   ;;  %vm301_vm11 = vcmask 254976  }
   0x4   :  { %110 = vmatpush.msrb.mxu1 %v2273_v1  ;;  %v2302_v6 = vld [vmem:[%s2981_s3 + $0x20] sm:$0xff]  ;;  %v2014_v13 = vld [vmem:[%s2981_s3 + $0x48] ss:$0 sm:$0xff]  ;;  %v2346_v14 = vld [vmem:[%s2981_s3 + $0x50] ss:$0 sm:$0xff]  ;;  %1976 = vset.pattern.permute.xlu0 %v2377_v52  ;;  %vm303_vm12 = vcmask 261120  }
   0x5   :  { %1917 = vmatmul.msk.f32.vlgmr.msra.gmra.mxu1 %vm70_vm0, %v68_v3  ;;  %507 = vmatpush.msra.mxu2 %v2278_v2  ;;  %v55_v12 = vld [vmem:[%s2983_s5 + $0x40] sm:$0x1]  ;;  %v2359_v24 = vld [vmem:[%s2981_s3 + $0x58] ss:$0 sm:$0xff]  ;;  %v2016_v53 = vld [vmem:[%s2984_s0 + $0x8] ss:$0 sm:$0xff] }
   0x6   :  { %111 = vmatpush.msrb.mxu1 %v2278_v2  ;;  %1953 = vpush %v55_v12  ;;  %v2017_v54 = vld [vmem:[%s2984_s0] ss:$0 sm:$0xff]  ;;  %vm98_vm13 = vcmask 523264   ;;  %s2210_s25 = smov 127   ;;  %s2218_s13 = smov 126  }
   0x7   :  { %508 = vmatpush.msra.mxu2 %v2288_v4  ;;  %s2219_s14 = smov 125  }
   0x8   :  { %112 = vmatpush.msrb.mxu1 %v2288_v4 }
   0x9   :  { %509 = vmatpush.msra.mxu2 %v2295_v5 }
   0xa   :  { %113 = vmatpush.msrb.mxu1 %v2295_v5 }
   0xb   :  { %510 = vmatpush.msra.mxu2 %v2302_v6 }
   0xc   :  { %114 = vmatpush.msrb.mxu1 %v2302_v6 }
   0xd   :  { %511 = vmatpush.msra.mxu2 %v2309_v7 }
   0xe   :  { %115 = vmatpush.msrb.mxu1 %v2309_v7 }
   0xf   :  { %512 = vmatpush.msra.mxu2 %v2316_v8 }
  0x10   :  { %116 = vmatpush.msrb.mxu1 %v2316_v8 }
  0x11   :  { %513 = vmatpush.msra.mxu2 %v2323_v9 }
  0x12   :  { %117 = vmatpush.msrb.mxu1 %v2323_v9 }
  0x13   :  { %118 = vmatmul.f32.vlgmr.msrb.gmra.mxu1 %v2205_v10 }
  0x14   :  { %696 = vmatpush.msra.mxu1 %v2273_v1 }
  0x16   :  { %697 = vmatpush.msra.mxu1 %v2278_v2 }
  0x18   :  { %698 = vmatpush.msra.mxu1 %v2288_v4 }
  0x1a   :  { %699 = vmatpush.msra.mxu1 %v2295_v5 }
  0x1c   :  { %700 = vmatpush.msra.mxu1 %v2302_v6 }
  0x1e   :  { %701 = vmatpush.msra.mxu1 %v2309_v7 }
  0x20   :  { %702 = vmatpush.msra.mxu1 %v2316_v8 }
  0x22   :  { %703 = vmatpush.msra.mxu1 %v2323_v9 }
  0x37   :  { %s1954_s10 = spop %1953 }
  0x38   :  { %v2365_v33 = vstv %s1954_s10  ;;  %s2209_s10 = smov 36  }
  0x82   :  { %v91_v11 = vpop.f32.mrf.mxu1 }
  0x83   :  { %v2348_v16 = vadd.f32 %v2014_v13, %v91_v11 }
  0x85   :  { %v2352_v20 = vrot.slane %v2348_v16, 4 }
  0x90   :  { %v119_v15 = vpop.f32.mrf.mxu1 }
  0x91   :  { %v120_v17 = vadd.f32 %v2346_v14, %v119_v15 }
  0x93   :  { %v123_v18 = vrot.slane %v120_v17, 1  ;;  %v124_v19 = vperm.slane %v120_v17, 0  ;;  %v2397_v17 = vld [vmem:[%s2985_s4 + $0x20] sm:$0xf] }
  0x94   :  { %1918 = vmatpush.msk.msra.mxu3 %vm236_vm4, %v2397_v17  ;;  %1922 = vmatpush.msk.msra.mxu0 %vm236_vm4, %v2397_v17 }
  0x95   :  { %v125_v21 = vperm.slane %v123_v18, 0  ;;  %v128_v22 = vadd.f32 %v124_v19, %v2348_v16  ;;  %v2402_v18 = vld [vmem:[%s2985_s4 + $0x18] sm:$0xff]  ;;  %v2411_v19 = vld [vmem:[%s2985_s4 + $0x10] sm:$0xff]  ;;  %1934 = vmatpush.msk.msrb.mxu2 %vm236_vm4, %v2397_v17  ;;  %1938 = vmatpush.msk.msrb.mxu1 %vm236_vm4, %v2397_v17 }
  0x96   :  { %252 = vmatpush.msra.mxu3 %v2402_v18  ;;  %444 = vmatpush.msra.mxu0 %v2402_v18 }
  0x97   :  { %v129_v23 = vadd.f32 %v125_v21, %v2352_v20  ;;  %2041 = vtanh.f32 %v128_v22  ;;  %1014 = vmatpush.msrb.mxu2 %v2402_v18  ;;  %1204 = vmatpush.msrb.mxu1 %v2402_v18  ;;  %v2428_v21 = vld [vmem:[%s2985_s4 + $0x8] sm:$0xff]  ;;  %v2433_v22 = vld [vmem:[%s2985_s4] sm:$0xff] }
  0x98   :  { %253 = vmatpush.msra.mxu3 %v2411_v19  ;;  %445 = vmatpush.msra.mxu0 %v2411_v19 }
  0x99   :  { %2043 = vtanh.f32 %v129_v23  ;;  %1015 = vmatpush.msrb.mxu2 %v2411_v19  ;;  %1205 = vmatpush.msrb.mxu1 %v2411_v19 }
  0x9a   :  { %254 = vmatpush.msra.mxu3 %v2428_v21  ;;  %446 = vmatpush.msra.mxu0 %v2428_v21 }
  0x9b   :  { %1016 = vmatpush.msrb.mxu2 %v2428_v21  ;;  %1206 = vmatpush.msrb.mxu1 %v2428_v21 }
  0x9c   :  { %255 = vmatpush.msra.mxu3 %v2433_v22  ;;  %447 = vmatpush.msra.mxu0 %v2433_v22 }
  0x9d   :  { %v2042_v25 = vpop.eup %2041  ;;  %1017 = vmatpush.msrb.mxu2 %v2433_v22  ;;  %1207 = vmatpush.msrb.mxu1 %v2433_v22 }
  0x9e   :  { %v133_v26 = vmul.f32 %v2042_v25, %v2359_v24  ;;  %316 = vmatpush.msrb.mxu3 %v2273_v1  ;;  %1926 = vmatpush.msk.msrb.mxu0 %vm236_vm4, %v2397_v17 }
  0x9f   :  { %v2044_v28 = vpop.eup %2043 }
  0xa0   :  { %v136_v27 = vsel %vm135_vm1, %v133_v26, 0.0  ;;  %v134_v29 = vmul.f32 %v2044_v28, %v2359_v24  ;;  %317 = vmatpush.msrb.mxu3 %v2278_v2  ;;  %634 = vmatpush.msrb.mxu0 %v2402_v18 }
  0xa1   :  { %137 = vadd.xlane.f32.xlu0 %v136_v27 }
  0xa2   :  { %v139_v30 = vsel %vm135_vm1, %v134_v29, 0.0  ;;  %318 = vmatpush.msrb.mxu3 %v2288_v4  ;;  %635 = vmatpush.msrb.mxu0 %v2411_v19 }
  0xa4   :  { %319 = vmatpush.msrb.mxu3 %v2295_v5  ;;  %636 = vmatpush.msrb.mxu0 %v2428_v21 }
  0xa6   :  { %320 = vmatpush.msrb.mxu3 %v2302_v6  ;;  %637 = vmatpush.msrb.mxu0 %v2433_v22 }
  0xa8   :  { %321 = vmatpush.msrb.mxu3 %v2309_v7 }
  0xa9   :  { %140 = vadd.xlane.f32.xlu0 %v139_v30  ;;  %v2471_v30 = vld [vmem:[%s2985_s4 + $0x28] ss:$0 sm:$0xff] }
  0xaa   :  { %322 = vmatpush.msrb.mxu3 %v2316_v8 }
  0xac   :  { %323 = vmatpush.msrb.mxu3 %v2323_v9 }
  0xbd   :  { %204 = vperm.xlu0 %1976, %v2017_v54  }
  0xc5   :  { %1979 = vset.pattern.permute.xlu0 %v2206_v42 }
 0x114   :  { %v138_v31 = vpop.xlane.xlu0 %137 }
 0x115   :  { %v146_v35 = vadd.f32 %v2365_v33, %v138_v31 }
 0x117   :  { %v152_v38 = vperm.slane %v146_v35, %v2367_v34 }
 0x11c   :  { %v141_v36 = vpop.xlane.xlu0 %140 }
 0x11d   :  { %v147_v37 = vadd.f32 %v2365_v33, %v141_v36 }
 0x11f   :  { %v153_v39 = vperm.slane %v147_v37, %v2367_v34 }
 0x121   :  { %v155_v40 = vsel %vm154_vm2, %v153_v39, %v152_v38 }
 0x122   :  { %v158_v41 = vsel %vm157_vm3, %v155_v40, -inf }
 0x123   :  { %159 = vmax.xlane.f32.xlu1 %v158_v41 }
 0x12f   :  { %v205_v0 = vpop.permute.xlu0 %204 }
 0x196   :  { %v160_v43 = vpop.xlane.xlu1 %159 }
 0x197   :  { %v162_v44 = vperm.slane %v160_v43, 0  ;;  %v163_v45 = vperm.slane %v160_v43, 1 }
 0x199   :  { %v166_v46 = vsub.f32 %v146_v35, %v162_v44  ;;  %v167_v47 = vsub.f32 %v147_v37, %v163_v45 }
 0x19b   :  { %v168_v48 = vmul.f32 1.442695, %v166_v46  ;;  %v170_v49 = vmul.f32 1.442695, %v167_v47 }
 0x19d   :  { %2045 = vpow2.f32 %v168_v48 }
 0x19e   :  { %2047 = vpow2.f32 %v170_v49 }
 0x1a3   :  { %v2046_v50 = vpop.eup %2045 }
 0x1a4   :  { %v2048_v51 = vpop.eup %2047  ;;  %175 = vperm.xlu1 %1974, %v2046_v50  }
 0x1a5   :  { %178 = vperm.xlu2 %1975, %v2048_v51  }
 0x1ac   :  { %1977 = vset.pattern.permute.xlu1 %v2377_v52 }
 0x1ad   :  { %1980 = vset.pattern.permute.xlu2 %v2377_v52 }
 0x1b4   :  { %211 = vperm.xlu1 %1977, %v2016_v53  }
 0x1bc   :  { %1978 = vset.pattern.permute.xlu1 %v2206_v42 }
 0x1ff   :  { %v179_v55 = vpop.permute.xlu2 %178 }
 0x200   :  { %v181_v57 = vperm.slane %v179_v55, %v2367_v34 }
 0x216   :  { %v176_v56 = vpop.permute.xlu1 %175 }
 0x217   :  { %v180_v58 = vperm.slane %v176_v56, %v2367_v34 }
 0x219   :  { %v182_v59 = vsel %vm154_vm2, %v181_v57, %v180_v58 }
 0x21a   :  { %v184_v60 = vsel %vm157_vm3, %v182_v59, 0.0 }
 0x21b   :  { %185 = vadd.xlane.f32.xlu2 %v184_v60 }
 0x226   :  { %v212_v13 = vpop.permute.xlu1 %211 }
 0x28e   :  { %v186_v61 = vpop.xlane.xlu2 %185 }
 0x28f   :  { %2049 = vrcp.f32 %v186_v61 }
 0x295   :  { %v2050_v62 = vpop.eup %2049 }
 0x296   :  { %v189_v63 = vperm.slane %v2050_v62, 0  ;;  %v190_v10 = vperm.slane %v2050_v62, 1 }
 0x298   :  { %v193_v3 = vmul.f32 %v2046_v50, %v189_v63  ;;  %v194_v12 = vmul.f32 %v2048_v51, %v190_v10 }
 0x29a   :  { %v215_v11 = vmul.f32 %v205_v0, %v193_v3  ;;  %v216_v15 = vmul.f32 %v212_v13, %v194_v12 }
 0x29c   :  { %220 = vperm.xlu1 %1978, %v215_v11  }
 0x2a4   :  { %223 = vperm.xlu1 %1978, %v216_v15  }
 0x30e   :  { %v221_v23 = vpop.permute.xlu1 %220 }
 0x30f   :  { %v225_v26 = vperm.slane %v221_v23, %v2367_v34 }
 0x316   :  { %v224_v25 = vpop.permute.xlu1 %223 }
 0x317   :  { %v226_v27 = vperm.slane %v224_v25, %v2367_v34 }
 0x319   :  { %v227_v28 = vsel %vm154_vm2, %v226_v27, %v225_v26 }
 0x31a   :  { %v230_v29 = vsel %vm229_vm5, %v227_v28, 0.0 }
 0x31b   :  { %1919 = vmatmul.msk.f32.vlgmr.msra.gmra.mxu3 %vm232_vm6, %v230_v29 }
 0x31c   :  { %1930 = vmatpush.msk.msra.mxu3 %vm236_vm4, %v2397_v17 }
 0x31e   :  { %824 = vmatpush.msra.mxu3 %v2402_v18 }
 0x320   :  { %825 = vmatpush.msra.mxu3 %v2411_v19 }
 0x322   :  { %826 = vmatpush.msra.mxu3 %v2428_v21 }
 0x324   :  { %827 = vmatpush.msra.mxu3 %v2433_v22 }
 0x39e   :  { %v257_v31 = vpop.f32.mrf.mxu3 }
 0x39f   :  { %v258_v32 = vadd.f32 %v2471_v30, %v257_v31 }
 0x3a1   :  { %2051 = vtanh.f32 %v258_v32  ;;  %v1920_v36 = vmul.f32 -1.442695, %v258_v32 }
 0x3a3   :  { %2053 = vpow2.f32 %v1920_v36 }
 0x3a7   :  { %v2052_v35 = vpop.eup %2051 }
 0x3a8   :  { %282 = vrot.lane.b32.xlu2 %v2052_v35, %s2207_s26 }
 0x3a9   :  { %v2054_v37 = vpop.eup %2053 }
 0x3aa   :  { %v263_v38 = vadd.f32 1.0, %v2054_v37 }
 0x3ac   :  { %2055 = vrcp.f32 %v263_v38  ;;  %v275_v45 = vand.u32 2147483648, %v263_v38  ;;  %vm269_vm8 = vweird.f32 %v263_v38  ;;  %v273_v46 = vand.u32 2147483647, %v263_v38 }
 0x3ae   :  { %v276_v48 = vor.u32 1.1754944e-38, %v275_v45  ;;  %vm274_vm10 = vcmp.eq.f32.partialorder %v273_v46, 8.507059e+37 }
 0x3b2   :  { %v2056_v39 = vpop.eup %2055 }
 0x3b3   :  { %v265_v40 = vmul.f32 %v2056_v39, %v263_v38  ;;  %vm270_vm7 = vweird.f32 %v2056_v39 }
 0x3b4   :  { %vm271_vm9 = vmor %vm269_vm8, %vm270_vm7 }
 0x3b5   :  { %v266_v41 = vsub.f32 1.0, %v265_v40 }
 0x3b7   :  { %v267_v43 = vmul.f32 %v2056_v39, %v266_v41 }
 0x3b9   :  { %v268_v44 = vadd.f32 %v2056_v39, %v267_v43 }
 0x3bb   :  { %v272_v47 = vsel %vm271_vm9, %v2056_v39, %v268_v44 }
 0x3bc   :  { %v277_v50 = vsel %vm274_vm10, %v276_v48, %v272_v47  ;;  %v2019_v48 = vld [vmem:[%s2984_s0 + $0x9] ss:$0 sm:$0xff] }
 0x3bd   :  { %v280_v53 = vmul.f32 0.0, %v277_v50 }
 0x402   :  { %v283_v49 = vpop.permute.xlu2 %282 }
 0x403   :  { %v285_v51 = vmul.f32 %v283_v49, %v277_v50 }
 0x405   :  { %287 = vrot.lane.b32.xlu0 %v285_v51, %s2208_s27 }
 0x477   :  { %v288_v54 = vpop.permute.xlu0 %287 }
 0x478   :  { %v2476_v55 = vadd.f32 %v288_v54, %v280_v53 }
 0x47a   :  { %2057 = vtanh.f32 %v2476_v55 }
 0x480   :  { %v2058_v56 = vpop.eup %2057 }
 0x481   :  { %293 = vrot.lane.b32.xlu1 %v2058_v56, %s2207_s26 }
 0x4f3   :  { %v294_v57 = vpop.permute.xlu1 %293 }
 0x4f4   :  { %v2480_v58 = vmul.f32 %v294_v57, %v277_v50  ;;  %v2020_v57 = vld [vmem:[%s2984_s0 + $0x1] ss:$0 sm:$0xff] }
 0x4f6   :  { %298 = vrot.lane.b32.xlu0 %v2480_v58, %s2208_s27 }
 0x568   :  { %v299_v59 = vpop.permute.xlu0 %298 }
 0x569   :  { %302 = vst.msk [vmem:[#allocation2] sm:$0x3] %vm301_vm11, %v299_v59  ;;  %v304_v60 = vsel %vm303_vm12, %v299_v59, %v2476_v55 }
 0x56a   :  { %1921 = vmatmul.msk.f32.vlgmr.msrb.gmra.mxu3 %vm98_vm13, %v304_v60 }
 0x56b   :  { %1076 = vmatpush.msrb.mxu3 %v2273_v1 }
 0x56d   :  { %1077 = vmatpush.msrb.mxu3 %v2278_v2 }
 0x56f   :  { %1078 = vmatpush.msrb.mxu3 %v2288_v4 }
 0x571   :  { %1079 = vmatpush.msrb.mxu3 %v2295_v5 }
 0x573   :  { %1080 = vmatpush.msrb.mxu3 %v2302_v6 }
 0x575   :  { %1081 = vmatpush.msrb.mxu3 %v2309_v7 }
 0x577   :  { %1082 = vmatpush.msrb.mxu3 %v2316_v8 }
 0x579   :  { %1083 = vmatpush.msrb.mxu3 %v2323_v9 }
 0x5ed   :  { %v325_v61 = vpop.f32.mrf.mxu3 }
 0x5ee   :  { %v326_v62 = vadd.f32 %v2346_v14, %v325_v61 }
 0x5f0   :  { %v329_v63 = vrot.slane %v326_v62, 1  ;;  %v330_v0 = vperm.slane %v326_v62, 0 }
 0x5f2   :  { %v331_v3 = vperm.slane %v329_v63, 0  ;;  %v334_v10 = vadd.f32 %v330_v0, %v2348_v16 }
 0x5f4   :  { %v335_v11 = vadd.f32 %v331_v3, %v2352_v20  ;;  %2059 = vtanh.f32 %v334_v10 }
 0x5f6   :  { %2061 = vtanh.f32 %v335_v11 }
 0x5fa   :  { %v2060_v12 = vpop.eup %2059 }
 0x5fb   :  { %v338_v13 = vmul.f32 %v2060_v12, %v2359_v24 }
 0x5fc   :  { %v2062_v15 = vpop.eup %2061 }
 0x5fd   :  { %v340_v23 = vsel %vm135_vm1, %v338_v13, 0.0  ;;  %v339_v25 = vmul.f32 %v2062_v15, %v2359_v24 }
 0x5fe   :  { %341 = vadd.xlane.f32.xlu1 %v340_v23 }
 0x5ff   :  { %v343_v26 = vsel %vm135_vm1, %v339_v25, 0.0 }
 0x600   :  { %344 = vadd.xlane.f32.xlu0 %v343_v26 }
 0x671   :  { %v342_v27 = vpop.xlane.xlu1 %341 }
 0x672   :  { %v346_v28 = vadd.f32 %v342_v27, %v2365_v33 }
 0x673   :  { %v345_v29 = vpop.xlane.xlu0 %344 }
 0x674   :  { %v347_v31 = vadd.f32 %v345_v29, %v2365_v33  ;;  %v350_v32 = vperm.slane %v346_v28, %v2367_v34 }
 0x676   :  { %v351_v35 = vperm.slane %v347_v31, %v2367_v34 }
 0x678   :  { %v352_v36 = vsel %vm154_vm2, %v351_v35, %v350_v32 }
 0x679   :  { %v354_v37 = vsel %vm157_vm3, %v352_v36, -inf }
 0x67a   :  { %355 = vmax.xlane.f32.xlu2 %v354_v37 }
 0x6ed   :  { %v356_v38 = vpop.xlane.xlu2 %355 }
 0x6ee   :  { %v358_v39 = vperm.slane %v356_v38, 0  ;;  %v359_v40 = vperm.slane %v356_v38, 1 }
 0x6f0   :  { %v362_v41 = vsub.f32 %v346_v28, %v358_v39  ;;  %v363_v43 = vsub.f32 %v347_v31, %v359_v40 }
 0x6f2   :  { %v364_v44 = vmul.f32 1.442695, %v362_v41  ;;  %v366_v45 = vmul.f32 1.442695, %v363_v43 }
 0x6f4   :  { %2063 = vpow2.f32 %v364_v44 }
 0x6f5   :  { %2065 = vpow2.f32 %v366_v45 }
 0x6fa   :  { %v2064_v46 = vpop.eup %2063 }
 0x6fb   :  { %v2066_v47 = vpop.eup %2065  ;;  %371 = vperm.xlu1 %1978, %v2064_v46  }
 0x6fc   :  { %374 = vperm.xlu0 %1979, %v2066_v47  }
 0x703   :  { %1981 = vset.pattern.permute.xlu1 %v2377_v52 }
 0x704   :  { %1984 = vset.pattern.permute.xlu0 %v2377_v52 }
 0x70b   :  { %407 = vperm.xlu1 %1981, %v2019_v48  }
 0x713   :  { %1982 = vset.pattern.permute.xlu1 %v2206_v42 }
 0x76d   :  { %v372_v49 = vpop.permute.xlu1 %371 }
 0x76e   :  { %v375_v50 = vpop.permute.xlu0 %374  ;;  %v376_v51 = vperm.slane %v372_v49, %v2367_v34 }
 0x76f   :  { %v377_v53 = vperm.slane %v375_v50, %v2367_v34 }
 0x771   :  { %v378_v54 = vsel %vm154_vm2, %v377_v53, %v376_v51 }
 0x772   :  { %v380_v56 = vsel %vm157_vm3, %v378_v54, 0.0 }
 0x773   :  { %381 = vadd.xlane.f32.xlu2 %v380_v56 }
 0x77d   :  { %v408_v0 = vpop.permute.xlu1 %407 }
 0x78b   :  { %400 = vperm.xlu2 %1980, %v2020_v57  }
 0x793   :  { %1983 = vset.pattern.permute.xlu2 %v2206_v42 }
 0x7e6   :  { %v382_v59 = vpop.xlane.xlu2 %381 }
 0x7e7   :  { %2067 = vrcp.f32 %v382_v59 }
 0x7ed   :  { %v2068_v60 = vpop.eup %2067 }
 0x7ee   :  { %v385_v61 = vperm.slane %v2068_v60, 0  ;;  %v386_v62 = vperm.slane %v2068_v60, 1  ;;  %v401_v63 = vpop.permute.xlu2 %400 }
 0x7f0   :  { %v389_v3 = vmul.f32 %v2064_v46, %v385_v61  ;;  %v390_v10 = vmul.f32 %v2066_v47, %v386_v62 }
 0x7f2   :  { %v411_v11 = vmul.f32 %v401_v63, %v389_v3  ;;  %v412_v12 = vmul.f32 %v408_v0, %v390_v10 }
 0x7f4   :  { %416 = vperm.xlu1 %1982, %v411_v11   ;;  %419 = vperm.xlu2 %1983, %v412_v12  }
 0x7fc   :  { %425 = vrot.lane.b32.xlu1 %v2480_v58, %s2209_s10 }
 0x84e   :  { %v420_v15 = vpop.permute.xlu2 %419 }
 0x84f   :  { %v422_v25 = vperm.slane %v420_v15, %v2367_v34 }
 0x866   :  { %v417_v13 = vpop.permute.xlu1 %416 }
 0x867   :  { %v421_v23 = vperm.slane %v417_v13, %v2367_v34 }
 0x869   :  { %v423_v27 = vsel %vm154_vm2, %v422_v25, %v421_v23 }
 0x86e   :  { %v426_v26 = vpop.permute.xlu1 %425 }
 0x86f   :  { %v428_v28 = vsel %vm229_vm5, %v423_v27, %v426_v26 }
 0x870   :  { %1923 = vmatmul.msk.f32.vlgmr.msra.gmra.mxu0 %vm232_vm6, %v428_v28 }
 0x871   :  { %886 = vmatpush.msra.mxu0 %v2273_v1 }
 0x873   :  { %887 = vmatpush.msra.mxu0 %v2278_v2 }
 0x875   :  { %888 = vmatpush.msra.mxu0 %v2288_v4 }
 0x877   :  { %889 = vmatpush.msra.mxu0 %v2295_v5 }
 0x879   :  { %890 = vmatpush.msra.mxu0 %v2302_v6 }
 0x87b   :  { %891 = vmatpush.msra.mxu0 %v2309_v7 }
 0x87d   :  { %892 = vmatpush.msra.mxu0 %v2316_v8 }
 0x87f   :  { %893 = vmatpush.msra.mxu0 %v2323_v9 }
 0x8ed   :  { %v449_v58 = vpop.f32.mrf.mxu0 }
 0x8ee   :  { %v450_v29 = vadd.f32 %v2471_v30, %v449_v58 }
 0x8f0   :  { %2069 = vtanh.f32 %v450_v29  ;;  %v1924_v32 = vmul.f32 -1.442695, %v450_v29 }
 0x8f2   :  { %2071 = vpow2.f32 %v1924_v32 }
 0x8f6   :  { %v2070_v31 = vpop.eup %2069 }
 0x8f7   :  { %474 = vrot.lane.b32.xlu0 %v2070_v31, %s2207_s26 }
 0x8f8   :  { %v2072_v35 = vpop.eup %2071 }
 0x8f9   :  { %v455_v36 = vadd.f32 1.0, %v2072_v35 }
 0x8fb   :  { %2073 = vrcp.f32 %v455_v36  ;;  %v467_v43 = vand.u32 2147483648, %v455_v36  ;;  %vm461_vm15 = vweird.f32 %v455_v36  ;;  %v465_v44 = vand.u32 2147483647, %v455_v36 }
 0x8fd   :  { %v468_v46 = vor.u32 1.1754944e-38, %v467_v43  ;;  %vm466_vm7 = vcmp.eq.f32.partialorder %v465_v44, 8.507059e+37 }
 0x901   :  { %v2074_v37 = vpop.eup %2073 }
 0x902   :  { %v457_v38 = vmul.f32 %v2074_v37, %v455_v36  ;;  %vm462_vm14 = vweird.f32 %v2074_v37 }
 0x903   :  { %vm463_vm0 = vmor %vm461_vm15, %vm462_vm14 }
 0x904   :  { %v458_v39 = vsub.f32 1.0, %v457_v38 }
 0x906   :  { %v459_v40 = vmul.f32 %v2074_v37, %v458_v39 }
 0x908   :  { %v460_v41 = vadd.f32 %v2074_v37, %v459_v40 }
 0x90a   :  { %v464_v45 = vsel %vm463_vm0, %v2074_v37, %v460_v41 }
 0x90b   :  { %v469_v48 = vsel %vm466_vm7, %v468_v46, %v464_v45  ;;  %v2022_v46 = vld [vmem:[%s2984_s0 + $0xa] ss:$0 sm:$0xff] }
 0x90c   :  { %v472_v50 = vmul.f32 %v469_v48, %v2476_v55 }
 0x969   :  { %v475_v47 = vpop.permute.xlu0 %474 }
 0x96a   :  { %v477_v49 = vmul.f32 %v475_v47, %v469_v48 }
 0x96c   :  { %479 = vrot.lane.b32.xlu2 %v477_v49, %s2208_s27 }
 0x9c6   :  { %v480_v51 = vpop.permute.xlu2 %479 }
 0x9c7   :  { %v2542_v53 = vadd.f32 %v480_v51, %v472_v50 }
 0x9c9   :  { %2075 = vtanh.f32 %v2542_v53 }
 0x9cf   :  { %v2076_v54 = vpop.eup %2075 }
 0x9d0   :  { %485 = vrot.lane.b32.xlu1 %v2076_v54, %s2207_s26 }
 0xa42   :  { %v486_v56 = vpop.permute.xlu1 %485 }
 0xa43   :  { %v2546_v57 = vmul.f32 %v486_v56, %v469_v48  ;;  %v2021_v56 = vld [vmem:[%s2984_s0 + $0x2] ss:$0 sm:$0xff] }
 0xa45   :  { %490 = vrot.lane.b32.xlu0 %v2546_v57, %s2208_s27 }
 0xab7   :  { %v491_v59 = vpop.permute.xlu0 %490 }
 0xab8   :  { %493 = vst.msk [vmem:[#allocation2 + $0x2] sm:$0x3] %vm301_vm11, %v491_v59  ;;  %v494_v55 = vsel %vm303_vm12, %v491_v59, %v2542_v53 }
 0xab9   :  { %1925 = vmatmul.msk.f32.vlgmr.msra.gmra.mxu2 %vm98_vm13, %v494_v55 }
 0xaba   :  { %1266 = vmatpush.msra.mxu2 %v2273_v1 }
 0xabc   :  { %1267 = vmatpush.msra.mxu2 %v2278_v2 }
 0xabe   :  { %1268 = vmatpush.msra.mxu2 %v2288_v4 }
 0xac0   :  { %1269 = vmatpush.msra.mxu2 %v2295_v5 }
 0xac2   :  { %1270 = vmatpush.msra.mxu2 %v2302_v6 }
 0xac4   :  { %1271 = vmatpush.msra.mxu2 %v2309_v7 }
 0xac6   :  { %1272 = vmatpush.msra.mxu2 %v2316_v8 }
 0xac8   :  { %1273 = vmatpush.msra.mxu2 %v2323_v9 }
 0xb3c   :  { %v515_v60 = vpop.f32.mrf.mxu2 }
 0xb3d   :  { %v516_v61 = vadd.f32 %v2346_v14, %v515_v60 }
 0xb3f   :  { %v519_v62 = vrot.slane %v516_v61, 1  ;;  %v520_v63 = vperm.slane %v516_v61, 0 }
 0xb41   :  { %v521_v0 = vperm.slane %v519_v62, 0  ;;  %v524_v3 = vadd.f32 %v520_v63, %v2348_v16 }
 0xb43   :  { %v525_v10 = vadd.f32 %v521_v0, %v2352_v20  ;;  %2077 = vtanh.f32 %v524_v3 }
 0xb45   :  { %2079 = vtanh.f32 %v525_v10 }
 0xb49   :  { %v2078_v11 = vpop.eup %2077 }
 0xb4a   :  { %v528_v12 = vmul.f32 %v2078_v11, %v2359_v24 }
 0xb4b   :  { %v2080_v13 = vpop.eup %2079 }
 0xb4c   :  { %v530_v15 = vsel %vm135_vm1, %v528_v12, 0.0  ;;  %v529_v23 = vmul.f32 %v2080_v13, %v2359_v24 }
 0xb4d   :  { %531 = vadd.xlane.f32.xlu2 %v530_v15 }
 0xb4e   :  { %v533_v25 = vsel %vm135_vm1, %v529_v23, 0.0 }
 0xb4f   :  { %534 = vadd.xlane.f32.xlu1 %v533_v25 }
 0xbc0   :  { %v532_v26 = vpop.xlane.xlu2 %531 }
 0xbc1   :  { %v536_v27 = vadd.f32 %v532_v26, %v2365_v33 }
 0xbc2   :  { %v535_v28 = vpop.xlane.xlu1 %534 }
 0xbc3   :  { %v537_v58 = vadd.f32 %v535_v28, %v2365_v33  ;;  %v540_v29 = vperm.slane %v536_v27, %v2367_v34 }
 0xbc5   :  { %v541_v31 = vperm.slane %v537_v58, %v2367_v34 }
 0xbc7   :  { %v542_v32 = vsel %vm154_vm2, %v541_v31, %v540_v29 }
 0xbc8   :  { %v544_v35 = vsel %vm157_vm3, %v542_v32, -inf }
 0xbc9   :  { %545 = vmax.xlane.f32.xlu0 %v544_v35 }
 0xc3c   :  { %v546_v36 = vpop.xlane.xlu0 %545 }
 0xc3d   :  { %v548_v37 = vperm.slane %v546_v36, 0  ;;  %v549_v38 = vperm.slane %v546_v36, 1 }
 0xc3f   :  { %v552_v39 = vsub.f32 %v536_v27, %v548_v37  ;;  %v553_v40 = vsub.f32 %v537_v58, %v549_v38 }
 0xc41   :  { %v554_v41 = vmul.f32 1.442695, %v552_v39  ;;  %v556_v43 = vmul.f32 1.442695, %v553_v40 }
 0xc43   :  { %2081 = vpow2.f32 %v554_v41 }
 0xc44   :  { %2083 = vpow2.f32 %v556_v43 }
 0xc49   :  { %v2082_v44 = vpop.eup %2081 }
 0xc4a   :  { %v2084_v45 = vpop.eup %2083  ;;  %561 = vperm.xlu2 %1983, %v2082_v44  }
 0xc4b   :  { %564 = vperm.xlu1 %1982, %v2084_v45  }
 0xc52   :  { %1985 = vset.pattern.permute.xlu2 %v2377_v52 }
 0xc5a   :  { %597 = vperm.xlu2 %1985, %v2022_v46  }
 0xc62   :  { %1986 = vset.pattern.permute.xlu2 %v2206_v42 }
 0xca4   :  { %v562_v47 = vpop.permute.xlu2 %561 }
 0xca5   :  { %v566_v49 = vperm.slane %v562_v47, %v2367_v34 }
 0xcb4   :  { %v598_v61 = vpop.permute.xlu2 %597 }
 0xcbd   :  { %v565_v48 = vpop.permute.xlu1 %564 }
 0xcbe   :  { %v567_v50 = vperm.slane %v565_v48, %v2367_v34 }
 0xcc0   :  { %v568_v51 = vsel %vm154_vm2, %v567_v50, %v566_v49 }
 0xcc1   :  { %v570_v54 = vsel %vm157_vm3, %v568_v51, 0.0 }
 0xcc2   :  { %571 = vadd.xlane.f32.xlu0 %v570_v54 }
 0xcd6   :  { %590 = vperm.xlu0 %1984, %v2021_v56  }
 0xcde   :  { %1987 = vset.pattern.permute.xlu0 %v2206_v42 }
 0xd35   :  { %v572_v59 = vpop.xlane.xlu0 %571 }
 0xd36   :  { %2085 = vrcp.f32 %v572_v59 }
 0xd3c   :  { %v2086_v55 = vpop.eup %2085 }
 0xd3d   :  { %v576_v60 = vperm.slane %v2086_v55, 1  ;;  %v575_v0 = vperm.slane %v2086_v55, 0 }
 0xd3f   :  { %v580_v62 = vmul.f32 %v2084_v45, %v576_v60  ;;  %v579_v3 = vmul.f32 %v2082_v44, %v575_v0 }
 0xd41   :  { %v602_v63 = vmul.f32 %v598_v61, %v580_v62 }
 0xd43   :  { %609 = vperm.xlu2 %1986, %v602_v63  }
 0xd48   :  { %v591_v10 = vpop.permute.xlu0 %590 }
 0xd49   :  { %v601_v11 = vmul.f32 %v591_v10, %v579_v3 }
 0xd4b   :  { %606 = vperm.xlu1 %1982, %v601_v11  }
 0xd53   :  { %615 = vrot.lane.b32.xlu1 %v2546_v57, %s2209_s10 }
 0xd54   :  { %1988 = vset.pattern.permute.xlu1 %v2377_v52 }
 0xd9d   :  { %v610_v13 = vpop.permute.xlu2 %609 }
 0xd9e   :  { %v612_v23 = vperm.slane %v610_v13, %v2367_v34 }
 0xdbd   :  { %v607_v12 = vpop.permute.xlu1 %606 }
 0xdbe   :  { %v611_v15 = vperm.slane %v607_v12, %v2367_v34 }
 0xdc0   :  { %v613_v26 = vsel %vm154_vm2, %v612_v23, %v611_v15 }
 0xdc5   :  { %v616_v25 = vpop.permute.xlu1 %615 }
 0xdc6   :  { %v618_v27 = vsel %vm229_vm5, %v613_v26, %v616_v25 }
 0xdc7   :  { %1927 = vmatmul.msk.f32.vlgmr.msrb.gmra.mxu0 %vm232_vm6, %v618_v27 }
 0xdc8   :  { %1942 = vmatpush.msk.msrb.mxu0 %vm236_vm4, %v2397_v17 }
 0xdca   :  { %1394 = vmatpush.msrb.mxu0 %v2402_v18 }
 0xdcc   :  { %1395 = vmatpush.msrb.mxu0 %v2411_v19 }
 0xdce   :  { %1396 = vmatpush.msrb.mxu0 %v2428_v21 }
 0xdd0   :  { %1397 = vmatpush.msrb.mxu0 %v2433_v22 }
 0xe44   :  { %v639_v57 = vpop.f32.mrf.mxu0 }
 0xe45   :  { %v640_v28 = vadd.f32 %v2471_v30, %v639_v57 }
 0xe47   :  { %2087 = vtanh.f32 %v640_v28  ;;  %v1928_v29 = vmul.f32 -1.442695, %v640_v28 }
 0xe49   :  { %2089 = vpow2.f32 %v1928_v29 }
 0xe4d   :  { %v2088_v58 = vpop.eup %2087 }
 0xe4e   :  { %664 = vrot.lane.b32.xlu2 %v2088_v58, %s2207_s26 }
 0xe4f   :  { %v2090_v31 = vpop.eup %2089 }
 0xe50   :  { %v645_v32 = vadd.f32 1.0, %v2090_v31 }
 0xe52   :  { %2091 = vrcp.f32 %v645_v32  ;;  %v657_v40 = vand.u32 2147483648, %v645_v32  ;;  %vm651_vm9 = vweird.f32 %v645_v32  ;;  %v655_v41 = vand.u32 2147483647, %v645_v32 }
 0xe54   :  { %v658_v44 = vor.u32 1.1754944e-38, %v657_v40  ;;  %vm656_vm14 = vcmp.eq.f32.partialorder %v655_v41, 8.507059e+37  ;;  %v2023_v40 = vld [vmem:[%s2984_s0 + $0x3] ss:$0 sm:$0xff] }
 0xe58   :  { %v2092_v35 = vpop.eup %2091 }
 0xe59   :  { %v647_v36 = vmul.f32 %v2092_v35, %v645_v32  ;;  %vm652_vm8 = vweird.f32 %v2092_v35  ;;  %v2024_v32 = vld [vmem:[%s2984_s0 + $0xb] ss:$0 sm:$0xff] }
 0xe5a   :  { %vm653_vm10 = vmor %vm651_vm9, %vm652_vm8 }
 0xe5b   :  { %v648_v37 = vsub.f32 1.0, %v647_v36 }
 0xe5d   :  { %v649_v38 = vmul.f32 %v2092_v35, %v648_v37 }
 0xe5f   :  { %v650_v39 = vadd.f32 %v2092_v35, %v649_v38 }
 0xe61   :  { %v654_v43 = vsel %vm653_vm10, %v2092_v35, %v650_v39 }
 0xe62   :  { %v659_v46 = vsel %vm656_vm14, %v658_v44, %v654_v43 }
 0xe63   :  { %v662_v48 = vmul.f32 %v659_v46, %v2542_v53 }
 0xea8   :  { %v665_v45 = vpop.permute.xlu2 %664 }
 0xea9   :  { %v667_v47 = vmul.f32 %v665_v45, %v659_v46 }
 0xeab   :  { %669 = vrot.lane.b32.xlu1 %v667_v47, %s2208_s27 }
 0xf1d   :  { %v670_v49 = vpop.permute.xlu1 %669 }
 0xf1e   :  { %v2606_v50 = vadd.f32 %v670_v49, %v662_v48 }
 0xf20   :  { %2093 = vtanh.f32 %v2606_v50 }
 0xf26   :  { %v2094_v51 = vpop.eup %2093 }
 0xf27   :  { %675 = vrot.lane.b32.xlu2 %v2094_v51, %s2207_s26 }
 0xf81   :  { %v676_v54 = vpop.permute.xlu2 %675 }
 0xf82   :  { %v2610_v56 = vmul.f32 %v676_v54, %v659_v46 }
 0xf84   :  { %680 = vrot.lane.b32.xlu1 %v2610_v56, %s2208_s27 }
 0xff6   :  { %v681_v59 = vpop.permute.xlu1 %680 }
 0xff7   :  { %683 = vst.msk [vmem:[#allocation2 + $0x4] sm:$0x3] %vm301_vm11, %v681_v59  ;;  %v684_v53 = vsel %vm303_vm12, %v681_v59, %v2606_v50 }
 0xff8   :  { %1929 = vmatmul.msk.f32.vlgmr.msra.gmra.mxu1 %vm98_vm13, %v684_v53 }
 0xff9   :  { %1456 = vmatpush.msra.mxu1 %v2273_v1 }
 0xffb   :  { %1457 = vmatpush.msra.mxu1 %v2278_v2 }
 0xffd   :  { %1458 = vmatpush.msra.mxu1 %v2288_v4 }
 0xfff   :  { %1459 = vmatpush.msra.mxu1 %v2295_v5 }
0x1001   :  { %1460 = vmatpush.msra.mxu1 %v2302_v6 }
0x1003   :  { %1461 = vmatpush.msra.mxu1 %v2309_v7 }
0x1005   :  { %1462 = vmatpush.msra.mxu1 %v2316_v8 }
0x1007   :  { %1463 = vmatpush.msra.mxu1 %v2323_v9 }
0x1075   :  { %v705_v55 = vpop.f32.mrf.mxu1 }
0x1076   :  { %v706_v60 = vadd.f32 %v2346_v14, %v705_v55 }
0x1078   :  { %v709_v61 = vrot.slane %v706_v60, 1  ;;  %v710_v62 = vperm.slane %v706_v60, 0 }
0x107a   :  { %v711_v1 = vperm.slane %v709_v61, 0  ;;  %v714_v2 = vadd.f32 %v710_v62, %v2348_v16 }
0x107c   :  { %v715_v4 = vadd.f32 %v711_v1, %v2352_v20  ;;  %2095 = vtanh.f32 %v714_v2 }
0x107e   :  { %2097 = vtanh.f32 %v715_v4 }
0x1082   :  { %v2096_v5 = vpop.eup %2095 }
0x1083   :  { %v718_v6 = vmul.f32 %v2096_v5, %v2359_v24 }
0x1084   :  { %v2098_v7 = vpop.eup %2097 }
0x1085   :  { %v720_v8 = vsel %vm135_vm1, %v718_v6, 0.0  ;;  %v719_v9 = vmul.f32 %v2098_v7, %v2359_v24 }
0x1086   :  { %721 = vadd.xlane.f32.xlu2 %v720_v8 }
0x1087   :  { %v723_v14 = vsel %vm135_vm1, %v719_v9, 0.0 }
0x1088   :  { %724 = vadd.xlane.f32.xlu0 %v723_v14 }
0x10f9   :  { %v722_v63 = vpop.xlane.xlu2 %721 }
0x10fa   :  { %v726_v0 = vadd.f32 %v722_v63, %v2365_v33 }
0x10fb   :  { %v725_v3 = vpop.xlane.xlu0 %724 }
0x10fc   :  { %v727_v10 = vadd.f32 %v725_v3, %v2365_v33  ;;  %v730_v11 = vperm.slane %v726_v0, %v2367_v34 }
0x10fe   :  { %v731_v12 = vperm.slane %v727_v10, %v2367_v34 }
0x1100   :  { %v732_v13 = vsel %vm154_vm2, %v731_v12, %v730_v11 }
0x1101   :  { %v734_v15 = vsel %vm157_vm3, %v732_v13, -inf }
0x1102   :  { %735 = vmax.xlane.f32.xlu1 %v734_v15 }
0x1175   :  { %v736_v24 = vpop.xlane.xlu1 %735 }
0x1176   :  { %v738_v23 = vperm.slane %v736_v24, 0  ;;  %v739_v25 = vperm.slane %v736_v24, 1 }
0x1178   :  { %v742_v26 = vsub.f32 %v726_v0, %v738_v23  ;;  %v743_v27 = vsub.f32 %v727_v10, %v739_v25 }
0x117a   :  { %v744_v57 = vmul.f32 1.442695, %v742_v26  ;;  %v746_v28 = vmul.f32 1.442695, %v743_v27  ;;  %v2685_v26 = vld [vmem:[%s2981_s3 + $0x50] ss:$0 sm:$0xff] }
0x117c   :  { %2099 = vpow2.f32 %v744_v57 }
0x117d   :  { %2101 = vpow2.f32 %v746_v28 }
0x1182   :  { %v2100_v58 = vpop.eup %2099 }
0x1183   :  { %v2102_v29 = vpop.eup %2101  ;;  %751 = vperm.xlu2 %1986, %v2100_v58  }
0x1184   :  { %754 = vperm.xlu0 %1987, %v2102_v29  }
0x118b   :  { %1989 = vset.pattern.permute.xlu2 %v2377_v52 }
0x118c   :  { %1992 = vset.pattern.permute.xlu0 %v2377_v52 }
0x1193   :  { %787 = vperm.xlu2 %1989, %v2024_v32  }
0x119b   :  { %1990 = vset.pattern.permute.xlu2 %v2206_v42 }
0x11dd   :  { %v752_v31 = vpop.permute.xlu2 %751 }
0x11de   :  { %v756_v36 = vperm.slane %v752_v31, %v2367_v34 }
0x11ed   :  { %v788_v45 = vpop.permute.xlu2 %787 }
0x11f6   :  { %v755_v35 = vpop.permute.xlu0 %754 }
0x11f7   :  { %v757_v37 = vperm.slane %v755_v35, %v2367_v34  ;;  %v2693_v35 = vld [vmem:[%s2981_s3 + $0x58] ss:$0 sm:$0xff] }
0x11f9   :  { %v758_v38 = vsel %vm154_vm2, %v757_v37, %v756_v36 }
0x11fa   :  { %v760_v39 = vsel %vm157_vm3, %v758_v38, 0.0 }
0x11fb   :  { %761 = vadd.xlane.f32.xlu1 %v760_v39 }
0x1214   :  { %780 = vperm.xlu1 %1988, %v2023_v40  }
0x121c   :  { %1991 = vset.pattern.permute.xlu1 %v2206_v42 }
0x126e   :  { %v762_v41 = vpop.xlane.xlu1 %761 }
0x126f   :  { %2103 = vrcp.f32 %v762_v41 }
0x1275   :  { %v2104_v43 = vpop.eup %2103 }
0x1276   :  { %v766_v44 = vperm.slane %v2104_v43, 1  ;;  %v765_v48 = vperm.slane %v2104_v43, 0 }
0x1278   :  { %v770_v46 = vmul.f32 %v2102_v29, %v766_v44  ;;  %v769_v49 = vmul.f32 %v2100_v58, %v765_v48 }
0x127a   :  { %v792_v47 = vmul.f32 %v788_v45, %v770_v46 }
0x127c   :  { %799 = vperm.xlu1 %1991, %v792_v47  }
0x1286   :  { %v781_v51 = vpop.permute.xlu1 %780 }
0x1287   :  { %v791_v54 = vmul.f32 %v781_v51, %v769_v49 }
0x1289   :  { %796 = vperm.xlu2 %1990, %v791_v54  }
0x1291   :  { %805 = vrot.lane.b32.xlu2 %v2610_v56, %s2209_s10 }
0x12e3   :  { %v797_v59 = vpop.permute.xlu2 %796 }
0x12e4   :  { %v801_v55 = vperm.slane %v797_v59, %v2367_v34 }
0x12eb   :  { %v806_v61 = vpop.permute.xlu2 %805 }
0x12ee   :  { %v800_v53 = vpop.permute.xlu1 %799 }
0x12ef   :  { %v802_v60 = vperm.slane %v800_v53, %v2367_v34 }
0x12f1   :  { %v803_v62 = vsel %vm154_vm2, %v802_v60, %v801_v55 }
0x12f2   :  { %v808_v1 = vsel %vm229_vm5, %v803_v62, %v806_v61 }
0x12f3   :  { %1931 = vmatmul.msk.f32.vlgmr.msra.gmra.mxu3 %vm232_vm6, %v808_v1 }
0x12f4   :  { %1946 = vmatpush.msk.msra.mxu3 %vm236_vm4, %v2397_v17 }
0x12f6   :  { %1584 = vmatpush.msra.mxu3 %v2402_v18 }
0x12f8   :  { %1585 = vmatpush.msra.mxu3 %v2411_v19 }
0x12fa   :  { %1586 = vmatpush.msra.mxu3 %v2428_v21 }
0x12fc   :  { %1587 = vmatpush.msra.mxu3 %v2433_v22 }
0x1376   :  { %v829_v56 = vpop.f32.mrf.mxu3 }
0x1377   :  { %v830_v2 = vadd.f32 %v2471_v30, %v829_v56  ;;  %v2025_v56 = vld [vmem:[%s2984_s0 + $0xc] ss:$0 sm:$0xff] }
0x1379   :  { %2105 = vtanh.f32 %v830_v2  ;;  %v1932_v5 = vmul.f32 -1.442695, %v830_v2 }
0x137b   :  { %2107 = vpow2.f32 %v1932_v5 }
0x137f   :  { %v2106_v4 = vpop.eup %2105 }
0x1380   :  { %854 = vrot.lane.b32.xlu0 %v2106_v4, %s2207_s26 }
0x1381   :  { %v2108_v6 = vpop.eup %2107 }
0x1382   :  { %v835_v7 = vadd.f32 1.0, %v2108_v6 }
0x1384   :  { %2109 = vrcp.f32 %v835_v7  ;;  %v847_v21 = vand.u32 2147483648, %v835_v7  ;;  %vm841_vm15 = vweird.f32 %v835_v7  ;;  %v845_v22 = vand.u32 2147483647, %v835_v7 }
0x1386   :  { %v848_v14 = vor.u32 1.1754944e-38, %v847_v21  ;;  %vm846_vm7 = vcmp.eq.f32.partialorder %v845_v22, 8.507059e+37 }
0x138a   :  { %v2110_v17 = vpop.eup %2109 }
0x138b   :  { %v837_v18 = vmul.f32 %v2110_v17, %v835_v7  ;;  %vm842_vm4 = vweird.f32 %v2110_v17 }
0x138c   :  { %vm843_vm0 = vmor %vm841_vm15, %vm842_vm4 }
0x138d   :  { %v838_v8 = vsub.f32 1.0, %v837_v18  ;;  %v2026_v18 = vld [vmem:[%s2984_s0 + $0x4] ss:$0 sm:$0xff] }
0x138f   :  { %v839_v19 = vmul.f32 %v2110_v17, %v838_v8 }
0x1391   :  { %v840_v9 = vadd.f32 %v2110_v17, %v839_v19 }
0x1393   :  { %v844_v30 = vsel %vm843_vm0, %v2110_v17, %v840_v9 }
0x1394   :  { %v849_v0 = vsel %vm846_vm7, %v848_v14, %v844_v30 }
0x1395   :  { %v852_v10 = vmul.f32 %v849_v0, %v2606_v50 }
0x13f2   :  { %v855_v63 = vpop.permute.xlu0 %854 }
0x13f3   :  { %v857_v3 = vmul.f32 %v855_v63, %v849_v0 }
0x13f5   :  { %859 = vrot.lane.b32.xlu1 %v857_v3, %s2208_s27 }
0x1467   :  { %v860_v11 = vpop.permute.xlu1 %859 }
0x1468   :  { %v2670_v12 = vadd.f32 %v860_v11, %v852_v10 }
0x146a   :  { %2111 = vtanh.f32 %v2670_v12 }
0x1470   :  { %v2112_v13 = vpop.eup %2111 }
0x1471   :  { %865 = vrot.lane.b32.xlu2 %v2112_v13, %s2207_s26 }
0x14cb   :  { %v866_v15 = vpop.permute.xlu2 %865 }
0x14cc   :  { %v2674_v24 = vmul.f32 %v866_v15, %v849_v0 }
0x14ce   :  { %870 = vrot.lane.b32.xlu0 %v2674_v24, %s2208_s27 }
0x1540   :  { %v871_v23 = vpop.permute.xlu0 %870 }
0x1541   :  { %873 = vst.msk [vmem:[#allocation2 + $0x6] sm:$0x3] %vm301_vm11, %v871_v23  ;;  %v874_v50 = vsel %vm303_vm12, %v871_v23, %v2670_v12 }
0x1542   :  { %1933 = vmatmul.msk.f32.vlgmr.msra.gmra.mxu0 %vm98_vm13, %v874_v50 }
0x15bf   :  { %v895_v25 = vpop.f32.mrf.mxu0 }
0x15c0   :  { %v896_v27 = vadd.f32 %v2685_v26, %v895_v25 }
0x15c2   :  { %v899_v57 = vrot.slane %v896_v27, 1  ;;  %v900_v28 = vperm.slane %v896_v27, 0 }
0x15c4   :  { %v901_v58 = vperm.slane %v899_v57, 0  ;;  %v904_v29 = vadd.f32 %v900_v28, %v2348_v16  ;;  %v2729_v57 = vld [vmem:[%s2985_s4 + $0x28] ss:$0 sm:$0xff] }
0x15c6   :  { %v905_v31 = vadd.f32 %v901_v58, %v2352_v20  ;;  %2113 = vtanh.f32 %v904_v29 }
0x15c8   :  { %2115 = vtanh.f32 %v905_v31 }
0x15cc   :  { %v2114_v32 = vpop.eup %2113 }
0x15cd   :  { %v908_v36 = vmul.f32 %v2693_v35, %v2114_v32 }
0x15ce   :  { %v2116_v37 = vpop.eup %2115 }
0x15cf   :  { %v910_v38 = vsel %vm135_vm1, %v908_v36, 0.0  ;;  %v909_v39 = vmul.f32 %v2693_v35, %v2116_v37 }
0x15d0   :  { %911 = vadd.xlane.f32.xlu1 %v910_v38 }
0x15d1   :  { %v913_v40 = vsel %vm135_vm1, %v909_v39, 0.0 }
0x15d2   :  { %914 = vadd.xlane.f32.xlu2 %v913_v40 }
0x1643   :  { %v912_v41 = vpop.xlane.xlu1 %911 }
0x1644   :  { %v916_v43 = vadd.f32 %v912_v41, %v2365_v33 }
0x1645   :  { %v915_v44 = vpop.xlane.xlu2 %914 }
0x1646   :  { %v917_v45 = vadd.f32 %v915_v44, %v2365_v33  ;;  %v920_v46 = vperm.slane %v916_v43, %v2367_v34 }
0x1648   :  { %v921_v47 = vperm.slane %v917_v45, %v2367_v34 }
0x164a   :  { %v922_v48 = vsel %vm154_vm2, %v921_v47, %v920_v46 }
0x164b   :  { %v924_v49 = vsel %vm157_vm3, %v922_v48, -inf }
0x164c   :  { %925 = vmax.xlane.f32.xlu0 %v924_v49 }
0x16bf   :  { %v926_v51 = vpop.xlane.xlu0 %925 }
0x16c0   :  { %v928_v54 = vperm.slane %v926_v51, 0  ;;  %v929_v59 = vperm.slane %v926_v51, 1 }
0x16c2   :  { %v932_v53 = vsub.f32 %v916_v43, %v928_v54  ;;  %v933_v55 = vsub.f32 %v917_v45, %v929_v59 }
0x16c4   :  { %v934_v60 = vmul.f32 1.442695, %v932_v53  ;;  %v936_v61 = vmul.f32 1.442695, %v933_v55 }
0x16c6   :  { %2117 = vpow2.f32 %v934_v60 }
0x16c7   :  { %2119 = vpow2.f32 %v936_v61 }
0x16cc   :  { %v2118_v62 = vpop.eup %2117 }
0x16cd   :  { %v2120_v1 = vpop.eup %2119  ;;  %941 = vperm.xlu1 %1991, %v2118_v62  }
0x16ce   :  { %944 = vperm.xlu2 %1990, %v2120_v1  }
0x16d5   :  { %1993 = vset.pattern.permute.xlu1 %v2377_v52 }
0x16dd   :  { %977 = vperm.xlu1 %1993, %v2025_v56  }
0x16e5   :  { %1994 = vset.pattern.permute.xlu1 %v2206_v42 }
0x1728   :  { %v945_v2 = vpop.permute.xlu2 %944 }
0x1729   :  { %v947_v5 = vperm.slane %v945_v2, %v2367_v34 }
0x173f   :  { %v942_v4 = vpop.permute.xlu1 %941 }
0x1740   :  { %v946_v6 = vperm.slane %v942_v4, %v2367_v34 }
0x1742   :  { %v948_v7 = vsel %vm154_vm2, %v947_v5, %v946_v6 }
0x1743   :  { %v950_v17 = vsel %vm157_vm3, %v948_v7, 0.0 }
0x1744   :  { %951 = vadd.xlane.f32.xlu0 %v950_v17 }
0x174f   :  { %v978_v21 = vpop.permute.xlu1 %977 }
0x1758   :  { %970 = vperm.xlu0 %1992, %v2026_v18  }
0x1760   :  { %1995 = vset.pattern.permute.xlu0 %v2206_v42 }
0x17b7   :  { %v952_v8 = vpop.xlane.xlu0 %951 }
0x17b8   :  { %2121 = vrcp.f32 %v952_v8 }
0x17be   :  { %v2122_v19 = vpop.eup %2121 }
0x17bf   :  { %v956_v9 = vperm.slane %v2122_v19, 1  ;;  %v955_v14 = vperm.slane %v2122_v19, 0 }
0x17c1   :  { %v960_v22 = vmul.f32 %v2120_v1, %v956_v9  ;;  %v959_v63 = vmul.f32 %v2118_v62, %v955_v14 }
0x17c3   :  { %v982_v30 = vmul.f32 %v978_v21, %v960_v22 }
0x17c5   :  { %989 = vperm.xlu1 %1994, %v982_v30  }
0x17ca   :  { %v971_v0 = vpop.permute.xlu0 %970 }
0x17cb   :  { %v981_v3 = vmul.f32 %v971_v0, %v959_v63 }
0x17cd   :  { %986 = vperm.xlu2 %1990, %v981_v3   ;;  %1996 = vset.pattern.permute.xlu1 %v2377_v52 }
0x17d5   :  { %995 = vrot.lane.b32.xlu2 %v2674_v24, %s2209_s10 }
0x1827   :  { %v987_v10 = vpop.permute.xlu2 %986 }
0x1828   :  { %v991_v13 = vperm.slane %v987_v10, %v2367_v34 }
0x182f   :  { %v996_v23 = vpop.permute.xlu2 %995 }
0x1837   :  { %v990_v11 = vpop.permute.xlu1 %989 }
0x1838   :  { %v992_v15 = vperm.slane %v990_v11, %v2367_v34 }
0x183a   :  { %v993_v50 = vsel %vm154_vm2, %v992_v15, %v991_v13 }
0x183b   :  { %v998_v25 = vsel %vm229_vm5, %v993_v50, %v996_v23 }
0x183c   :  { %1935 = vmatmul.msk.f32.vlgmr.msrb.gmra.mxu2 %vm232_vm6, %v998_v25 }
0x18bf   :  { %v1019_v27 = vpop.f32.mrf.mxu2 }
0x18c0   :  { %v1020_v24 = vadd.f32 %v2729_v57, %v1019_v27 }
0x18c2   :  { %2123 = vtanh.f32 %v1020_v24  ;;  %v1936_v58 = vmul.f32 -1.442695, %v1020_v24 }
0x18c4   :  { %2125 = vpow2.f32 %v1936_v58 }
0x18c8   :  { %v2124_v28 = vpop.eup %2123 }
0x18c9   :  { %1044 = vrot.lane.b32.xlu1 %v2124_v28, %s2207_s26  ;;  %v2028_v28 = vld [vmem:[%s2984_s0 + $0xd] ss:$0 sm:$0xff] }
0x18ca   :  { %v2126_v29 = vpop.eup %2125 }
0x18cb   :  { %v1025_v31 = vadd.f32 1.0, %v2126_v29 }
0x18cd   :  { %2127 = vrcp.f32 %v1025_v31  ;;  %v1037_v40 = vand.u32 2147483648, %v1025_v31  ;;  %vm1031_vm9 = vweird.f32 %v1025_v31  ;;  %v1035_v41 = vand.u32 2147483647, %v1025_v31 }
0x18cf   :  { %v1038_v44 = vor.u32 1.1754944e-38, %v1037_v40  ;;  %vm1036_vm14 = vcmp.eq.f32.partialorder %v1035_v41, 8.507059e+37 }
0x18d3   :  { %v2128_v32 = vpop.eup %2127 }
0x18d4   :  { %v1027_v36 = vmul.f32 %v2128_v32, %v1025_v31  ;;  %vm1032_vm8 = vweird.f32 %v2128_v32 }
0x18d5   :  { %vm1033_vm10 = vmor %vm1031_vm9, %vm1032_vm8 }
0x18d6   :  { %v1028_v37 = vsub.f32 1.0, %v1027_v36 }
0x18d8   :  { %v1029_v38 = vmul.f32 %v2128_v32, %v1028_v37  ;;  %v2027_v37 = vld [vmem:[%s2984_s0 + $0x5] ss:$0 sm:$0xff] }
0x18da   :  { %v1030_v39 = vadd.f32 %v2128_v32, %v1029_v38 }
0x18dc   :  { %v1034_v43 = vsel %vm1033_vm10, %v2128_v32, %v1030_v39 }
0x18dd   :  { %v1039_v46 = vsel %vm1036_vm14, %v1038_v44, %v1034_v43 }
0x18de   :  { %v1042_v48 = vmul.f32 %v1039_v46, %v2670_v12 }
0x193b   :  { %v1045_v45 = vpop.permute.xlu1 %1044 }
0x193c   :  { %v1047_v47 = vmul.f32 %v1045_v45, %v1039_v46 }
0x193e   :  { %1049 = vrot.lane.b32.xlu2 %v1047_v47, %s2208_s27 }
0x1998   :  { %v1050_v49 = vpop.permute.xlu2 %1049 }
0x1999   :  { %v2735_v51 = vadd.f32 %v1050_v49, %v1042_v48 }
0x199b   :  { %2129 = vtanh.f32 %v2735_v51 }
0x19a1   :  { %v2130_v54 = vpop.eup %2129 }
0x19a2   :  { %1055 = vrot.lane.b32.xlu1 %v2130_v54, %s2207_s26 }
0x1a14   :  { %v1056_v59 = vpop.permute.xlu1 %1055 }
0x1a15   :  { %v1058_v53 = vmul.f32 %v1056_v59, %v1039_v46 }
0x1a17   :  { %1060 = vrot.lane.b32.xlu2 %v1058_v53, %s2208_s27 }
0x1a71   :  { %v1061_v55 = vpop.permute.xlu2 %1060 }
0x1a72   :  { %1063 = vst.msk [vmem:[#allocation2 + $0x8] sm:$0x3] %vm301_vm11, %v1061_v55  ;;  %v1064_v60 = vsel %vm303_vm12, %v1061_v55, %v2735_v51 }
0x1a73   :  { %1937 = vmatmul.msk.f32.vlgmr.msrb.gmra.mxu3 %vm98_vm13, %v1064_v60 }
0x1af6   :  { %v1085_v12 = vpop.f32.mrf.mxu3 }
0x1af7   :  { %v1086_v61 = vadd.f32 %v2685_v26, %v1085_v12 }
0x1af9   :  { %v1089_v62 = vrot.slane %v1086_v61, 1  ;;  %v1090_v1 = vperm.slane %v1086_v61, 0 }
0x1afb   :  { %v1091_v56 = vperm.slane %v1089_v62, 0  ;;  %v1094_v2 = vadd.f32 %v1090_v1, %v2348_v16 }
0x1afd   :  { %v1095_v4 = vadd.f32 %v1091_v56, %v2352_v20  ;;  %2131 = vtanh.f32 %v1094_v2 }
0x1aff   :  { %2133 = vtanh.f32 %v1095_v4 }
0x1b03   :  { %v2132_v5 = vpop.eup %2131 }
0x1b04   :  { %v1098_v6 = vmul.f32 %v2693_v35, %v2132_v5 }
0x1b05   :  { %v2134_v7 = vpop.eup %2133 }
0x1b06   :  { %v1100_v17 = vsel %vm135_vm1, %v1098_v6, 0.0  ;;  %v1099_v18 = vmul.f32 %v2693_v35, %v2134_v7 }
0x1b07   :  { %1101 = vadd.xlane.f32.xlu0 %v1100_v17 }
0x1b08   :  { %v1103_v8 = vsel %vm135_vm1, %v1099_v18, 0.0 }
0x1b09   :  { %1104 = vadd.xlane.f32.xlu1 %v1103_v8 }
0x1b7a   :  { %v1102_v19 = vpop.xlane.xlu0 %1101 }
0x1b7b   :  { %v1106_v9 = vadd.f32 %v1102_v19, %v2365_v33 }
0x1b7c   :  { %v1105_v21 = vpop.xlane.xlu1 %1104 }
0x1b7d   :  { %v1107_v22 = vadd.f32 %v1105_v21, %v2365_v33  ;;  %v1110_v30 = vperm.slane %v1106_v9, %v2367_v34 }
0x1b7f   :  { %v1111_v14 = vperm.slane %v1107_v22, %v2367_v34 }
0x1b81   :  { %v1112_v63 = vsel %vm154_vm2, %v1111_v14, %v1110_v30 }
0x1b82   :  { %v1114_v0 = vsel %vm157_vm3, %v1112_v63, -inf }
0x1b83   :  { %1115 = vmax.xlane.f32.xlu2 %v1114_v0 }
0x1bf6   :  { %v1116_v3 = vpop.xlane.xlu2 %1115 }
0x1bf7   :  { %v1118_v10 = vperm.slane %v1116_v3, 0  ;;  %v1119_v11 = vperm.slane %v1116_v3, 1 }
0x1bf9   :  { %v1122_v13 = vsub.f32 %v1106_v9, %v1118_v10  ;;  %v1123_v15 = vsub.f32 %v1107_v22, %v1119_v11 }
0x1bfb   :  { %v1124_v23 = vmul.f32 1.442695, %v1122_v13  ;;  %v1126_v50 = vmul.f32 1.442695, %v1123_v15 }
0x1bfd   :  { %2135 = vpow2.f32 %v1124_v23 }
0x1bfe   :  { %2137 = vpow2.f32 %v1126_v50 }
0x1c03   :  { %v2136_v25 = vpop.eup %2135 }
0x1c04   :  { %v2138_v27 = vpop.eup %2137  ;;  %1131 = vperm.xlu0 %1995, %v2136_v25  }
0x1c05   :  { %1134 = vperm.xlu2 %1990, %v2138_v27  }
0x1c0c   :  { %1185 = vrot.lane.b32.xlu0 %v1058_v53, %s2209_s10 }
0x1c0d   :  { %1997 = vset.pattern.permute.xlu2 %v2377_v52 }
0x1c15   :  { %1167 = vperm.xlu2 %1997, %v2028_v28  }
0x1c1d   :  { %1998 = vset.pattern.permute.xlu2 %v2206_v42 }
0x1c5f   :  { %v1135_v24 = vpop.permute.xlu2 %1134 }
0x1c60   :  { %v1137_v29 = vperm.slane %v1135_v24, %v2367_v34 }
0x1c6f   :  { %v1168_v41 = vpop.permute.xlu2 %1167 }
0x1c76   :  { %v1132_v58 = vpop.permute.xlu0 %1131 }
0x1c77   :  { %v1136_v31 = vperm.slane %v1132_v58, %v2367_v34 }
0x1c79   :  { %v1138_v32 = vsel %vm154_vm2, %v1137_v29, %v1136_v31 }
0x1c7a   :  { %v1140_v36 = vsel %vm157_vm3, %v1138_v32, 0.0 }
0x1c7b   :  { %1141 = vadd.xlane.f32.xlu1 %v1140_v36 }
0x1c7e   :  { %v1186_v55 = vpop.permute.xlu0 %1185 }
0x1c94   :  { %1160 = vperm.xlu1 %1996, %v2027_v37  }
0x1c9c   :  { %1999 = vset.pattern.permute.xlu1 %v2206_v42 }
0x1cee   :  { %v1142_v38 = vpop.xlane.xlu1 %1141 }
0x1cef   :  { %2139 = vrcp.f32 %v1142_v38 }
0x1cf5   :  { %v2140_v39 = vpop.eup %2139 }
0x1cf6   :  { %v1146_v40 = vperm.slane %v2140_v39, 1  ;;  %v1145_v45 = vperm.slane %v2140_v39, 0 }
0x1cf8   :  { %v1150_v43 = vmul.f32 %v2138_v27, %v1146_v40  ;;  %v1149_v46 = vmul.f32 %v2136_v25, %v1145_v45 }
0x1cfa   :  { %v1172_v44 = vmul.f32 %v1168_v41, %v1150_v43 }
0x1cfc   :  { %1179 = vperm.xlu1 %1999, %v1172_v44  }
0x1d06   :  { %v1161_v47 = vpop.permute.xlu1 %1160 }
0x1d07   :  { %v1171_v48 = vmul.f32 %v1161_v47, %v1149_v46 }
0x1d09   :  { %1176 = vperm.xlu2 %1998, %v1171_v48  }
0x1d11   :  { %2000 = vset.pattern.permute.xlu2 %v2377_v52 }
0x1d63   :  { %v1177_v49 = vpop.permute.xlu2 %1176 }
0x1d64   :  { %v1181_v59 = vperm.slane %v1177_v49, %v2367_v34 }
0x1d6e   :  { %v1180_v54 = vpop.permute.xlu1 %1179 }
0x1d6f   :  { %v1182_v53 = vperm.slane %v1180_v54, %v2367_v34 }
0x1d71   :  { %v1183_v60 = vsel %vm154_vm2, %v1182_v53, %v1181_v59 }
0x1d72   :  { %v1188_v12 = vsel %vm229_vm5, %v1183_v60, %v1186_v55 }
0x1d73   :  { %1939 = vmatmul.msk.f32.vlgmr.msrb.gmra.mxu1 %vm232_vm6, %v1188_v12 }
0x1df0   :  { %v1209_v61 = vpop.f32.mrf.mxu1 }
0x1df1   :  { %v1210_v62 = vadd.f32 %v2729_v57, %v1209_v61 }
0x1df3   :  { %2141 = vtanh.f32 %v1210_v62  ;;  %v1940_v56 = vmul.f32 -1.442695, %v1210_v62  ;;  %v2029_v62 = vld [vmem:[%s2984_s0 + $0xe] ss:$0 sm:$0xff] }
0x1df5   :  { %2143 = vpow2.f32 %v1940_v56 }
0x1df9   :  { %v2142_v1 = vpop.eup %2141 }
0x1dfa   :  { %1234 = vrot.lane.b32.xlu2 %v2142_v1, %s2207_s26 }
0x1dfb   :  { %v2144_v2 = vpop.eup %2143 }
0x1dfc   :  { %v1215_v4 = vadd.f32 1.0, %v2144_v2 }
0x1dfe   :  { %2145 = vrcp.f32 %v1215_v4  ;;  %v1227_v8 = vand.u32 2147483648, %v1215_v4  ;;  %vm1221_vm15 = vweird.f32 %v1215_v4  ;;  %v1225_v19 = vand.u32 2147483647, %v1215_v4 }
0x1e00   :  { %v1228_v21 = vor.u32 1.1754944e-38, %v1227_v8  ;;  %vm1226_vm7 = vcmp.eq.f32.partialorder %v1225_v19, 8.507059e+37 }
0x1e04   :  { %v2146_v5 = vpop.eup %2145 }
0x1e05   :  { %v1217_v6 = vmul.f32 %v2146_v5, %v1215_v4  ;;  %vm1222_vm4 = vweird.f32 %v2146_v5 }
0x1e06   :  { %vm1223_vm0 = vmor %vm1221_vm15, %vm1222_vm4  ;;  %vm1677_vm4 = vcmask 257026   ;;  %vm1685_vm15 = vcmask 261126  }
0x1e07   :  { %v1218_v7 = vsub.f32 1.0, %v1217_v6 }
0x1e09   :  { %v1219_v17 = vmul.f32 %v2146_v5, %v1218_v7  ;;  %v2030_v7 = vld [vmem:[%s2984_s0 + $0x6] ss:$0 sm:$0xff] }
0x1e0b   :  { %v1220_v18 = vadd.f32 %v2146_v5, %v1219_v17 }
0x1e0d   :  { %v1224_v9 = vsel %vm1223_vm0, %v2146_v5, %v1220_v18  ;;  %vm1681_vm0 = vcmask 259076  }
0x1e0e   :  { %v1229_v30 = vsel %vm1226_vm7, %v1228_v21, %v1224_v9  ;;  %vm1719_vm7 = vcmask 7168  }
0x1e0f   :  { %v1232_v63 = vmul.f32 %v1229_v30, %v2735_v51 }
0x1e54   :  { %v1235_v22 = vpop.permute.xlu2 %1234 }
0x1e55   :  { %v1237_v14 = vmul.f32 %v1235_v22, %v1229_v30 }
0x1e57   :  { %1239 = vrot.lane.b32.xlu1 %v1237_v14, %s2208_s27 }
0x1ec9   :  { %v1240_v0 = vpop.permute.xlu1 %1239 }
0x1eca   :  { %v2781_v3 = vadd.f32 %v1240_v0, %v1232_v63  ;;  %v50_v0 = vld [vmem:[%s2983_s5 + $0x18] sm:$0xff] }
0x1ecb   :  { %1655 = vmatpush.msra.mxu0 %v50_v0 }
0x1ecc   :  { %2147 = vtanh.f32 %v2781_v3 }
0x1ed2   :  { %v2148_v10 = vpop.eup %2147 }
0x1ed3   :  { %1245 = vrot.lane.b32.xlu0 %v2148_v10, %s2207_s26  ;;  %v49_v10 = vld [vmem:[%s2983_s5 + $0x10] sm:$0xff] }
0x1ed4   :  { %1656 = vmatpush.msra.mxu0 %v49_v10 }
0x1f45   :  { %v1246_v11 = vpop.permute.xlu0 %1245 }
0x1f46   :  { %v1248_v13 = vmul.f32 %v1246_v11, %v1229_v30  ;;  %v48_v11 = vld [vmem:[%s2983_s5 + $0x8] sm:$0xff] }
0x1f47   :  { %1657 = vmatpush.msra.mxu0 %v48_v11 }
0x1f48   :  { %1250 = vrot.lane.b32.xlu2 %v1248_v13, %s2208_s27 }
0x1fa2   :  { %v1251_v15 = vpop.permute.xlu2 %1250 }
0x1fa3   :  { %1253 = vst.msk [vmem:[#allocation2 + $0xa] sm:$0x3] %vm301_vm11, %v1251_v15  ;;  %v1254_v23 = vsel %vm303_vm12, %v1251_v15, %v2781_v3 }
0x1fa4   :  { %1941 = vmatmul.msk.f32.vlgmr.msra.gmra.mxu2 %vm98_vm13, %v1254_v23 }
0x2027   :  { %v1275_v51 = vpop.f32.mrf.mxu2 }
0x2028   :  { %v1276_v50 = vadd.f32 %v2685_v26, %v1275_v51 }
0x202a   :  { %v1279_v25 = vrot.slane %v1276_v50, 1  ;;  %v1280_v27 = vperm.slane %v1276_v50, 0 }
0x202c   :  { %v1281_v24 = vperm.slane %v1279_v25, 0  ;;  %v1284_v28 = vadd.f32 %v1280_v27, %v2348_v16 }
0x202e   :  { %v1285_v58 = vadd.f32 %v1281_v24, %v2352_v20  ;;  %2149 = vtanh.f32 %v1284_v28  ;;  %v2833_v28 = vld [vmem:[#allocation2] sm:$0xff] }
0x2030   :  { %2151 = vtanh.f32 %v1285_v58 }
0x2034   :  { %v2150_v29 = vpop.eup %2149 }
0x2035   :  { %v1288_v31 = vmul.f32 %v2693_v35, %v2150_v29 }
0x2036   :  { %v2152_v32 = vpop.eup %2151 }
0x2037   :  { %v1290_v36 = vsel %vm135_vm1, %v1288_v31, 0.0  ;;  %v1289_v37 = vmul.f32 %v2693_v35, %v2152_v32 }
0x2038   :  { %1291 = vadd.xlane.f32.xlu1 %v1290_v36 }
0x2039   :  { %v1293_v38 = vsel %vm135_vm1, %v1289_v37, 0.0 }
0x203a   :  { %1294 = vadd.xlane.f32.xlu0 %v1293_v38 }
0x20ab   :  { %v1292_v39 = vpop.xlane.xlu1 %1291 }
0x20ac   :  { %v1296_v40 = vadd.f32 %v1292_v39, %v2365_v33 }
0x20ad   :  { %v1295_v41 = vpop.xlane.xlu0 %1294 }
0x20ae   :  { %v1297_v43 = vadd.f32 %v1295_v41, %v2365_v33  ;;  %v1300_v44 = vperm.slane %v1296_v40, %v2367_v34 }
0x20b0   :  { %v1301_v45 = vperm.slane %v1297_v43, %v2367_v34 }
0x20b2   :  { %v1302_v46 = vsel %vm154_vm2, %v1301_v45, %v1300_v44 }
0x20b3   :  { %v1304_v47 = vsel %vm157_vm3, %v1302_v46, -inf }
0x20b4   :  { %1305 = vmax.xlane.f32.xlu2 %v1304_v47 }
0x2127   :  { %v1306_v48 = vpop.xlane.xlu2 %1305 }
0x2128   :  { %v1308_v49 = vperm.slane %v1306_v48, 0  ;;  %v1309_v54 = vperm.slane %v1306_v48, 1 }
0x212a   :  { %v1312_v59 = vsub.f32 %v1296_v40, %v1308_v49  ;;  %v1313_v53 = vsub.f32 %v1297_v43, %v1309_v54 }
0x212c   :  { %v1314_v55 = vmul.f32 1.442695, %v1312_v59  ;;  %v1316_v60 = vmul.f32 1.442695, %v1313_v53 }
0x212e   :  { %2153 = vpow2.f32 %v1314_v55 }
0x212f   :  { %2155 = vpow2.f32 %v1316_v60 }
0x2134   :  { %v2154_v12 = vpop.eup %2153 }
0x2135   :  { %v2156_v61 = vpop.eup %2155  ;;  %1321 = vperm.xlu1 %1999, %v2154_v12  }
0x2136   :  { %1324 = vperm.xlu0 %1995, %v2156_v61  }
0x213e   :  { %2001 = vset.pattern.permute.xlu0 %v2377_v52 }
0x2146   :  { %1357 = vperm.xlu0 %2001, %v2029_v62  }
0x21a7   :  { %v1322_v1 = vpop.permute.xlu1 %1321 }
0x21a8   :  { %v1325_v56 = vpop.permute.xlu0 %1324  ;;  %v1326_v2 = vperm.slane %v1322_v1, %v2367_v34 }
0x21a9   :  { %v1327_v4 = vperm.slane %v1325_v56, %v2367_v34 }
0x21ab   :  { %v1328_v5 = vsel %vm154_vm2, %v1327_v4, %v1326_v2 }
0x21ac   :  { %v1330_v6 = vsel %vm157_vm3, %v1328_v5, 0.0 }
0x21ad   :  { %1331 = vadd.xlane.f32.xlu2 %v1330_v6 }
0x21b8   :  { %v1358_v14 = vpop.permute.xlu0 %1357 }
0x21c5   :  { %1350 = vperm.xlu2 %2000, %v2030_v7  }
0x21cd   :  { %1375 = vrot.lane.b32.xlu2 %v1248_v13, %s2209_s10  ;;  %v47_v13 = vld [vmem:[%s2983_s5] sm:$0xff] }
0x21ce   :  { %2002 = vset.pattern.permute.xlu2 %v2206_v42  ;;  %1658 = vmatpush.msra.mxu0 %v47_v13 }
0x2220   :  { %v1332_v17 = vpop.xlane.xlu2 %1331 }
0x2221   :  { %2157 = vrcp.f32 %v1332_v17 }
0x2227   :  { %v2158_v18 = vpop.eup %2157 }
0x2228   :  { %v1335_v8 = vperm.slane %v2158_v18, 0  ;;  %v1351_v9 = vpop.permute.xlu2 %1350  ;;  %v1336_v22 = vperm.slane %v2158_v18, 1 }
0x222a   :  { %v1339_v19 = vmul.f32 %v2154_v12, %v1335_v8  ;;  %v1340_v30 = vmul.f32 %v2156_v61, %v1336_v22 }
0x222c   :  { %v1361_v21 = vmul.f32 %v1351_v9, %v1339_v19  ;;  %v1362_v63 = vmul.f32 %v1358_v14, %v1340_v30 }
0x222e   :  { %1366 = vperm.xlu1 %1999, %v1361_v21  }
0x2230   :  { %v1376_v25 = vpop.permute.xlu2 %1375 }
0x2236   :  { %1369 = vperm.xlu1 %1999, %v1362_v63  }
0x22a0   :  { %v1367_v15 = vpop.permute.xlu1 %1366 }
0x22a1   :  { %v1371_v51 = vperm.slane %v1367_v15, %v2367_v34 }
0x22a8   :  { %v1370_v23 = vpop.permute.xlu1 %1369 }
0x22a9   :  { %v1372_v50 = vperm.slane %v1370_v23, %v2367_v34 }
0x22ab   :  { %v1373_v27 = vsel %vm154_vm2, %v1372_v50, %v1371_v51 }
0x22ac   :  { %v1378_v24 = vsel %vm229_vm5, %v1373_v27, %v1376_v25  ;;  %v2033_v25 = vld [vmem:[%s2984_s0 + $0xf] ss:$0 sm:$0xff] }
0x22ad   :  { %1943 = vmatmul.msk.f32.vlgmr.msrb.gmra.mxu0 %vm232_vm6, %v1378_v24 }
0x22b5   :  { %1949 = vmatmul.msk.f32.vlgmr.msra.gmra.mxu0 %vm303_vm12, %v2833_v28 }
0x232a   :  { %v1399_v58 = vpop.f32.mrf.mxu0 }
0x232b   :  { %v1400_v29 = vadd.f32 %v2729_v57, %v1399_v58 }
0x232d   :  { %2159 = vtanh.f32 %v1400_v29  ;;  %v1944_v32 = vmul.f32 -1.442695, %v1400_v29 }
0x232f   :  { %2161 = vpow2.f32 %v1944_v32 }
0x2333   :  { %v2160_v31 = vpop.eup %2159 }
0x2334   :  { %1424 = vrot.lane.b32.xlu0 %v2160_v31, %s2207_s26 }
0x2335   :  { %v2162_v36 = vpop.eup %2161 }
0x2336   :  { %v1405_v37 = vadd.f32 1.0, %v2162_v36 }
0x2338   :  { %2163 = vrcp.f32 %v1405_v37  ;;  %v1417_v44 = vand.u32 2147483648, %v1405_v37  ;;  %vm1411_vm9 = vweird.f32 %v1405_v37  ;;  %v1415_v45 = vand.u32 2147483647, %v1405_v37 }
0x233a   :  { %v1418_v47 = vor.u32 1.1754944e-38, %v1417_v44  ;;  %vm1416_vm14 = vcmp.eq.f32.partialorder %v1415_v45, 8.507059e+37 }
0x233e   :  { %v2164_v38 = vpop.eup %2163 }
0x233f   :  { %v1407_v39 = vmul.f32 %v2164_v38, %v1405_v37  ;;  %vm1412_vm8 = vweird.f32 %v2164_v38 }
0x2340   :  { %vm1413_vm10 = vmor %vm1411_vm9, %vm1412_vm8  ;;  %vm1721_vm8 = vcmask 15360   ;;  %vm1723_vm9 = vcmask 23552  }
0x2341   :  { %v1408_v40 = vsub.f32 1.0, %v1407_v39 }
0x2343   :  { %v1409_v41 = vmul.f32 %v2164_v38, %v1408_v40 }
0x2345   :  { %v1410_v43 = vadd.f32 %v2164_v38, %v1409_v41 }
0x2347   :  { %v1414_v46 = vsel %vm1413_vm10, %v2164_v38, %v1410_v43  ;;  %vm1726_vm10 = vcmask 39936  }
0x2348   :  { %v1419_v49 = vsel %vm1416_vm14, %v1418_v47, %v1414_v46  ;;  %vm1728_vm14 = vcmask 48128  }
0x2349   :  { %v1422_v59 = vmul.f32 %v1419_v49, %v2781_v3 }
0x23a6   :  { %v1425_v48 = vpop.permute.xlu0 %1424 }
0x23a7   :  { %v1427_v54 = vmul.f32 %v1425_v48, %v1419_v49 }
0x23a9   :  { %1429 = vrot.lane.b32.xlu1 %v1427_v54, %s2208_s27 }
0x241b   :  { %v1430_v53 = vpop.permute.xlu1 %1429 }
0x241c   :  { %v2841_v55 = vadd.f32 %v1430_v53, %v1422_v59 }
0x241e   :  { %2165 = vtanh.f32 %v2841_v55 }
0x2424   :  { %v2166_v60 = vpop.eup %2165 }
0x2425   :  { %1435 = vrot.lane.b32.xlu2 %v2166_v60, %s2207_s26 }
0x247f   :  { %v1436_v12 = vpop.permute.xlu2 %1435 }
0x2480   :  { %v1438_v61 = vmul.f32 %v1436_v12, %v1419_v49 }
0x2482   :  { %1440 = vrot.lane.b32.xlu0 %v1438_v61, %s2208_s27 }
0x24f4   :  { %v1441_v62 = vpop.permute.xlu0 %1440 }
0x24f5   :  { %1443 = vst.msk [vmem:[#allocation2 + $0xc] sm:$0x3] %vm301_vm11, %v1441_v62  ;;  %v1444_v1 = vsel %vm303_vm12, %v1441_v62, %v2841_v55 }
0x24f6   :  { %1945 = vmatmul.msk.f32.vlgmr.msra.gmra.mxu1 %vm98_vm13, %v1444_v1 }
0x2573   :  { %v1465_v3 = vpop.f32.mrf.mxu1 }
0x2574   :  { %v1466_v56 = vadd.f32 %v2685_v26, %v1465_v3 }
0x2576   :  { %v1469_v2 = vrot.slane %v1466_v56, 1  ;;  %v1470_v4 = vperm.slane %v1466_v56, 0 }
0x2578   :  { %v1471_v5 = vperm.slane %v1469_v2, 0  ;;  %v1474_v6 = vadd.f32 %v1470_v4, %v2348_v16 }
0x257a   :  { %v1475_v7 = vadd.f32 %v1471_v5, %v2352_v20  ;;  %2167 = vtanh.f32 %v1474_v6 }
0x257c   :  { %2169 = vtanh.f32 %v1475_v7 }
0x2580   :  { %v2168_v17 = vpop.eup %2167 }
0x2581   :  { %v1478_v18 = vmul.f32 %v2693_v35, %v2168_v17 }
0x2582   :  { %v2170_v8 = vpop.eup %2169 }
0x2583   :  { %v1480_v19 = vsel %vm135_vm1, %v1478_v18, 0.0  ;;  %v1479_v9 = vmul.f32 %v2693_v35, %v2170_v8 }
0x2584   :  { %1481 = vadd.xlane.f32.xlu1 %v1480_v19 }
0x2585   :  { %v1483_v26 = vsel %vm135_vm1, %v1479_v9, 0.0 }
0x2586   :  { %1484 = vadd.xlane.f32.xlu2 %v1483_v26  ;;  %v2887_v26 = vld [vmem:[%s2983_s5 + $0x40] sm:$0x1] }
0x25f7   :  { %v1482_v21 = vpop.xlane.xlu1 %1481 }
0x25f8   :  { %v1486_v22 = vadd.f32 %v1482_v21, %v2365_v33  ;;  %v2031_v21 = vld [vmem:[%s2983_s5 + $0x28] ss:$0 sm:$0xff] }
0x25f9   :  { %v1485_v16 = vpop.xlane.xlu2 %1484 }
0x25fa   :  { %v1487_v20 = vadd.f32 %v1485_v16, %v2365_v33  ;;  %v1490_v30 = vperm.slane %v1486_v22, %v2367_v34 }
0x25fc   :  { %v1491_v14 = vperm.slane %v1487_v20, %v2367_v34 }
0x25fe   :  { %v1492_v63 = vsel %vm154_vm2, %v1491_v14, %v1490_v30  ;;  %v2035_v14 = vld [vmem:[%s2983_s5 + $0x30] ss:$0 sm:$0xff] }
0x25ff   :  { %v1494_v0 = vsel %vm157_vm3, %v1492_v63, -inf }
0x2600   :  { %1495 = vmax.xlane.f32.xlu0 %v1494_v0 }
0x2673   :  { %v1496_v35 = vpop.xlane.xlu0 %1495 }
0x2674   :  { %v1498_v10 = vperm.slane %v1496_v35, 0  ;;  %v1499_v11 = vperm.slane %v1496_v35, 1 }
0x2676   :  { %v1502_v13 = vsub.f32 %v1486_v22, %v1498_v10  ;;  %v1503_v15 = vsub.f32 %v1487_v20, %v1499_v11  ;;  %v1660_v22 = vpop.f32.mrf.mxu0  ;;  %v2032_v20 = vld [vmem:[%s2983_s5 + $0x20] ss:$0 sm:$0xff] }
0x2677   :  { %v1661_v16 = vadd.f32 %v2031_v21, %v1660_v22 }
0x2678   :  { %v1504_v23 = vmul.f32 1.442695, %v1502_v13  ;;  %v1506_v51 = vmul.f32 1.442695, %v1503_v15 }
0x2679   :  { %v1667_v30 = vadd.f32 %v2032_v20, %v1661_v16 }
0x267a   :  { %2171 = vpow2.f32 %v1504_v23 }
0x267b   :  { %2173 = vpow2.f32 %v1506_v51 }
0x2680   :  { %v2172_v50 = vpop.eup %2171 }
0x2681   :  { %v2174_v33 = vpop.eup %2173  ;;  %1511 = vperm.xlu1 %1999, %v2172_v50  }
0x2682   :  { %1514 = vperm.xlu2 %2002, %v2174_v33  }
0x2689   :  { %2003 = vset.pattern.permute.xlu1 %v2377_v52  ;;  %v2034_v52 = vld [vmem:[%s2984_s0 + $0x7] ss:$0 sm:$0xff] }
0x2691   :  { %1547 = vperm.xlu1 %2003, %v2033_v25  }
0x2699   :  { %1565 = vrot.lane.b32.xlu1 %v1438_v61, %s2209_s10 }
0x26dc   :  { %v1515_v27 = vpop.permute.xlu2 %1514 }
0x26dd   :  { %v1517_v58 = vperm.slane %v1515_v27, %v2367_v34 }
0x26f3   :  { %v1512_v24 = vpop.permute.xlu1 %1511 }
0x26f4   :  { %v1516_v29 = vperm.slane %v1512_v24, %v2367_v34 }
0x26f6   :  { %v1518_v31 = vsel %vm154_vm2, %v1517_v58, %v1516_v29 }
0x26f7   :  { %v1520_v32 = vsel %vm157_vm3, %v1518_v31, 0.0 }
0x26f8   :  { %1521 = vadd.xlane.f32.xlu0 %v1520_v32 }
0x2703   :  { %v1548_v40 = vpop.permute.xlu1 %1547 }
0x270b   :  { %v1566_v59 = vpop.permute.xlu1 %1565 }
0x270c   :  { %1540 = vperm.xlu0 %2001, %v2034_v52  }
0x2714   :  { %2004 = vset.pattern.permute.xlu0 %v2206_v42 }
0x276b   :  { %v1522_v36 = vpop.xlane.xlu0 %1521 }
0x276c   :  { %2175 = vrcp.f32 %v1522_v36 }
0x2772   :  { %v2176_v37 = vpop.eup %2175 }
0x2773   :  { %v1526_v38 = vperm.slane %v2176_v37, 1  ;;  %v1525_v43 = vperm.slane %v2176_v37, 0 }
0x2775   :  { %v1530_v39 = vmul.f32 %v2174_v33, %v1526_v38  ;;  %v1529_v44 = vmul.f32 %v2172_v50, %v1525_v43 }
0x2777   :  { %v1552_v41 = vmul.f32 %v1548_v40, %v1530_v39 }
0x2779   :  { %1559 = vperm.xlu0 %2004, %v1552_v41  }
0x277e   :  { %v1541_v45 = vpop.permute.xlu0 %1540 }
0x277f   :  { %v1551_v46 = vmul.f32 %v1541_v45, %v1529_v44 }
0x2781   :  { %1556 = vperm.xlu2 %2002, %v1551_v46  }
0x27db   :  { %v1557_v47 = vpop.permute.xlu2 %1556 }
0x27dc   :  { %v1561_v49 = vperm.slane %v1557_v47, %v2367_v34 }
0x27eb   :  { %v1560_v48 = vpop.permute.xlu0 %1559 }
0x27ec   :  { %v1562_v54 = vperm.slane %v1560_v48, %v2367_v34 }
0x27ee   :  { %v1563_v53 = vsel %vm154_vm2, %v1562_v54, %v1561_v49 }
0x27ef   :  { %v1568_v60 = vsel %vm229_vm5, %v1563_v53, %v1566_v59 }
0x27f0   :  { %1947 = vmatmul.msk.f32.vlgmr.msra.gmra.mxu3 %vm232_vm6, %v1568_v60 }
0x2873   :  { %v1589_v12 = vpop.f32.mrf.mxu3 }
0x2874   :  { %v1590_v61 = vadd.f32 %v2729_v57, %v1589_v12 }
0x2876   :  { %2177 = vtanh.f32 %v1590_v61  ;;  %v1948_v1 = vmul.f32 -1.442695, %v1590_v61 }
0x2878   :  { %2179 = vpow2.f32 %v1948_v1 }
0x287c   :  { %v2178_v62 = vpop.eup %2177 }
0x287d   :  { %1614 = vrot.lane.b32.xlu2 %v2178_v62, %s2207_s26 }
0x287e   :  { %v2180_v3 = vpop.eup %2179 }
0x287f   :  { %v1595_v56 = vadd.f32 1.0, %v2180_v3 }
0x2881   :  { %2181 = vrcp.f32 %v1595_v56  ;;  %v1607_v7 = vand.u32 2147483648, %v1595_v56  ;;  %vm1601_vm2 = vweird.f32 %v1595_v56  ;;  %v1605_v17 = vand.u32 2147483647, %v1595_v56 }
0x2882   :  { %2183 = vtanh.f32 %v1667_v30  ;;  %v2214_v30 = vmov 4  }
0x2883   :  { %v1608_v18 = vor.u32 1.1754944e-38, %v1607_v7  ;;  %vm1606_vm6 = vcmp.eq.f32.partialorder %v1605_v17, 8.507059e+37 }
0x2887   :  { %v2182_v34 = vpop.eup %2181 }
0x2888   :  { %v1597_v2 = vmul.f32 %v2182_v34, %v1595_v56  ;;  %vm1602_vm1 = vweird.f32 %v2182_v34  ;;  %v2184_v63 = vpop.eup %2183 }
0x2889   :  { %vm1603_vm3 = vmor %vm1601_vm2, %vm1602_vm1  ;;  %v1672_v0 = vmul.f32 %v2184_v63, %v2035_v14  ;;  %vm1730_vm1 = vcmask 56320   ;;  %vm1738_vm2 = vcmask 58368   ;;  %v2216_v63 = vmov 7  }
0x288a   :  { %v1598_v4 = vsub.f32 1.0, %v1597_v2 }
0x288b   :  { %v1674_v35 = vsel %vm301_vm11, %v1672_v0, 0.0  ;;  %v1678_v51 = vsel %vm1677_vm4, %v1672_v0, 0.0  ;;  %v1686_v50 = vsel %vm1685_vm15, %v1672_v0, 0.0 }
0x288c   :  { %v1599_v5 = vmul.f32 %v2182_v34, %v1598_v4 }
0x288e   :  { %v1600_v6 = vadd.f32 %v2182_v34, %v1599_v5 }
0x2890   :  { %v1604_v57 = vsel %vm1603_vm3, %v2182_v34, %v1600_v6 }
0x2891   :  { %v1609_v19 = vsel %vm1606_vm6, %v1608_v18, %v1604_v57 }
0x2892   :  { %v1612_v10 = vmul.f32 %v1609_v19, %v2841_v55  ;;  %v1682_v55 = vsel %vm1681_vm0, %v1672_v0, 0.0  ;;  %v2217_v0 = vmov 6  }
0x28d7   :  { %v1615_v8 = vpop.permute.xlu2 %1614 }
0x28d8   :  { %v1617_v9 = vmul.f32 %v1615_v8, %v1609_v19 }
0x28da   :  { %1619 = vrot.lane.b32.xlu1 %v1617_v9, %s2208_s27  ;;  %v2212_v9 = vmov 2  }
0x28db   :  { %2006 = vset.pattern.permute.xlu2 %v2212_v9 }
0x28e2   :  { %1732 = vrot.lane.b32.xlu1 %v2887_v26, %s2210_s25 }
0x290c   :  { %1675 = vadd.xlane.f32.xlu1 %v1674_v35  ;;  %v2916_v35 = vperm.slane %v2887_v26, 0 }
0x294c   :  { %v1620_v11 = vpop.permute.xlu1 %1619 }
0x294d   :  { %v1622_v13 = vadd.f32 %v1620_v11, %v1612_v10 }
0x294f   :  { %2185 = vtanh.f32 %v1622_v13  ;;  %v1761_v13 = vrot.slane %v2833_v28, 2 }
0x2954   :  { %v1733_v15 = vpop.permute.xlu1 %1732 }
0x2955   :  { %v2186_v23 = vpop.eup %2185  ;;  %1955 = vpush %v1733_v15 }
0x2956   :  { %1625 = vrot.lane.b32.xlu2 %v2186_v23, %s2207_s26 }
0x297f   :  { %1679 = vadd.xlane.f32.xlu2 %v1678_v51  ;;  %v1676_v43 = vpop.xlane.xlu1 %1675 }
0x2986   :  { %s1956_s12 = spop %1955 }
0x2987   :  { %1687 = vadd.xlane.f32.xlu2 %v1686_v50  ;;  %v1735_v2 = vstv %s1956_s12  ;;  %v1769_v50 = vrot.slane %v2833_v28, 4 }
0x29b0   :  { %v1626_v33 = vpop.permute.xlu2 %1625 }
0x29b1   :  { %v1628_v25 = vmul.f32 %v1626_v33, %v1609_v19  ;;  %v2211_v19 = vmov 1  }
0x29b2   :  { %2005 = vset.pattern.permute.xlu1 %v2211_v19 }
0x29b3   :  { %1630 = vrot.lane.b32.xlu0 %v1628_v25, %s2208_s27  ;;  %v1777_v25 = vrot.slane %v2833_v28, 6 }
0x29dd   :  { %1683 = vadd.xlane.f32.xlu0 %v1682_v55 }
0x29f2   :  { %v1680_v40 = vpop.xlane.xlu2 %1679 }
0x29f3   :  { %v1702_v44 = vrot.slane %v1680_v40, 2 }
0x29f5   :  { %v1720_v47 = vsel %vm1719_vm7, %v1676_v43, %v1702_v44 }
0x29fa   :  { %v1688_v45 = vpop.xlane.xlu2 %1687 }
0x29fb   :  { %v1708_v54 = vrot.slane %v1688_v45, 6 }
0x2a25   :  { %v1631_v27 = vpop.permute.xlu0 %1630 }
0x2a26   :  { %1633 = vst.msk [vmem:[#allocation2 + $0xe] sm:$0x3] %vm301_vm11, %v1631_v27 }
0x2a2d   :  { %v2906_v24 = vld [vmem:[#allocation2 + $0x8] sm:$0xff] }
0x2a2e   :  { %1950 = vmatmul.msk.f32.gmra.mxu0 %vm303_vm12, %v2906_v24 }
0x2a50   :  { %v1684_v41 = vpop.xlane.xlu0 %1683 }
0x2a51   :  { %v1705_v46 = vrot.slane %v1684_v41, 4  ;;  %v1807_v41 = vrot.slane %v2906_v24, 6 }
0x2a53   :  { %v1722_v48 = vsel %vm1721_vm8, %v1720_v47, %v1705_v46  ;;  %v2036_v46 = vld [vmem:[%s2983_s5 + $0x38] ss:$0 sm:$0xff] }
0x2a54   :  { %v1724_v12 = vsel %vm1723_vm9, %v1722_v48, %v1708_v54  ;;  %v1816_v54 = vld [vmem:[%s2987_s2] sm:$0x3]  ;;  %s2220_s2 = smov 96  }
0x2aab   :  { %v1663_v58 = vpop.f32.mrf.mxu0 }
0x2aac   :  { %v1664_v29 = vadd.f32 %v2031_v21, %v1663_v58 }
0x2aae   :  { %v1668_v31 = vadd.f32 %v2032_v20, %v1664_v29  ;;  %v2213_v20 = vmov 5  }
0x2ab0   :  { %2187 = vtanh.f32 %v1668_v31 }
0x2ab6   :  { %v2188_v32 = vpop.eup %2187 }
0x2ab7   :  { %v1673_v52 = vmul.f32 %v2188_v32, %v2035_v14  ;;  %v2215_v14 = vmov 3  }
0x2ab9   :  { %v1692_v36 = vsel %vm1677_vm4, %v1673_v52, 0.0  ;;  %v1695_v37 = vsel %vm1681_vm0, %v1673_v52, 0.0  ;;  %v1689_v38 = vsel %vm301_vm11, %v1673_v52, 0.0  ;;  %v1698_v39 = vsel %vm1685_vm15, %v1673_v52, 0.0 }
0x2aba   :  { %1693 = vadd.xlane.f32.xlu0 %v1692_v36  ;;  %1696 = vadd.xlane.f32.xlu2 %v1695_v37  ;;  %v1791_v52 = vrot.slane %v2906_v24, 2 }
0x2abb   :  { %1690 = vadd.xlane.f32.xlu1 %v1689_v38  ;;  %v1799_v38 = vrot.slane %v2906_v24, 4 }
0x2ac2   :  { %1699 = vadd.xlane.f32.xlu0 %v1698_v39 }
0x2b2d   :  { %v1694_v49 = vpop.xlane.xlu0 %1693  ;;  %v1697_v60 = vpop.xlane.xlu2 %1696 }
0x2b2e   :  { %v1691_v59 = vpop.xlane.xlu1 %1690  ;;  %v1711_v53 = vrot.slane %v1694_v49, 2  ;;  %v1714_v62 = vrot.slane %v1697_v60, 4 }
0x2b2f   :  { %v1725_v61 = vsel %vm229_vm5, %v1724_v12, %v1691_v59 }
0x2b30   :  { %v1727_v1 = vsel %vm1726_vm10, %v1725_v61, %v1711_v53 }
0x2b31   :  { %v1729_v34 = vsel %vm1728_vm14, %v1727_v1, %v1714_v62  ;;  %v2037_v62 = vld [vmem:[%s2986_s7] ss:$0 sm:$0xff]  ;;  %v2038_v1 = vld [vmem:[%s2986_s7 + $0x8] ss:$0 sm:$0xff] }
0x2b35   :  { %v1700_v3 = vpop.xlane.xlu0 %1699 }
0x2b36   :  { %v1717_v56 = vrot.slane %v1700_v3, 6 }
0x2b38   :  { %v1731_v4 = vsel %vm1730_vm1, %v1729_v34, %v1717_v56 }
0x2b39   :  { %v1737_v5 = vadd.f32 %v1735_v2, %v1731_v4 }
0x2b3b   :  { %v1739_v6 = vsel %vm1738_vm2, %v1737_v5, -inf }
0x2b3c   :  { %1740 = vmax.xlane.f32.xlu1 %v1739_v6 }
0x2baf   :  { %v1741_v7 = vpop.xlane.xlu1 %1740 }
0x2bb0   :  { %v1742_v17 = vsub.f32 %v1737_v5, %v1741_v7 }
0x2bb2   :  { %v1743_v57 = vmul.f32 1.442695, %v1742_v17 }
0x2bb4   :  { %2189 = vpow2.f32 %v1743_v57 }
0x2bba   :  { %v2190_v18 = vpop.eup %2189 }
0x2bbb   :  { %v1745_v8 = vsel %vm1738_vm2, %v2190_v18, 0.0 }
0x2bbc   :  { %1746 = vadd.xlane.f32.xlu2 %v1745_v8 }
0x2c2f   :  { %v1747_v21 = vpop.xlane.xlu2 %1746 }
0x2c30   :  { %2191 = vrcp.f32 %v1747_v21 }
0x2c36   :  { %v2192_v22 = vpop.eup %2191 }
0x2c37   :  { %v1749_v16 = vmul.f32 %v2192_v22, %v2190_v18 }
0x2c39   :  { %1766 = vperm.xlu2 %2006, %v1749_v16   ;;  %1758 = vperm.xlu1 %2005, %v1749_v16  }
0x2c3a   :  { %1752 = vperm.xlu0 %2004, %v1749_v16  }
0x2c41   :  { %2009 = vset.pattern.permute.xlu2 %v2213_v20  ;;  %2008 = vset.pattern.permute.xlu1 %v2214_v30 }
0x2c42   :  { %2007 = vset.pattern.permute.xlu0 %v2215_v14  ;;  %1788 = vperm.xlu2 %2009, %v1749_v16  }
0x2c43   :  { %1782 = vperm.xlu1 %2008, %v1749_v16   ;;  %1774 = vperm.xlu0 %2007, %v1749_v16  }
0x2c4a   :  { %2011 = vset.pattern.permute.xlu2 %v2216_v63  ;;  %v63_v63 = vld [vmem:[%s2988_s6 + $0x38] sm:$0xff] }
0x2c4b   :  { %2010 = vset.pattern.permute.xlu1 %v2217_v0  ;;  %1804 = vperm.xlu2 %2011, %v1749_v16   ;;  %v62_v0 = vld [vmem:[%s2988_s6 + $0x30] sm:$0xff] }
0x2c4c   :  { %1796 = vperm.xlu1 %2010, %v1749_v16   ;;  %2012 = vset.pattern.permute.xlu0 %v2206_v42 }
0x2c4d   :  { %1819 = vrot.lane.b32.xlu0 %v2916_v35, %s2218_s13  ;;  %1889 = vmatpush.msrb.mxu2 %v63_v63 }
0x2c4f   :  { %1890 = vmatpush.msrb.mxu2 %v62_v0 }
0x2c53   :  { %1824 = vrot.lane.b32.xlu2 %v2916_v35, %s2219_s14 }
0x2c93   :  { %v1767_v10 = vpop.permute.xlu2 %1766 }
0x2c94   :  { %v1771_v33 = vmul.f32 %v1769_v50, %v1767_v10  ;;  %v61_v10 = vld [vmem:[%s2988_s6 + $0x28] sm:$0xff] }
0x2c95   :  { %1891 = vmatpush.msrb.mxu2 %v61_v10 }
0x2c9c   :  { %v1789_v26 = vpop.permute.xlu2 %1788 }
0x2c9d   :  { %v1793_v37 = vmul.f32 %v1791_v52, %v1789_v26 }
0x2ca5   :  { %v1805_v39 = vpop.permute.xlu2 %1804 }
0x2cab   :  { %v1759_v11 = vpop.permute.xlu1 %1758 }
0x2cac   :  { %v1753_v15 = vpop.permute.xlu0 %1752  ;;  %v1763_v23 = vmul.f32 %v1761_v13, %v1759_v11  ;;  %v60_v11 = vld [vmem:[%s2988_s6 + $0x20] sm:$0xff]  ;;  %v59_v13 = vld [vmem:[%s2988_s6 + $0x18] sm:$0xff] }
0x2cad   :  { %v1755_v51 = vmul.f32 %v1753_v15, %v2833_v28  ;;  %v1809_v28 = vmul.f32 %v1807_v41, %v1805_v39  ;;  %v1825_v60 = vpop.permute.xlu2 %1824  ;;  %1892 = vmatpush.msrb.mxu2 %v60_v11  ;;  %v58_v15 = vld [vmem:[%s2988_s6 + $0x10] sm:$0xff] }
0x2caf   :  { %v1764_v42 = vadd.f32 %v1763_v23, %v1755_v51  ;;  %1893 = vmatpush.msrb.mxu2 %v59_v13  ;;  %v57_v23 = vld [vmem:[%s2988_s6 + $0x8] sm:$0xff] }
0x2cb1   :  { %v1772_v58 = vadd.f32 %v1771_v33, %v1764_v42  ;;  %1894 = vmatpush.msrb.mxu2 %v58_v15  ;;  %v56_v42 = vld [vmem:[%s2988_s6] sm:$0xff] }
0x2cb3   :  { %1895 = vmatpush.msrb.mxu2 %v57_v23 }
0x2cb5   :  { %v1783_v55 = vpop.permute.xlu1 %1782  ;;  %v1775_v27 = vpop.permute.xlu0 %1774  ;;  %1896 = vmatpush.msrb.mxu2 %v56_v42 }
0x2cb6   :  { %v1779_v29 = vmul.f32 %v1777_v25, %v1775_v27  ;;  %v1785_v32 = vmul.f32 %v1783_v55, %v2906_v24  ;;  %v2039_v55 = vld [vmem:[%s2988_s6 + $0x40] ss:$0 sm:$0xff]  ;;  %v2040_v27 = vld [vmem:[%s2988_s6 + $0x48] ss:$0 sm:$0xff] }
0x2cb8   :  { %v1780_v31 = vadd.f32 %v1779_v29, %v1772_v58 }
0x2cba   :  { %v1786_v36 = vadd.f32 %v1785_v32, %v1780_v31 }
0x2cbc   :  { %v1794_v43 = vadd.f32 %v1793_v37, %v1786_v36 }
0x2cbe   :  { %v1797_v40 = vpop.permute.xlu1 %1796 }
0x2cbf   :  { %v1801_v44 = vmul.f32 %v1799_v38, %v1797_v40  ;;  %v1820_v59 = vpop.permute.xlu0 %1819 }
0x2cc0   :  { %v1822_v53 = vmul.f32 %v1820_v59, %v1816_v54 }
0x2cc1   :  { %v1802_v45 = vadd.f32 %v1801_v44, %v1794_v43 }
0x2cc3   :  { %v1810_v47 = vadd.f32 %v1809_v28, %v1802_v45 }
0x2cc5   :  { %v1812_v48 = vmul.f32 %v2036_v46, %v1810_v47 }
0x2cc7   :  { %v1813_v49 = vsel %vm301_vm11, %v1812_v48, 0.0 }
0x2cc8   :  { %1814 = vadd.xlane.f32.xlu1 %v1813_v49 }
0x2d3b   :  { %v1815_v24 = vpop.xlane.xlu1 %1814 }
0x2d3c   :  { %v1823_v12 = vadd.f32 %v1822_v53, %v1815_v24 }
0x2d3e   :  { %v1827_v61 = vadd.f32 %v1825_v60, %v1823_v12 }
0x2d40   :  { %1830 = vperm.xlu0 %2012, %v1827_v61  }
0x2db2   :  { %v1831_v3 = vpop.permute.xlu0 %1830 }
0x2db3   :  { %v1834_v56 = vmul.f32 %v2037_v62, %v1831_v3 }
0x2db5   :  { %v1836_v34 = vadd.f32 %v2038_v1, %v1834_v56 }
0x2db7   :  { %2193 = vtanh.f32 %v1836_v34  ;;  %v1951_v4 = vmul.f32 -1.442695, %v1836_v34 }
0x2db9   :  { %2195 = vpow2.f32 %v1951_v4 }
0x2dbd   :  { %v2194_v2 = vpop.eup %2193 }
0x2dbe   :  { %1858 = vrot.lane.b32.xlu2 %v2194_v2, %s2207_s26 }
0x2dbf   :  { %v2196_v5 = vpop.eup %2195 }
0x2dc0   :  { %v1840_v6 = vadd.f32 1.0, %v2196_v5 }
0x2dc2   :  { %2197 = vrcp.f32 %v1840_v6  ;;  %v1852_v19 = vand.u32 2147483648, %v1840_v6  ;;  %vm1846_vm3 = vweird.f32 %v1840_v6  ;;  %v1850_v9 = vand.u32 2147483647, %v1840_v6 }
0x2dc4   :  { %v1853_v22 = vor.u32 1.1754944e-38, %v1852_v19  ;;  %vm1851_vm4 = vcmp.eq.f32.partialorder %v1850_v9, 8.507059e+37 }
0x2dc8   :  { %v2198_v7 = vpop.eup %2197 }
0x2dc9   :  { %v1842_v17 = vmul.f32 %v2198_v7, %v1840_v6  ;;  %vm1847_vm5 = vweird.f32 %v2198_v7 }
0x2dca   :  { %vm1848_vm6 = vmor %vm1846_vm3, %vm1847_vm5 }
0x2dcb   :  { %v1843_v57 = vsub.f32 1.0, %v1842_v17 }
0x2dcd   :  { %v1844_v18 = vmul.f32 %v2198_v7, %v1843_v57 }
0x2dcf   :  { %v1845_v8 = vadd.f32 %v2198_v7, %v1844_v18 }
0x2dd1   :  { %v1849_v21 = vsel %vm1848_vm6, %v2198_v7, %v1845_v8 }
0x2dd2   :  { %v1854_v20 = vsel %vm1851_vm4, %v1853_v22, %v1849_v21 }
0x2e18   :  { %v1859_v16 = vpop.permute.xlu2 %1858 }
0x2e19   :  { %v1861_v30 = vmul.f32 %v1859_v16, %v1854_v20 }
0x2e1b   :  { %2199 = vtanh.f32 %v1861_v30 }
0x2e21   :  { %v2200_v14 = vpop.eup %2199 }
0x2e22   :  { %1864 = vrot.lane.b32.xlu2 %v2200_v14, %s2220_s2 }
0x2e2a   :  { %1873 = vrot.lane.b32.xlu2 %v1810_v47, %s2208_s27 }
0x2e7c   :  { %v1865_v51 = vpop.permute.xlu2 %1864 }
0x2e7d   :  { %v1867_v50 = vmul.f32 %v1865_v51, %v1854_v20 }
0x2e7f   :  { %1869 = vrot.lane.b32.xlu0 %v1867_v50, %s2208_s27  ;;  %s2221_s27 = smov 124  }
0x2e84   :  { %v1874_v33 = vpop.permute.xlu2 %1873 }
0x2ef1   :  { %v1870_v26 = vpop.permute.xlu0 %1869 }
0x2ef2   :  { %v1876_v25 = vsel %vm303_vm12, %v1870_v26, %v1874_v33  ;;  %vm1911_vm12 = vcmask 1024  }
0x2ef3   :  { %1952 = vmatmul.msk.f32.vlgmr.msrb.gmra.mxu2 %vm98_vm13, %v1876_v25 }
0x2f76   :  { %v1898_v58 = vpop.f32.mrf.mxu2 }
0x2f77   :  { %v1899_v29 = vadd.f32 %v2039_v55, %v1898_v58 }
0x2f79   :  { %v1902_v31 = vmul.f32 %v2040_v27, %v1899_v29 }
0x2f7b   :  { %v1903_v32 = vsel %vm301_vm11, %v1902_v31, 0.0 }
0x2f7c   :  { %1904 = vadd.xlane.f32.xlu0 %v1903_v32 }
0x2fef   :  { %v1905_v52 = vpop.xlane.xlu0 %1904 }
0x2ff0   :  { %v1906_v36 = vadd.f32 %v1905_v52, %v2916_v35 }
0x2ff2   :  { %1908 = vrot.lane.b32.xlu2 %v1906_v36, %s2221_s27 }
0x304c   :  { %v1909_v37 = vpop.permute.xlu2 %1908 }
0x304d   :  { %1912 = vst.msk [vmem:[%s2989_s8] sm:$0x3] %vm1911_vm12, %v1909_v37 }

</bundles_post_ra>
